<compile_context>
chip_gen: v5e
topology: v5e:2x2
jax: 0.10.0
libtpu: 0.0.40
codegen_flags: <defaults>
</compile_context>

<pallas_src>
import functools
import jax
import jax.numpy as jnp
from jax.experimental import pallas as pl
from jax.experimental.pallas import tpu as pltpu


def _round_up(x, m):
    return (x + m - 1) // m * m


def _lm_target_kernel(x_ref, w_ref, b_ref, tgt_ref,
                      nll_ref, corr_ref, cnt_ref,
                      m_sc, s_sc, t_sc):
    j = pl.program_id(1)

    @pl.when(j == 0)
    def _():
        m_sc[...] = jnp.full_like(m_sc, -jnp.inf)
        s_sc[...] = jnp.zeros_like(s_sc)
        t_sc[...] = jnp.zeros_like(t_sc)

    # MXU matmul in the input dtype, f32 accumulate. [TM, TV]
    logits = jnp.dot(x_ref[...], w_ref[...], preferred_element_type=jnp.float32)
    logits = logits + b_ref[...].astype(jnp.float32)

    TM, TV = logits.shape
    tgt = tgt_ref[...]                                            # [TM, 1] int32

    # Capture the target-column logit (exactly one vocab tile contributes per row).
    # (1,TV) iota vs (tgt - j*TV): cheaper than adding j*TV to a [TM,TV] iota.
    col = jax.lax.broadcasted_iota(jnp.int32, (1, TV), 1)         # [1, TV]
    rel_tgt = tgt - j * TV                                        # [TM, 1]
    hit = col == rel_tgt                                          # [TM, TV] bool
    t_sc[...] += jnp.sum(jnp.where(hit, logits, 0.0), axis=-1, keepdims=True)

    # Online max / sum-exp over vocab tiles.
    m_tile = jnp.max(logits, axis=-1, keepdims=True)              # [TM, 1]
    m_new = jnp.maximum(m_sc[...], m_tile)
    s_sc[...] = s_sc[...] * jnp.exp(m_sc[...] - m_new) + \
        jnp.sum(jnp.exp(logits - m_new), axis=-1, keepdims=True)
    m_sc[...] = m_new

    @pl.when(j == pl.num_programs(1) - 1)
    def _():
        valid = (tgt > 0).astype(jnp.float32)                     # [TM, 1]
        lse = m_sc[...] + jnp.log(s_sc[...])
        nll = lse - t_sc[...]                                     # -log_softmax[tgt]
        # argmax(logits)==tgt  <=>  logit_tgt attains the row max (ties ~ measure zero)
        correct_row = (t_sc[...] >= m_sc[...]).astype(jnp.float32)
        nll_ref[...]  = jnp.sum(nll * valid, axis=0, keepdims=True).reshape(1, 1, 1)
        corr_ref[...] = jnp.sum(correct_row * valid, axis=0, keepdims=True).reshape(1, 1, 1)
        cnt_ref[...]  = jnp.sum(valid, axis=0, keepdims=True).reshape(1, 1, 1)


@functools.partial(jax.jit, static_argnames=("tm", "tv"))
def lm_target_forward(memory_bank, tgt, weight, bias=None, *, tm=256, tv=2048):
    """memory_bank: [B,S,H]; tgt: [B,S] int (0 = not predicted); weight: [H,V]; bias: [V]."""
    B, S, H = memory_bank.shape
    V = weight.shape[1]
    N = B * S

    x = memory_bank.reshape(N, H)
    w = weight.astype(x.dtype)
    if bias is None:                      # has_lmtarget_bias = False
        bias = jnp.zeros((V,), jnp.float32)
    b = bias.reshape(1, V)
    t = tgt.reshape(N, 1).astype(jnp.int32)

    # Pad the token dim to the row tile; padded rows get tgt=0 => masked out.
    n_pad = (-N) % tm
    if n_pad:
        x = jnp.pad(x, ((0, n_pad), (0, 0)))
        t = jnp.pad(t, ((0, n_pad), (0, 0)))
    Np = N + n_pad
    n_row_tiles = Np // tm

    # Vocab tiling: pad V to a multiple of tv; padded columns get bias=-1e30 so they
    # never win the max and contribute exp()=0 to the sum (and never match a target).
    tv = min(tv, _round_up(V, 128))
    v_pad = (-V) % tv
    if v_pad:
        w = jnp.pad(w, ((0, 0), (0, v_pad)))
        b = jnp.pad(b, ((0, 0), (0, v_pad)), constant_values=-1e30)
    Vp = V + v_pad
    n_vocab_tiles = Vp // tv

    # Explicit VMEM budget (double-buffered tiles + f32 temporaries + scratch).
    xb = jnp.dtype(x.dtype).itemsize
    wb = jnp.dtype(w.dtype).itemsize
    est = (2 * tm * H * xb + 2 * H * tv * wb + 2 * 8 * tv * 4 + 2 * tm * 128 * 4
           + 3 * tm * 128 * 4 + 8 * tm * tv * 4 + (2 << 20))
    vmem_limit = int(min(max(est, 32 << 20), 64 << 20))

    part = jax.ShapeDtypeStruct((n_row_tiles, 1, 1), jnp.float32)

    nll_p, corr_p, cnt_p = pl.pallas_call(
        _lm_target_kernel,
        out_shape=(part, part, part),
        grid_spec=pltpu.PrefetchScalarGridSpec(
            num_scalar_prefetch=0,
            grid=(n_row_tiles, n_vocab_tiles),
            in_specs=[
                pl.BlockSpec((tm, H), lambda i, j: (i, 0)),   # activations tile
                pl.BlockSpec((H, tv), lambda i, j: (0, j)),   # streamed weight tile
                pl.BlockSpec((1, tv), lambda i, j: (0, j)),   # streamed bias tile
                pl.BlockSpec((tm, 1), lambda i, j: (i, 0)),   # targets tile
            ],
            out_specs=(
                pl.BlockSpec((1, 1, 1), lambda i, j: (i, 0, 0)),
                pl.BlockSpec((1, 1, 1), lambda i, j: (i, 0, 0)),
                pl.BlockSpec((1, 1, 1), lambda i, j: (i, 0, 0)),
            ),
            scratch_shapes=[
                pltpu.VMEM((tm, 1), jnp.float32),   # running row max
                pltpu.VMEM((tm, 1), jnp.float32),   # running sum-exp
                pltpu.VMEM((tm, 1), jnp.float32),   # captured target logit
            ],
        ),
        compiler_params=pltpu.CompilerParams(
            dimension_semantics=("parallel", "arbitrary"),
            vmem_limit_bytes=vmem_limit,
        ),
    )(x, w, b, t)

    nll_total = jnp.sum(nll_p)
    corr_total = jnp.sum(corr_p)
    cnt_total = jnp.sum(cnt_p)

    loss = nll_total / cnt_total          # matches nn.NLLLoss mean (NaN on empty, like torch)
    correct = corr_total
    denominator = cnt_total + 1e-6
    return loss, correct, denominator


def _reference(memory_bank, tgt, weight, bias):
    H = memory_bank.shape[-1]
    x = memory_bank.reshape(-1, H).astype(jnp.float32)
    t = tgt.reshape(-1).astype(jnp.int32)
    mask = (t > 0).astype(jnp.float32)
    logits = x @ weight + bias
    logp = jax.nn.log_softmax(logits, axis=-1)
    nll = -jnp.take_along_axis(logp, t[:, None], axis=-1)[:, 0]
    cnt = jnp.sum(mask)
    loss = jnp.sum(nll * mask) / cnt
    correct = jnp.sum((jnp.argmax(logp, axis=-1) == t).astype(jnp.float32) * mask)
    denom = cnt + 1e-6
    return loss, correct, denom


if __name__ == "__main__":
    # small shapes consistent with the module: batch=2, seq=8, hidden=32, vocab=128
    B, S, H, V = 2, 8, 32, 128
    key = jax.random.PRNGKey(0)
    k1, k2, k3, k4 = jax.random.split(key, 4)

    memory_bank = jax.random.normal(k1, (B, S, H), dtype=jnp.float32)
    # targets in [0, V); 0 means "not predicted" (masked out), mirroring the tgt > 0 filter
    tgt = jax.random.randint(k2, (B, S), minval=0, maxval=V, dtype=jnp.int32)
    tgt = tgt.at[0, 0].set(0).at[1, 3].set(0)  # ensure some masked positions

    # parameters for nn.Linear(hidden_size, vocab_size, bias=True), stored as [H, V]
    weight = jax.random.normal(k3, (H, V), dtype=jnp.float32) / jnp.sqrt(H)
    bias = jax.random.normal(k4, (V,), dtype=jnp.float32) * 0.01

    loss, correct, denom = lm_target_forward(memory_bank, tgt, weight, bias)
    jax.block_until_ready((loss, correct, denom))

    ref_loss, ref_correct, ref_denom = _reference(memory_bank, tgt, weight, bias)
    assert jnp.allclose(loss, ref_loss, rtol=1e-5, atol=1e-5), (loss, ref_loss)
    assert jnp.allclose(correct, ref_correct, rtol=0, atol=0.5), (correct, ref_correct)
    assert jnp.allclose(denom, ref_denom, rtol=1e-6, atol=1e-6), (denom, ref_denom)

    print("KERNEL_OK")
</pallas_src>

<mosaic_0001>
module attributes {stable_mosaic.version = 11 : i64} {
  func.func @_lm_target_kernel(%arg0: i32, %arg1: i32, %arg2: memref<256x32xf32, #tpu.memory_space<vmem>>, %arg3: memref<32x128xf32, #tpu.memory_space<vmem>>, %arg4: memref<1x128xf32, #tpu.memory_space<vmem>>, %arg5: memref<256x1xi32, #tpu.memory_space<vmem>>, %arg6: memref<1x1x1xf32, #tpu.memory_space<vmem>>, %arg7: memref<1x1x1xf32, #tpu.memory_space<vmem>>, %arg8: memref<1x1x1xf32, #tpu.memory_space<vmem>>, %arg9: memref<256x1xf32, #tpu.memory_space<vmem>>, %arg10: memref<256x1xf32, #tpu.memory_space<vmem>>, %arg11: memref<256x1xf32, #tpu.memory_space<vmem>>) attributes {dimension_semantics = [#tpu.dimension_semantics<parallel>, #tpu.dimension_semantics<arbitrary>], iteration_bounds = array<i64: 1, 1>, scalar_prefetch = 0 : i64, scratch_operands = 3 : i64, tpu.core_type = #tpu.core_type<tc>, window_params = [{transform_indices = @transform_0, window_bounds = array<i64: 256, 32>}, {transform_indices = @transform_1, window_bounds = array<i64: 32, 128>}, {transform_indices = @transform_2, window_bounds = array<i64: 1, 128>}, {transform_indices = @transform_3, window_bounds = array<i64: 256, 1>}, {transform_indices = @transform_4, window_bounds = array<i64: 1, 1, 1>}, {transform_indices = @transform_5, window_bounds = array<i64: 1, 1, 1>}, {transform_indices = @transform_6, window_bounds = array<i64: 1, 1, 1>}]} {
    %c0_i32 = arith.constant 0 : i32
    %0 = arith.cmpi eq, %arg1, %c0_i32 : i32
    %1 = arith.extui %0 : i1 to i32
    %c0_i32_0 = arith.constant 0 : i32
    %2 = arith.cmpi ne, %1, %c0_i32_0 : i32
    scf.if %2 {
      %cst_28 = arith.constant 0xFF800000 : f32
      %44 = vector.broadcast %cst_28 : f32 to vector<256x1xf32>
      %c0_29 = arith.constant 0 : index
      %c0_30 = arith.constant 0 : index
      %45 = vector.load %arg9[%c0_29, %c0_30] : memref<256x1xf32, #tpu.memory_space<vmem>>, vector<256x1xf32>
      tpu.vector_store %arg9[%c0_29, %c0_30], %44 {strides = array<i32>} : memref<256x1xf32, #tpu.memory_space<vmem>>, vector<256x1xf32>,
      %cst_31 = arith.constant 0.000000e+00 : f32
      %46 = vector.broadcast %cst_31 : f32 to vector<256x1xf32>
      %c0_32 = arith.constant 0 : index
      %c0_33 = arith.constant 0 : index
      %47 = vector.load %arg10[%c0_32, %c0_33] : memref<256x1xf32, #tpu.memory_space<vmem>>, vector<256x1xf32>
      tpu.vector_store %arg10[%c0_32, %c0_33], %46 {strides = array<i32>} : memref<256x1xf32, #tpu.memory_space<vmem>>, vector<256x1xf32>,
      %cst_34 = arith.constant 0.000000e+00 : f32
      %48 = vector.broadcast %cst_34 : f32 to vector<256x1xf32>
      %c0_35 = arith.constant 0 : index
      %c0_36 = arith.constant 0 : index
      %49 = vector.load %arg11[%c0_35, %c0_36] : memref<256x1xf32, #tpu.memory_space<vmem>>, vector<256x1xf32>
      tpu.vector_store %arg11[%c0_35, %c0_36], %48 {strides = array<i32>} : memref<256x1xf32, #tpu.memory_space<vmem>>, vector<256x1xf32>,
    } else {
    }
    %c0 = arith.constant 0 : index
    %c0_1 = arith.constant 0 : index
    %3 = vector.load %arg2[%c0, %c0_1] : memref<256x32xf32, #tpu.memory_space<vmem>>, vector<256x32xf32>
    %c0_2 = arith.constant 0 : index
    %c0_3 = arith.constant 0 : index
    %4 = vector.load %arg3[%c0_2, %c0_3] : memref<32x128xf32, #tpu.memory_space<vmem>>, vector<32x128xf32>
    %cst = arith.constant dense<0.000000e+00> : vector<256x128xf32>
    %5 = tpu.matmul %3, %4, %cst {dimension_numbers = #tpu.dot_dimension_numbers<[1], [0], [0], [1], [0, 0, 1, 1], [], []>} : vector<256x32xf32>, vector<32x128xf32>, vector<256x128xf32> -> vector<256x128xf32>
    %c0_4 = arith.constant 0 : index
    %c0_5 = arith.constant 0 : index
    %6 = vector.load %arg4[%c0_4, %c0_5] : memref<1x128xf32, #tpu.memory_space<vmem>>, vector<1x128xf32>
    %7 = vector.broadcast %6 : vector<1x128xf32> to vector<256x128xf32>
    %8 = arith.addf %5, %7 : vector<256x128xf32>
    %c0_6 = arith.constant 0 : index
    %c0_7 = arith.constant 0 : index
    %9 = vector.load %arg5[%c0_6, %c0_7] : memref<256x1xi32, #tpu.memory_space<vmem>>, vector<256x1xi32>
    %10 = tpu.iota {dimensions = array<i32: 1>} : vector<1x128xi32>
    %c128_i32 = arith.constant 128 : i32
    %11 = arith.muli %arg1, %c128_i32 : i32
    %12 = vector.broadcast %11 : i32 to vector<256x1xi32>
    %13 = arith.subi %9, %12 : vector<256x1xi32>
    %14 = vector.broadcast %10 : vector<1x128xi32> to vector<256x128xi32>
    %15 = vector.broadcast %13 : vector<256x1xi32> to vector<256x128xi32>
    %16 = arith.cmpi eq, %14, %15 : vector<256x128xi32>
    %c0_8 = arith.constant 0 : index
    %c0_9 = arith.constant 0 : index
    %17 = vector.load %arg11[%c0_8, %c0_9] : memref<256x1xf32, #tpu.memory_space<vmem>>, vector<256x1xf32>
    %cst_10 = arith.constant 0.000000e+00 : f32
    %18 = vector.broadcast %cst_10 : f32 to vector<256x128xf32>
    %19 = arith.select %16, %8, %18 : vector<256x128xi1>, vector<256x128xf32>
    %cst_11 = arith.constant dense<0.000000e+00> : vector<256xf32>
    %20 = vector.multi_reduction <add>, %19, %cst_11 [1] : vector<256x128xf32> to vector<256xf32>
    %21 = vector.shape_cast %20 : vector<256xf32> to vector<256x1xf32>
    %22 = arith.addf %17, %21 : vector<256x1xf32>
    %c0_12 = arith.constant 0 : index
    %c0_13 = arith.constant 0 : index
    %23 = vector.load %arg11[%c0_12, %c0_13] : memref<256x1xf32, #tpu.memory_space<vmem>>, vector<256x1xf32>
    tpu.vector_store %arg11[%c0_12, %c0_13], %22 {strides = array<i32>} : memref<256x1xf32, #tpu.memory_space<vmem>>, vector<256x1xf32>,
    %cst_14 = arith.constant dense<0xFF800000> : vector<256xf32>
    %24 = vector.multi_reduction <maximumf>, %8, %cst_14 [1] : vector<256x128xf32> to vector<256xf32>
    %25 = vector.shape_cast %24 : vector<256xf32> to vector<256x1xf32>
    %c0_15 = arith.constant 0 : index
    %c0_16 = arith.constant 0 : index
    %26 = vector.load %arg9[%c0_15, %c0_16] : memref<256x1xf32, #tpu.memory_space<vmem>>, vector<256x1xf32>
    %27 = arith.maximumf %26, %25 : vector<256x1xf32>
    %c0_17 = arith.constant 0 : index
    %c0_18 = arith.constant 0 : index
    %28 = vector.load %arg10[%c0_17, %c0_18] : memref<256x1xf32, #tpu.memory_space<vmem>>, vector<256x1xf32>
    %c0_19 = arith.constant 0 : index
    %c0_20 = arith.constant 0 : index
    %29 = vector.load %arg9[%c0_19, %c0_20] : memref<256x1xf32, #tpu.memory_space<vmem>>, vector<256x1xf32>
    %30 = arith.subf %29, %27 : vector<256x1xf32>
    %31 = math.exp %30 : vector<256x1xf32>
    %32 = arith.mulf %28, %31 : vector<256x1xf32>
    %33 = vector.broadcast %27 : vector<256x1xf32> to vector<256x128xf32>
    %34 = arith.subf %8, %33 : vector<256x128xf32>
    %35 = math.exp %34 : vector<256x128xf32>
    %cst_21 = arith.constant dense<0.000000e+00> : vector<256xf32>
    %36 = vector.multi_reduction <add>, %35, %cst_21 [1] : vector<256x128xf32> to vector<256xf32>
    %37 = vector.shape_cast %36 : vector<256xf32> to vector<256x1xf32>
    %38 = arith.addf %32, %37 : vector<256x1xf32>
    %c0_22 = arith.constant 0 : index
    %c0_23 = arith.constant 0 : index
    %39 = vector.load %arg10[%c0_22, %c0_23] : memref<256x1xf32, #tpu.memory_space<vmem>>, vector<256x1xf32>
    tpu.vector_store %arg10[%c0_22, %c0_23], %38 {strides = array<i32>} : memref<256x1xf32, #tpu.memory_space<vmem>>, vector<256x1xf32>,
    %c0_24 = arith.constant 0 : index
    %c0_25 = arith.constant 0 : index
    %40 = vector.load %arg9[%c0_24, %c0_25] : memref<256x1xf32, #tpu.memory_space<vmem>>, vector<256x1xf32>
    tpu.vector_store %arg9[%c0_24, %c0_25], %27 {strides = array<i32>} : memref<256x1xf32, #tpu.memory_space<vmem>>, vector<256x1xf32>,
    %c0_i32_26 = arith.constant 0 : i32
    %41 = arith.cmpi eq, %arg1, %c0_i32_26 : i32
    %42 = arith.extui %41 : i1 to i32
    %c0_i32_27 = arith.constant 0 : i32
    %43 = arith.cmpi ne, %42, %c0_i32_27 : i32
    scf.if %43 {
      %c0_i32_28 = arith.constant 0 : i32
      %44 = vector.broadcast %c0_i32_28 : i32 to vector<256x1xi32>
      %45 = arith.cmpi sgt, %9, %44 : vector<256x1xi32>
      %46 = arith.extui %45 : vector<256x1xi1> to vector<256x1xi32>
      %47 = arith.sitofp %46 : vector<256x1xi32> to vector<256x1xf32>
      %c0_29 = arith.constant 0 : index
      %c0_30 = arith.constant 0 : index
      %48 = vector.load %arg9[%c0_29, %c0_30] : memref<256x1xf32, #tpu.memory_space<vmem>>, vector<256x1xf32>
      %c0_31 = arith.constant 0 : index
      %c0_32 = arith.constant 0 : index
      %49 = vector.load %arg10[%c0_31, %c0_32] : memref<256x1xf32, #tpu.memory_space<vmem>>, vector<256x1xf32>
      %50 = math.log %49 : vector<256x1xf32>
      %51 = arith.addf %48, %50 : vector<256x1xf32>
      %c0_33 = arith.constant 0 : index
      %c0_34 = arith.constant 0 : index
      %52 = vector.load %arg11[%c0_33, %c0_34] : memref<256x1xf32, #tpu.memory_space<vmem>>, vector<256x1xf32>
      %53 = arith.subf %51, %52 : vector<256x1xf32>
      %c0_35 = arith.constant 0 : index
      %c0_36 = arith.constant 0 : index
      %54 = vector.load %arg11[%c0_35, %c0_36] : memref<256x1xf32, #tpu.memory_space<vmem>>, vector<256x1xf32>
      %c0_37 = arith.constant 0 : index
      %c0_38 = arith.constant 0 : index
      %55 = vector.load %arg9[%c0_37, %c0_38] : memref<256x1xf32, #tpu.memory_space<vmem>>, vector<256x1xf32>
      %56 = arith.cmpf oge, %54, %55 : vector<256x1xf32>
      %57 = arith.extui %56 : vector<256x1xi1> to vector<256x1xi32>
      %58 = arith.sitofp %57 : vector<256x1xi32> to vector<256x1xf32>
      %59 = arith.mulf %53, %47 : vector<256x1xf32>
      %cst_39 = arith.constant dense<0.000000e+00> : vector<1xf32>
      %60 = vector.multi_reduction <add>, %59, %cst_39 [0] : vector<256x1xf32> to vector<1xf32>
      %61 = vector.shape_cast %60 : vector<1xf32> to vector<1x1xf32>
      %62 = vector.shape_cast %61 : vector<1x1xf32> to vector<1x1x1xf32>
      %c0_40 = arith.constant 0 : index
      %c0_41 = arith.constant 0 : index
      %c0_42 = arith.constant 0 : index
      %63 = vector.load %arg6[%c0_40, %c0_41, %c0_42] : memref<1x1x1xf32, #tpu.memory_space<vmem>>, vector<1x1x1xf32>
      tpu.vector_store %arg6[%c0_40, %c0_41, %c0_42], %62 {strides = array<i32>} : memref<1x1x1xf32, #tpu.memory_space<vmem>>, vector<1x1x1xf32>,
      %64 = arith.mulf %58, %47 : vector<256x1xf32>
      %cst_43 = arith.constant dense<0.000000e+00> : vector<1xf32>
      %65 = vector.multi_reduction <add>, %64, %cst_43 [0] : vector<256x1xf32> to vector<1xf32>
      %66 = vector.shape_cast %65 : vector<1xf32> to vector<1x1xf32>
      %67 = vector.shape_cast %66 : vector<1x1xf32> to vector<1x1x1xf32>
      %c0_44 = arith.constant 0 : index
      %c0_45 = arith.constant 0 : index
      %c0_46 = arith.constant 0 : index
      %68 = vector.load %arg7[%c0_44, %c0_45, %c0_46] : memref<1x1x1xf32, #tpu.memory_space<vmem>>, vector<1x1x1xf32>
      tpu.vector_store %arg7[%c0_44, %c0_45, %c0_46], %67 {strides = array<i32>} : memref<1x1x1xf32, #tpu.memory_space<vmem>>, vector<1x1x1xf32>,
      %cst_47 = arith.constant dense<0.000000e+00> : vector<1xf32>
      %69 = vector.multi_reduction <add>, %47, %cst_47 [0] : vector<256x1xf32> to vector<1xf32>
      %70 = vector.shape_cast %69 : vector<1xf32> to vector<1x1xf32>
      %71 = vector.shape_cast %70 : vector<1x1xf32> to vector<1x1x1xf32>
      %c0_48 = arith.constant 0 : index
      %c0_49 = arith.constant 0 : index
      %c0_50 = arith.constant 0 : index
      %72 = vector.load %arg8[%c0_48, %c0_49, %c0_50] : memref<1x1x1xf32, #tpu.memory_space<vmem>>, vector<1x1x1xf32>
      tpu.vector_store %arg8[%c0_48, %c0_49, %c0_50], %71 {strides = array<i32>} : memref<1x1x1xf32, #tpu.memory_space<vmem>>, vector<1x1x1xf32>,
    } else {
    }
    return
  }
  func.func @transform_0(%arg0: i32, %arg1: i32) -> (i32, i32) {
    %c0_i32 = arith.constant 0 : i32
    %c0_i32_0 = arith.constant 0 : i32
    return %arg0, %c0_i32 : i32, i32
  }
  func.func @transform_1(%arg0: i32, %arg1: i32) -> (i32, i32) {
    %c0_i32 = arith.constant 0 : i32
    %c0_i32_0 = arith.constant 0 : i32
    return %c0_i32, %arg1 : i32, i32
  }
  func.func @transform_2(%arg0: i32, %arg1: i32) -> (i32, i32) {
    %c0_i32 = arith.constant 0 : i32
    %c0_i32_0 = arith.constant 0 : i32
    return %c0_i32, %arg1 : i32, i32
  }
  func.func @transform_3(%arg0: i32, %arg1: i32) -> (i32, i32) {
    %c0_i32 = arith.constant 0 : i32
    %c0_i32_0 = arith.constant 0 : i32
    return %arg0, %c0_i32 : i32, i32
  }
  func.func @transform_4(%arg0: i32, %arg1: i32) -> (i32, i32, i32) {
    %c0_i32 = arith.constant 0 : i32
    %c0_i32_0 = arith.constant 0 : i32
    %c0_i32_1 = arith.constant 0 : i32
    return %arg0, %c0_i32, %c0_i32_0 : i32, i32, i32
  }
  func.func @transform_5(%arg0: i32, %arg1: i32) -> (i32, i32, i32) {
    %c0_i32 = arith.constant 0 : i32
    %c0_i32_0 = arith.constant 0 : i32
    %c0_i32_1 = arith.constant 0 : i32
    return %arg0, %c0_i32, %c0_i32_0 : i32, i32, i32
  }
  func.func @transform_6(%arg0: i32, %arg1: i32) -> (i32, i32, i32) {
    %c0_i32 = arith.constant 0 : i32
    %c0_i32_0 = arith.constant 0 : i32
    %c0_i32_1 = arith.constant 0 : i32
    return %arg0, %c0_i32, %c0_i32_0 : i32, i32, i32
  }
}

</mosaic_0001>

<bundles_post_ra>
// kernel: lm_target_forward.1
= control target key start
LH: loop header
LB: loop body
LE: loop exit
PB: predicated region body
PF: predicated region fallthrough
CT: control target
= control target key end

     0   :  { %12 = vsyncpa [#allocation6], 0  ;;  %vm26_vm0 = vcmask 7168   ;;  %v2689_v1 = vmov 0   ;;  %v4404_v3 = vmov 0.0   ;;  %vm163_vm1 = vcmask 261120   ;;  %s4374_s0 = inlined_call_operand.vmem [shape: f32[256,32], index: 0, kind: input, shape index: {}]   ;;  %s4375_s1 = inlined_call_operand.vmem [shape: f32[32,128], index: 1, kind: input, shape index: {}]   ;;  %s4376_s2 = inlined_call_operand.vmem [shape: f32[1,128], index: 2, kind: input, shape index: {}]   ;;  %s4377_s3 = inlined_call_operand.vmem [shape: s32[256,1], index: 3, kind: input, shape index: {}]   ;;  %s4378_s4 = inlined_call_operand.hbm [shape: f32[1,1,1], index: 4, kind: output, shape index: {0}]   ;;  %s4379_s5 = inlined_call_operand.hbm [shape: f32[1,1,1], index: 5, kind: output, shape index: {1}]   ;;  %s4380_s6 = inlined_call_operand.hbm [shape: f32[1,1,1], index: 6, kind: output, shape index: {2}]  }
   0x1   :  { %v158_v0 = vld [vmem:[%s4375_s1 + $0x18] sm:$0xff]  ;;  %2323 = vset.pattern.permute.xlu2 %v2689_v1  ;;  %2322 = vset.pattern.permute.xlu1 %v2689_v1  ;;  %v377_v2 = vld [vmem:[%s4377_s3 + $0x20] sm:$0xff]  ;;  %59 = vst.msk [vmem:[#allocation3] sm:$0xff] %vm26_vm0, %v4404_v3  ;;  %v375_v4 = vld [vmem:[%s4377_s3 + $0x10] sm:$0xff] }
   0x2   :  { %2321 = vset.pattern.permute.xlu0 %v2689_v1  ;;  %272 = vmatpush.msra.mxu0 %v158_v0  ;;  %60 = vst.msk [vmem:[#allocation3 + $0x8] sm:$0xff] %vm26_vm0, %v4404_v3  ;;  %v373_v5 = vld [vmem:[%s4377_s3] sm:$0xff]  ;;  %v157_v6 = vld [vmem:[%s4375_s1 + $0x10] sm:$0xff]  ;;  %v156_v7 = vld [vmem:[%s4375_s1 + $0x8] sm:$0xff] }
   0x3   :  { %2303 = vmatpush.msra.mxu1 %v158_v0  ;;  %2304 = vmatpush.msra.mxu2 %v158_v0  ;;  %61 = vst.msk [vmem:[#allocation3 + $0x10] sm:$0xff] %vm26_vm0, %v4404_v3  ;;  %v155_v8 = vld [vmem:[%s4375_s1] sm:$0xff]  ;;  %v378_v13 = vld [vmem:[%s4377_s3 + $0x28] sm:$0xff]  ;;  %v376_v14 = vld [vmem:[%s4377_s3 + $0x18] sm:$0xff] }
   0x4   :  { %2305 = vmatpush.msra.mxu3 %v158_v0  ;;  %454 = vperm.xlu2 %2323, %v377_v2   ;;  %62 = vst.msk [vmem:[#allocation3 + $0x18] sm:$0xff] %vm26_vm0, %v4404_v3  ;;  %v123_v9 = vld [vmem:[%s4374_s0] sm:$0xff]  ;;  %v374_v15 = vld [vmem:[%s4377_s3 + $0x8] sm:$0xff] }
   0x5   :  { %63 = vst.msk [vmem:[#allocation3 + $0x20] sm:$0xff] %vm26_vm0, %v4404_v3  ;;  %448 = vperm.xlu1 %2322, %v375_v4   ;;  %442 = vperm.xlu0 %2321, %v373_v5   ;;  %v131_v10 = vld [vmem:[%s4374_s0 + $0x40] sm:$0xff] }
   0x6   :  { %64 = vst.msk [vmem:[#allocation3 + $0x28] sm:$0xff] %vm26_vm0, %v4404_v3  ;;  %273 = vmatpush.msra.mxu0 %v157_v6  ;;  %2306 = vmatpush.msra.mxu1 %v157_v6  ;;  %v139_v11 = vld [vmem:[%s4374_s0 + $0x80] sm:$0xff] }
   0x7   :  { %65 = vst.msk [vmem:[#allocation3 + $0x30] sm:$0xff] %vm26_vm0, %v4404_v3  ;;  %2307 = vmatpush.msra.mxu2 %v157_v6  ;;  %2308 = vmatpush.msra.mxu3 %v157_v6  ;;  %v147_v12 = vld [vmem:[%s4374_s0 + $0xc0] sm:$0xff] }
   0x8   :  { %66 = vst.msk [vmem:[#allocation3 + $0x38] sm:$0xff] %vm26_vm0, %v4404_v3  ;;  %274 = vmatpush.msra.mxu0 %v156_v7  ;;  %2309 = vmatpush.msra.mxu1 %v156_v7 }
   0x9   :  { %67 = vst.msk [vmem:[#allocation3 + $0x40] sm:$0xff] %vm26_vm0, %v4404_v3  ;;  %2310 = vmatpush.msra.mxu2 %v156_v7  ;;  %2311 = vmatpush.msra.mxu3 %v156_v7 }
   0xa   :  { %68 = vst.msk [vmem:[#allocation3 + $0x48] sm:$0xff] %vm26_vm0, %v4404_v3  ;;  %275 = vmatpush.msra.mxu0 %v155_v8  ;;  %2312 = vmatpush.msra.mxu1 %v155_v8 }
   0xb   :  { %69 = vst.msk [vmem:[#allocation3 + $0x50] sm:$0xff] %vm26_vm0, %v4404_v3  ;;  %2313 = vmatpush.msra.mxu2 %v155_v8  ;;  %2314 = vmatpush.msra.mxu3 %v155_v8 }
   0xc   :  { %70 = vst.msk [vmem:[#allocation3 + $0x58] sm:$0xff] %vm26_vm0, %v4404_v3  ;;  %2207 = vmatmul.msk.f32.vlgmr.msra.gmra.mxu0 %vm163_vm1, %v123_v9  ;;  %2215 = vmatmul.msk.f32.vlgmr.msra.gmra.mxu1 %vm163_vm1, %v131_v10 }
   0xd   :  { %71 = vst.msk [vmem:[#allocation3 + $0x60] sm:$0xff] %vm26_vm0, %v4404_v3  ;;  %2223 = vmatmul.msk.f32.vlgmr.msra.gmra.mxu2 %vm163_vm1, %v139_v11  ;;  %2231 = vmatmul.msk.f32.vlgmr.msra.gmra.mxu3 %vm163_vm1, %v147_v12 }
   0xe   :  { %13 = vsyncpa [#allocation8], 0  ;;  %72 = vst.msk [vmem:[#allocation3 + $0x68] sm:$0xff] %vm26_vm0, %v4404_v3  ;;  %457 = vperm.xlu2 %2323, %v378_v13   ;;  %451 = vperm.xlu1 %2322, %v376_v14   ;;  %v124_v16 = vld [vmem:[%s4374_s0 + $0x8] sm:$0xff]  ;;  %v381_v20 = vld [vmem:[%s4377_s3 + $0x40] sm:$0xff]  ;;  %s2178_s18 = sshll.u32 %s4379_s5, 4  ;;  %s2179_s18 = int_to_ptr.hbm [resolvable:$true] %s2178_s18 }
   0xf   :  { %73 = vst.msk [vmem:[#allocation3 + $0x70] sm:$0xff] %vm26_vm0, %v4404_v3  ;;  %445 = vperm.xlu0 %2321, %v374_v15   ;;  %v132_v17 = vld [vmem:[%s4374_s0 + $0x48] sm:$0xff]  ;;  %v380_v21 = vld [vmem:[%s4377_s3 + $0x38] sm:$0xff]  ;;  %v379_v22 = vld [vmem:[%s4377_s3 + $0x30] sm:$0xff]  ;;  %s2692_s19 = smov [#allocation7]   ;;  %s2693_s5 = smov [#allocation9]  }
  0x10   :  { %74 = vst.msk [vmem:[#allocation3 + $0x78] sm:$0xff] %vm26_vm0, %v4404_v3  ;;  %v140_v18 = vld [vmem:[%s4374_s0 + $0x88] sm:$0xff]  ;;  %v125_v23 = vld [vmem:[%s4374_s0 + $0x10] sm:$0xff]  ;;  %v384_v27 = vld [vmem:[%s4377_s3 + $0x58] sm:$0xff]  ;;  %s2176_s20 = sshll.u32 %s2692_s19, 4  ;;  %s4348_s21 = sshll.u32 %s2693_s5, 4  ;;  %s2177_s20 = int_to_ptr.vmem [resolvable:$true] %s2176_s20  ;;  %s2188_s21 = int_to_ptr.vmem [resolvable:$true] %s4348_s21 }
  0x11   :  { %75 = vst.msk [vmem:[#allocation3 + $0x80] sm:$0xff] %vm26_vm0, %v4404_v3  ;;  %v148_v19 = vld [vmem:[%s4374_s0 + $0xc8] sm:$0xff]  ;;  %v133_v24 = vld [vmem:[%s4374_s0 + $0x50] sm:$0xff]  ;;  %v126_v30 = vld [vmem:[%s4374_s0 + $0x18] sm:$0xff]  ;;  %s2189_s23 = sshll.u32 %s4380_s6, 4  ;;  %s2694_s6 = smov [#allocation5]   ;;  %s2190_s23 = int_to_ptr.hbm [resolvable:$true] %s2189_s23 }
  0x12   :  { %76 = vst.msk [vmem:[#allocation3 + $0x88] sm:$0xff] %vm26_vm0, %v4404_v3  ;;  %v141_v25 = vld [vmem:[%s4374_s0 + $0x90] sm:$0xff]  ;;  %v382_v29 = vld [vmem:[%s4377_s3 + $0x48] sm:$0xff]  ;;  %v134_v31 = vld [vmem:[%s4374_s0 + $0x58] sm:$0xff]  ;;  %s2165_s24 = sshll.u32 %s2694_s6, 4  ;;  %s2167_s27 = sshll.u32 %s4378_s4, 4  ;;  %s2166_s24 = int_to_ptr.vmem [resolvable:$true] %s2165_s24  ;;  %s2168_s27 = int_to_ptr.hbm [resolvable:$true] %s2167_s27 }
  0x13   :  { %77 = vst.msk [vmem:[#allocation3 + $0x90] sm:$0xff] %vm26_vm0, %v4404_v3  ;;  %v149_v26 = vld [vmem:[%s4374_s0 + $0xd0] sm:$0xff]  ;;  %v142_v32 = vld [vmem:[%s4374_s0 + $0x98] sm:$0xff]  ;;  %v386_v35 = vld [vmem:[%s4377_s3 + $0x68] sm:$0xff] }
  0x14   :  { %78 = vst.msk [vmem:[#allocation3 + $0x98] sm:$0xff] %vm26_vm0, %v4404_v3  ;;  %2208 = vmatmul.msk.f32.gmra.mxu0 %vm163_vm1, %v124_v16  ;;  %2216 = vmatmul.msk.f32.gmra.mxu1 %vm163_vm1, %v132_v17  ;;  %v383_v28 = vld [vmem:[%s4377_s3 + $0x50] sm:$0xff]  ;;  %v150_v33 = vld [vmem:[%s4374_s0 + $0xd8] sm:$0xff]  ;;  %v385_v36 = vld [vmem:[%s4377_s3 + $0x60] sm:$0xff]  ;;  %v405_v16 = vlaneseq }
  0x15   :  { %79 = vst.msk [vmem:[#allocation3 + $0xa0] sm:$0xff] %vm26_vm0, %v4404_v3  ;;  %2224 = vmatmul.msk.f32.gmra.mxu2 %vm163_vm1, %v140_v18  ;;  %2232 = vmatmul.msk.f32.gmra.mxu3 %vm163_vm1, %v148_v19  ;;  %v387_v34 = vld [vmem:[%s4377_s3 + $0x70] sm:$0xff]  ;;  %v127_v37 = vld [vmem:[%s4374_s0 + $0x20] sm:$0xff]  ;;  %v390_v41 = vld [vmem:[%s4377_s3 + $0x88] sm:$0xff] }
  0x16   :  { %80 = vst.msk [vmem:[#allocation3 + $0xa8] sm:$0xff] %vm26_vm0, %v4404_v3  ;;  %466 = vperm.xlu2 %2323, %v381_v20   ;;  %463 = vperm.xlu1 %2322, %v380_v21   ;;  %v135_v38 = vld [vmem:[%s4374_s0 + $0x60] sm:$0xff]  ;;  %v388_v43 = vld [vmem:[%s4377_s3 + $0x78] sm:$0xff]  ;;  %v128_v44 = vld [vmem:[%s4374_s0 + $0x28] sm:$0xff]  ;;  %v3111_v18 = vand.u32 127, %v405_v16 }
  0x17   :  { %81 = vst.msk [vmem:[#allocation3 + $0xb0] sm:$0xff] %vm26_vm0, %v4404_v3  ;;  %460 = vperm.xlu0 %2321, %v379_v22   ;;  %v143_v39 = vld [vmem:[%s4374_s0 + $0xa0] sm:$0xff]  ;;  %v136_v45 = vld [vmem:[%s4374_s0 + $0x68] sm:$0xff]  ;;  %v392_v49 = vld [vmem:[%s4377_s3 + $0x98] sm:$0xff] }
  0x18   :  { %82 = vst.msk [vmem:[#allocation3 + $0xb8] sm:$0xff] %vm26_vm0, %v4404_v3  ;;  %v151_v40 = vld [vmem:[%s4374_s0 + $0xe0] sm:$0xff]  ;;  %v144_v46 = vld [vmem:[%s4374_s0 + $0xa8] sm:$0xff]  ;;  %v391_v50 = vld [vmem:[%s4377_s3 + $0x90] sm:$0xff] }
  0x19   :  { %83 = vst.msk [vmem:[#allocation3 + $0xc0] sm:$0xff] %vm26_vm0, %v4404_v3  ;;  %v389_v42 = vld [vmem:[%s4377_s3 + $0x80] sm:$0xff]  ;;  %v152_v47 = vld [vmem:[%s4374_s0 + $0xe8] sm:$0xff]  ;;  %v129_v51 = vld [vmem:[%s4374_s0 + $0x30] sm:$0xff] }
  0x1a   :  { %84 = vst.msk [vmem:[#allocation3 + $0xc8] sm:$0xff] %vm26_vm0, %v4404_v3  ;;  %v393_v48 = vld [vmem:[%s4377_s3 + $0xa0] sm:$0xff]  ;;  %v137_v52 = vld [vmem:[%s4374_s0 + $0x70] sm:$0xff]  ;;  %v396_v55 = vld [vmem:[%s4377_s3 + $0xb8] sm:$0xff] }
  0x1b   :  { %85 = vst.msk [vmem:[#allocation3 + $0xd0] sm:$0xff] %vm26_vm0, %v4404_v3  ;;  %v145_v53 = vld [vmem:[%s4374_s0 + $0xb0] sm:$0xff]  ;;  %v394_v57 = vld [vmem:[%s4377_s3 + $0xa8] sm:$0xff]  ;;  %v130_v58 = vld [vmem:[%s4374_s0 + $0x38] sm:$0xff] }
  0x1c   :  { %86 = vst.msk [vmem:[#allocation3 + $0xd8] sm:$0xff] %vm26_vm0, %v4404_v3  ;;  %2209 = vmatmul.msk.f32.gmra.mxu0 %vm163_vm1, %v125_v23  ;;  %2217 = vmatmul.msk.f32.gmra.mxu1 %vm163_vm1, %v133_v24  ;;  %v153_v54 = vld [vmem:[%s4374_s0 + $0xf0] sm:$0xff]  ;;  %v138_v59 = vld [vmem:[%s4374_s0 + $0x78] sm:$0xff]  ;;  %v398_v63 = vld [vmem:[%s4377_s3 + $0xc8] sm:$0xff] }
  0x1d   :  { %87 = vst.msk [vmem:[#allocation3 + $0xe0] sm:$0xff] %vm26_vm0, %v4404_v3  ;;  %2225 = vmatmul.msk.f32.gmra.mxu2 %vm163_vm1, %v141_v25  ;;  %2233 = vmatmul.msk.f32.gmra.mxu3 %vm163_vm1, %v149_v26  ;;  %v395_v56 = vld [vmem:[%s4377_s3 + $0xb0] sm:$0xff]  ;;  %v146_v60 = vld [vmem:[%s4374_s0 + $0xb8] sm:$0xff]  ;;  %v397_v0 = vld [vmem:[%s4377_s3 + $0xc0] sm:$0xff] }
  0x1e   :  { %88 = vst.msk [vmem:[#allocation3 + $0xe8] sm:$0xff] %vm26_vm0, %v4404_v3  ;;  %475 = vperm.xlu2 %2323, %v384_v27   ;;  %472 = vperm.xlu1 %2322, %v383_v28   ;;  %v154_v61 = vld [vmem:[%s4374_s0 + $0xf8] sm:$0xff]  ;;  %v399_v62 = vld [vmem:[%s4377_s3 + $0xd0] sm:$0xff]  ;;  %v402_v1 = vld [vmem:[%s4377_s3 + $0xe8] sm:$0xff] }
  0x1f   :  { %89 = vst.msk [vmem:[#allocation3 + $0xf0] sm:$0xff] %vm26_vm0, %v4404_v3  ;;  %469 = vperm.xlu0 %2321, %v382_v29   ;;  %v401_v2 = vld [vmem:[%s4377_s3 + $0xe0] sm:$0xff]  ;;  %v400_v4 = vld [vmem:[%s4377_s3 + $0xd8] sm:$0xff]  ;;  %v403_v6 = vld [vmem:[%s4377_s3 + $0xf0] sm:$0xff] }
  0x20   :  { %90 = vst.msk [vmem:[#allocation3 + $0xf8] sm:$0xff] %vm26_vm0, %v4404_v3  ;;  %v404_v5 = vld [vmem:[%s4377_s3 + $0xf8] sm:$0xff]  ;;  %v3109_v17 = vld [vmem:[%s4376_s2] ss:$0 sm:$0xff] }
  0x21   :  { %91 = vst.msk [vmem:[#allocation4] sm:$0xff] %vm26_vm0, %v4404_v3 }
  0x22   :  { %92 = vst.msk [vmem:[#allocation4 + $0x8] sm:$0xff] %vm26_vm0, %v4404_v3 }
  0x23   :  { %93 = vst.msk [vmem:[#allocation4 + $0x10] sm:$0xff] %vm26_vm0, %v4404_v3 }
  0x24   :  { %94 = vst.msk [vmem:[#allocation4 + $0x18] sm:$0xff] %vm26_vm0, %v4404_v3  ;;  %2210 = vmatmul.msk.f32.gmra.mxu0 %vm163_vm1, %v126_v30  ;;  %2218 = vmatmul.msk.f32.gmra.mxu1 %vm163_vm1, %v134_v31 }
  0x25   :  { %95 = vst.msk [vmem:[#allocation4 + $0x20] sm:$0xff] %vm26_vm0, %v4404_v3  ;;  %2226 = vmatmul.msk.f32.gmra.mxu2 %vm163_vm1, %v142_v32  ;;  %2234 = vmatmul.msk.f32.gmra.mxu3 %vm163_vm1, %v150_v33 }
  0x26   :  { %96 = vst.msk [vmem:[#allocation4 + $0x28] sm:$0xff] %vm26_vm0, %v4404_v3  ;;  %484 = vperm.xlu2 %2323, %v387_v34   ;;  %481 = vperm.xlu1 %2322, %v386_v35  }
  0x27   :  { %97 = vst.msk [vmem:[#allocation4 + $0x30] sm:$0xff] %vm26_vm0, %v4404_v3  ;;  %478 = vperm.xlu0 %2321, %v385_v36  }
  0x28   :  { %98 = vst.msk [vmem:[#allocation4 + $0x38] sm:$0xff] %vm26_vm0, %v4404_v3 }
  0x29   :  { %99 = vst.msk [vmem:[#allocation4 + $0x40] sm:$0xff] %vm26_vm0, %v4404_v3 }
  0x2a   :  { %100 = vst.msk [vmem:[#allocation4 + $0x48] sm:$0xff] %vm26_vm0, %v4404_v3 }
  0x2b   :  { %101 = vst.msk [vmem:[#allocation4 + $0x50] sm:$0xff] %vm26_vm0, %v4404_v3 }
  0x2c   :  { %102 = vst.msk [vmem:[#allocation4 + $0x58] sm:$0xff] %vm26_vm0, %v4404_v3  ;;  %2211 = vmatmul.msk.f32.gmra.mxu0 %vm163_vm1, %v127_v37  ;;  %2219 = vmatmul.msk.f32.gmra.mxu1 %vm163_vm1, %v135_v38 }
  0x2d   :  { %103 = vst.msk [vmem:[#allocation4 + $0x60] sm:$0xff] %vm26_vm0, %v4404_v3  ;;  %2227 = vmatmul.msk.f32.gmra.mxu2 %vm163_vm1, %v143_v39  ;;  %2235 = vmatmul.msk.f32.gmra.mxu3 %vm163_vm1, %v151_v40 }
  0x2e   :  { %104 = vst.msk [vmem:[#allocation4 + $0x68] sm:$0xff] %vm26_vm0, %v4404_v3  ;;  %493 = vperm.xlu2 %2323, %v390_v41   ;;  %490 = vperm.xlu1 %2322, %v389_v42  }
  0x2f   :  { %105 = vst.msk [vmem:[#allocation4 + $0x70] sm:$0xff] %vm26_vm0, %v4404_v3  ;;  %487 = vperm.xlu0 %2321, %v388_v43  }
  0x30   :  { %106 = vst.msk [vmem:[#allocation4 + $0x78] sm:$0xff] %vm26_vm0, %v4404_v3 }
  0x31   :  { %107 = vst.msk [vmem:[#allocation4 + $0x80] sm:$0xff] %vm26_vm0, %v4404_v3 }
  0x32   :  { %108 = vst.msk [vmem:[#allocation4 + $0x88] sm:$0xff] %vm26_vm0, %v4404_v3 }
  0x33   :  { %109 = vst.msk [vmem:[#allocation4 + $0x90] sm:$0xff] %vm26_vm0, %v4404_v3 }
  0x34   :  { %110 = vst.msk [vmem:[#allocation4 + $0x98] sm:$0xff] %vm26_vm0, %v4404_v3  ;;  %2212 = vmatmul.msk.f32.gmra.mxu0 %vm163_vm1, %v128_v44  ;;  %2220 = vmatmul.msk.f32.gmra.mxu1 %vm163_vm1, %v136_v45 }
  0x35   :  { %111 = vst.msk [vmem:[#allocation4 + $0xa0] sm:$0xff] %vm26_vm0, %v4404_v3  ;;  %2228 = vmatmul.msk.f32.gmra.mxu2 %vm163_vm1, %v144_v46  ;;  %2236 = vmatmul.msk.f32.gmra.mxu3 %vm163_vm1, %v152_v47 }
  0x36   :  { %112 = vst.msk [vmem:[#allocation4 + $0xa8] sm:$0xff] %vm26_vm0, %v4404_v3  ;;  %502 = vperm.xlu2 %2323, %v393_v48   ;;  %499 = vperm.xlu1 %2322, %v392_v49  }
  0x37   :  { %113 = vst.msk [vmem:[#allocation4 + $0xb0] sm:$0xff] %vm26_vm0, %v4404_v3  ;;  %496 = vperm.xlu0 %2321, %v391_v50  }
  0x38   :  { %114 = vst.msk [vmem:[#allocation4 + $0xb8] sm:$0xff] %vm26_vm0, %v4404_v3 }
  0x39   :  { %115 = vst.msk [vmem:[#allocation4 + $0xc0] sm:$0xff] %vm26_vm0, %v4404_v3 }
  0x3a   :  { %116 = vst.msk [vmem:[#allocation4 + $0xc8] sm:$0xff] %vm26_vm0, %v4404_v3 }
  0x3b   :  { %117 = vst.msk [vmem:[#allocation4 + $0xd0] sm:$0xff] %vm26_vm0, %v4404_v3 }
  0x3c   :  { %118 = vst.msk [vmem:[#allocation4 + $0xd8] sm:$0xff] %vm26_vm0, %v4404_v3  ;;  %2213 = vmatmul.msk.f32.gmra.mxu0 %vm163_vm1, %v129_v51  ;;  %2221 = vmatmul.msk.f32.gmra.mxu1 %vm163_vm1, %v137_v52 }
  0x3d   :  { %119 = vst.msk [vmem:[#allocation4 + $0xe0] sm:$0xff] %vm26_vm0, %v4404_v3  ;;  %2229 = vmatmul.msk.f32.gmra.mxu2 %vm163_vm1, %v145_v53  ;;  %2237 = vmatmul.msk.f32.gmra.mxu3 %vm163_vm1, %v153_v54 }
  0x3e   :  { %120 = vst.msk [vmem:[#allocation4 + $0xe8] sm:$0xff] %vm26_vm0, %v4404_v3  ;;  %511 = vperm.xlu2 %2323, %v396_v55   ;;  %508 = vperm.xlu1 %2322, %v395_v56  }
  0x3f   :  { %121 = vst.msk [vmem:[#allocation4 + $0xf0] sm:$0xff] %vm26_vm0, %v4404_v3  ;;  %505 = vperm.xlu0 %2321, %v394_v57  }
  0x40   :  { %122 = vst.msk [vmem:[#allocation4 + $0xf8] sm:$0xff] %vm26_vm0, %v4404_v3 }
  0x44   :  { %2214 = vmatmul.msk.f32.gmra.mxu0 %vm163_vm1, %v130_v58  ;;  %2222 = vmatmul.msk.f32.gmra.mxu1 %vm163_vm1, %v138_v59 }
  0x45   :  { %2230 = vmatmul.msk.f32.gmra.mxu2 %vm163_vm1, %v146_v60  ;;  %2238 = vmatmul.msk.f32.gmra.mxu3 %vm163_vm1, %v154_v61 }
  0x46   :  { %520 = vperm.xlu2 %2323, %v399_v62   ;;  %517 = vperm.xlu1 %2322, %v398_v63  }
  0x47   :  { %514 = vperm.xlu0 %2321, %v397_v0  }
  0x4e   :  { %529 = vperm.xlu2 %2323, %v402_v1   ;;  %526 = vperm.xlu1 %2322, %v401_v2  }
  0x4f   :  { %523 = vperm.xlu0 %2321, %v400_v4  }
  0x56   :  { %535 = vperm.xlu1 %2322, %v404_v5  }
  0x57   :  { %532 = vperm.xlu0 %2321, %v403_v6  }
  0x5e   :  { %v3094_v7 = vpop.permute.xlu2 %454 }
  0x68   :  { %v3096_v8 = vpop.permute.xlu2 %457 }
  0x69   :  { %vm542_vm12 = vcmp.eq.s32.totalorder %v3111_v18, %v3096_v8 }
  0x70   :  { %v467_v9 = vpop.permute.xlu2 %466 }
  0x71   :  { %vm545_vm2 = vcmp.eq.s32.totalorder %v3111_v18, %v467_v9 }
  0x77   :  { %v3098_v10 = vpop.permute.xlu1 %448  ;;  %v443_v11 = vpop.permute.xlu0 %442 }
  0x78   :  { %v3100_v12 = vpop.permute.xlu2 %475  ;;  %vm537_vm3 = vcmp.eq.s32.totalorder %v3111_v18, %v443_v11 }
  0x79   :  { %vm548_vm8 = vcmp.eq.s32.totalorder %v3111_v18, %v3100_v12 }
  0x80   :  { %v3102_v13 = vpop.permute.xlu2 %484  ;;  %v3104_v14 = vpop.permute.xlu1 %451 }
  0x81   :  { %v446_v15 = vpop.permute.xlu0 %445  ;;  %vm551_vm15 = vcmp.eq.s32.totalorder %v3111_v18, %v3102_v13  ;;  %vm540_vm1 = vcmp.eq.s32.totalorder %v3111_v18, %v3104_v14 }
  0x82   :  { %vm538_vm4 = vcmp.eq.s32.totalorder %v3111_v18, %v446_v15 }
  0x88   :  { %v494_v19 = vpop.permute.xlu2 %493  ;;  %v3113_v20 = vpop.permute.xlu1 %463 }
  0x89   :  { %v3115_v21 = vpop.permute.xlu0 %460  ;;  %v277_v22 = vpop.f32.mrf.mxu0  ;;  %vm554_vm5 = vcmp.eq.s32.totalorder %v3111_v18, %v494_v19 }
  0x8a   :  { %v3119_v23 = vadd.f32 %v3109_v17, %v277_v22  ;;  %v301_v24 = vpop.f32.mrf.mxu1 }
  0x8b   :  { %v3122_v25 = vadd.f32 %v3109_v17, %v301_v24 }
  0x8c   :  { %v601_v26 = vsel %vm537_vm3, %v3119_v23, 0.0 }
  0x8d   :  { %v609_v27 = vsel %vm545_vm2, %v3122_v25, 0.0  ;;  %633 = vadd.xlane.f32.xlu2 %v601_v26  ;;  %vm539_vm2 = vcmp.eq.s32.totalorder %v3111_v18, %v3098_v10 }
  0x8e   :  { %649 = vadd.xlane.f32.xlu0 %v609_v27 }
  0x90   :  { %v325_v28 = vpop.f32.mrf.mxu2  ;;  %v349_v29 = vpop.f32.mrf.mxu3 }
  0x91   :  { %v503_v30 = vpop.permute.xlu2 %502  ;;  %v3127_v31 = vpop.permute.xlu1 %472  ;;  %v3152_v46 = vadd.f32 %v3109_v17, %v325_v28  ;;  %v3198_v15 = vadd.f32 %v3109_v17, %v349_v29 }
  0x92   :  { %v3129_v32 = vpop.permute.xlu0 %469  ;;  %v280_v33 = vpop.f32.mrf.mxu0  ;;  %vm557_vm9 = vcmp.eq.s32.totalorder %v3111_v18, %v503_v30  ;;  %vm547_vm13 = vcmp.eq.s32.totalorder %v3111_v18, %v3127_v31 }
  0x93   :  { %v3132_v34 = vadd.f32 %v3109_v17, %v280_v33  ;;  %v3134_v35 = vpop.f32.mrf.mxu1  ;;  %4499 = vst [vmem:[#allocation14_spill] sm:$0xff] %v3198_v15  ;;  %vm546_vm14 = vcmp.eq.s32.totalorder %v3111_v18, %v3129_v32 }
  0x95   :  { %v602_v36 = vsel %vm538_vm4, %v3132_v34, 0.0 }
  0x96   :  { %635 = vadd.xlane.f32.xlu0 %v602_v36  ;;  %v3217_v36 = vadd.f32 %v3109_v17, %v3134_v35 }
  0x98   :  { %v328_v37 = vpop.f32.mrf.mxu2  ;;  %v352_v38 = vpop.f32.mrf.mxu3 }
  0x99   :  { %v3139_v39 = vadd.f32 %v3109_v17, %v328_v37  ;;  %v3141_v40 = vpop.permute.xlu2 %511  ;;  %v3143_v41 = vpop.permute.xlu1 %481  ;;  %v3195_v12 = vadd.f32 %v3109_v17, %v352_v38 }
  0x9a   :  { %v3145_v42 = vpop.permute.xlu0 %478  ;;  %v3147_v43 = vpop.f32.mrf.mxu0 }
  0x9b   :  { %v307_v44 = vpop.f32.mrf.mxu1  ;;  %v618_v45 = vsel %vm554_vm5, %v3139_v39, 0.0  ;;  %4498 = vst [vmem:[#allocation13_spill] sm:$0xff] %v3195_v12  ;;  %v3238_v32 = vadd.f32 %v3109_v17, %v3147_v43 }
  0x9c   :  { %v3213_v33 = vadd.f32 %v3109_v17, %v307_v44  ;;  %v610_v44 = vsel %vm546_vm14, %v3217_v36, 0.0  ;;  %vm543_vm14 = vcmp.eq.s32.totalorder %v3111_v18, %v3115_v21 }
  0x9e   :  { %667 = vadd.xlane.f32.xlu0 %v618_v45  ;;  %v611_v8 = vsel %vm547_vm13, %v3213_v33, 0.0 }
  0xa0   :  { %v3154_v47 = vpop.f32.mrf.mxu2  ;;  %v355_v48 = vpop.f32.mrf.mxu3 }
  0xa1   :  { %v3157_v49 = vadd.f32 %v3109_v17, %v355_v48  ;;  %v521_v50 = vpop.permute.xlu2 %520  ;;  %v491_v51 = vpop.permute.xlu1 %490  ;;  %v3257_v14 = vadd.f32 %v3109_v17, %v3154_v47 }
  0xa2   :  { %vm563_vm6 = vcmp.eq.s32.totalorder %v3111_v18, %v521_v50  ;;  %v3160_v52 = vpop.permute.xlu0 %487  ;;  %v286_v53 = vpop.f32.mrf.mxu0  ;;  %vm553_vm7 = vcmp.eq.s32.totalorder %v3111_v18, %v491_v51  ;;  %v603_v51 = vsel %vm539_vm2, %v3238_v32, 0.0 }
  0xa3   :  { %4497 = vst [vmem:[#allocation12_spill] sm:$0xff] %v3157_v49  ;;  %v310_v54 = vpop.f32.mrf.mxu1  ;;  %v617_v55 = vsel %vm553_vm7, %v3152_v46, 0.0  ;;  %v627_v56 = vsel %vm563_vm6, %v3157_v49, 0.0  ;;  %v3234_v31 = vadd.f32 %v3109_v17, %v286_v53  ;;  %vm560_vm6 = vcmp.eq.s32.totalorder %v3111_v18, %v3141_v40 }
  0xa4   :  { %665 = vadd.xlane.f32.xlu2 %v617_v55  ;;  %v3168_v58 = vadd.f32 %v3109_v17, %v310_v54 }
  0xa5   :  { %v604_v50 = vsel %vm540_vm1, %v3234_v31, 0.0  ;;  %vm552_vm1 = vcmp.eq.s32.totalorder %v3111_v18, %v3160_v52 }
  0xa6   :  { %685 = vadd.xlane.f32.xlu0 %v627_v56  ;;  %v612_v63 = vsel %vm548_vm8, %v3168_v58, 0.0  ;;  %vm541_vm8 = vcmp.eq.s32.totalorder %v3111_v18, %v3094_v7 }
  0xa8   :  { %v3165_v57 = vpop.f32.mrf.mxu2  ;;  %v3186_v4 = vpop.f32.mrf.mxu3 }
  0xa9   :  { %v3170_v59 = vpop.permute.xlu1 %499  ;;  %v530_v48 = vpop.permute.xlu2 %529  ;;  %v3253_v54 = vadd.f32 %v3109_v17, %v3165_v57 }
  0xaa   :  { %v3172_v60 = vpop.permute.xlu0 %496  ;;  %v3178_v62 = vpop.f32.mrf.mxu0  ;;  %vm566_vm3 = vcmp.eq.s32.totalorder %v3111_v18, %v530_v48  ;;  %vm556_vm4 = vcmp.eq.s32.totalorder %v3111_v18, %v3170_v59  ;;  %v577_v48 = vld [vmem:[#allocation4 + $0x40] sm:$0xff] }
  0xab   :  { %v3174_v61 = vpop.f32.mrf.mxu1  ;;  %vm555_vm5 = vcmp.eq.s32.totalorder %v3111_v18, %v3172_v60  ;;  %v620_v55 = vsel %vm556_vm4, %v3253_v54, 0.0  ;;  %v3273_v59 = vadd.f32 %v3109_v17, %v3178_v62  ;;  %v3277_v60 = vadd.f32 %v3109_v17, %v3186_v4 }
  0xac   :  { %v619_v56 = vsel %vm555_vm5, %v3257_v14, 0.0  ;;  %v3290_v4 = vadd.f32 %v3109_v17, %v3174_v61 }
  0xad   :  { %4501 = vst [vmem:[#allocation16_spill] sm:$0xff] %v3277_v60  ;;  %v605_v40 = vsel %vm541_vm8, %v3273_v59, 0.0 }
  0xae   :  { %655 = vadd.xlane.f32.xlu0 %v612_v63 }
  0xb0   :  { %v337_v0 = vpop.f32.mrf.mxu2  ;;  %v361_v27 = vpop.f32.mrf.mxu3 }
  0xb1   :  { %v3182_v1 = vadd.f32 %v3109_v17, %v337_v0  ;;  %v3184_v2 = vpop.permute.xlu1 %508  ;;  %v3286_v62 = vadd.f32 %v3109_v17, %v361_v27 }
  0xb2   :  { %v3188_v5 = vpop.permute.xlu0 %505  ;;  %v292_v11 = vpop.f32.mrf.mxu0  ;;  %vm559_vm13 = vcmp.eq.s32.totalorder %v3111_v18, %v3184_v2 }
  0xb3   :  { %v3191_v6 = vpop.f32.mrf.mxu1  ;;  %v621_v9 = vsel %vm557_vm9, %v3182_v1, 0.0  ;;  %v3201_v16 = vadd.f32 %v3109_v17, %v292_v11  ;;  %4502 = vst [vmem:[#allocation17_spill] sm:$0xff] %v3286_v62 }
  0xb4   :  { %v3300_v11 = vadd.f32 %v3109_v17, %v3191_v6 }
  0xb5   :  { %v606_v29 = vsel %vm542_vm12, %v3201_v16, 0.0  ;;  %vm558_vm12 = vcmp.eq.s32.totalorder %v3111_v18, %v3188_v5 }
  0xb6   :  { %673 = vadd.xlane.f32.xlu0 %v621_v9 }
  0xb8   :  { %v3203_v22 = vpop.f32.mrf.mxu2  ;;  %v364_v45 = vpop.f32.mrf.mxu3 }
  0xb9   :  { %v518_v19 = vpop.permute.xlu1 %517  ;;  %v3241_v13 = vadd.f32 %v3109_v17, %v364_v45  ;;  %v3304_v61 = vadd.f32 %v3109_v17, %v3203_v22 }
  0xba   :  { %vm562_vm10 = vcmp.eq.s32.totalorder %v3111_v18, %v518_v19  ;;  %v515_v24 = vpop.permute.xlu0 %514  ;;  %v295_v19 = vpop.f32.mrf.mxu0 }
  0xbb   :  { %vm561_vm11 = vcmp.eq.s32.totalorder %v3111_v18, %v515_v24  ;;  %v626_v26 = vsel %vm562_vm10, %v3195_v12, 0.0  ;;  %v319_v30 = vpop.f32.mrf.mxu1  ;;  %4500 = vst [vmem:[#allocation15_spill] sm:$0xff] %v3241_v13  ;;  %v630_v43 = vsel %vm566_vm3, %v3241_v13, 0.0  ;;  %vm549_vm10 = vcmp.eq.s32.totalorder %v3111_v18, %v3145_v42 }
  0xbc   :  { %v625_v28 = vsel %vm561_vm11, %v3198_v15, 0.0  ;;  %683 = vadd.xlane.f32.xlu2 %v626_v26  ;;  %v3220_v37 = vadd.f32 %v3109_v17, %v319_v30  ;;  %v613_v9 = vsel %vm549_vm10, %v3290_v4, 0.0  ;;  %4503 = vst [vmem:[#allocation18_spill] sm:$0xff] %v3304_v61  ;;  %vm550_vm11 = vcmp.eq.s32.totalorder %v3111_v18, %v3143_v41 }
  0xbd   :  { %681 = vadd.xlane.f32.xlu1 %v625_v28  ;;  %v614_v42 = vsel %vm550_vm11, %v3300_v11, 0.0  ;;  %v3312_v24 = vadd.f32 %v3109_v17, %v295_v19  ;;  %v622_v26 = vsel %vm558_vm12, %v3304_v61, 0.0 }
  0xbe   :  { %643 = vadd.xlane.f32.xlu0 %v606_v29  ;;  %v615_v35 = vsel %vm551_vm15, %v3220_v37, 0.0  ;;  %vm544_vm15 = vcmp.eq.s32.totalorder %v3111_v18, %v3113_v20 }
  0xbf   :  { %v607_v27 = vsel %vm543_vm14, %v3312_v24, 0.0 }
  0xc0   :  { %v3229_v38 = vpop.f32.mrf.mxu2  ;;  %v367_v22 = vpop.f32.mrf.mxu3 }
  0xc1   :  { %v527_v0 = vpop.permute.xlu1 %526  ;;  %v3318_v6 = vadd.f32 %v3109_v17, %v3229_v38  ;;  %v3344_v20 = vadd.f32 %v3109_v17, %v367_v22 }
  0xc2   :  { %v524_v57 = vpop.permute.xlu0 %523  ;;  %vm565_vm9 = vcmp.eq.s32.totalorder %v3111_v18, %v527_v0  ;;  %v298_v5 = vpop.f32.mrf.mxu0 }
  0xc3   :  { %vm564_vm7 = vcmp.eq.s32.totalorder %v3111_v18, %v524_v57  ;;  %v629_v7 = vsel %vm565_vm9, %v3286_v62, 0.0  ;;  %4504 = vst [vmem:[#allocation19_spill] sm:$0xff] %v3318_v6  ;;  %v623_v41 = vsel %vm559_vm13, %v3318_v6, 0.0  ;;  %v322_v28 = vpop.f32.mrf.mxu1  ;;  %v3328_v29 = vadd.f32 %v3109_v17, %v298_v5  ;;  %v589_v5 = vld [vmem:[#allocation4 + $0xa0] sm:$0xff] }
  0xc4   :  { %653 = vadd.xlane.f32.xlu2 %v611_v8  ;;  %v628_v63 = vsel %vm564_vm7, %v3277_v60, 0.0  ;;  %v3331_v30 = vadd.f32 %v3109_v17, %v322_v28  ;;  %4506 = vst [vmem:[#allocation21_spill] sm:$0xff] %v3344_v20 }
  0xc5   :  { %651 = vadd.xlane.f32.xlu1 %v610_v44  ;;  %v608_v21 = vsel %vm544_vm15, %v3328_v29, 0.0 }
  0xc6   :  { %661 = vadd.xlane.f32.xlu0 %v615_v35  ;;  %v616_v38 = vsel %vm552_vm1, %v3331_v30, 0.0  ;;  %v569_v35 = vld [vmem:[#allocation4] sm:$0xff] }
  0xc8   :  { %v346_v53 = vpop.f32.mrf.mxu2  ;;  %v370_v8 = vpop.f32.mrf.mxu3 }
  0xc9   :  { %v3264_v10 = vadd.f32 %v3109_v17, %v346_v53  ;;  %v536_v44 = vpop.permute.xlu1 %535  ;;  %v3341_v45 = vadd.f32 %v3109_v17, %v370_v8  ;;  %v570_v17 = vld [vmem:[#allocation4 + $0x8] sm:$0xff]  ;;  %v593_v8 = vld [vmem:[#allocation4 + $0xc0] sm:$0xff] }
  0xca   :  { %v533_v2 = vpop.permute.xlu0 %532  ;;  %vm568_vm2 = vcmp.eq.s32.totalorder %v3111_v18, %v536_v44  ;;  %v574_v44 = vld [vmem:[#allocation4 + $0x28] sm:$0xff] }
  0xcb   :  { %v624_v47 = vsel %vm560_vm6, %v3264_v10, 0.0  ;;  %4505 = vst [vmem:[#allocation20_spill] sm:$0xff] %v3341_v45  ;;  %vm567_vm3 = vcmp.eq.s32.totalorder %v3111_v18, %v533_v2  ;;  %v632_v53 = vsel %vm568_vm2, %v3341_v45, 0.0  ;;  %v586_v18 = vld [vmem:[#allocation4 + $0x88] sm:$0xff]  ;;  %v2691_v2 = vmov -inf  }
  0xcc   :  { %639 = vadd.xlane.f32.xlu2 %v604_v50  ;;  %27 = vst.msk [vmem:[#allocation2] sm:$0xff] %vm26_vm0, %v2691_v2 }
  0xcd   :  { %637 = vadd.xlane.f32.xlu1 %v603_v51  ;;  %28 = vst.msk [vmem:[#allocation2 + $0x8] sm:$0xff] %vm26_vm0, %v2691_v2 }
  0xce   :  { %691 = vadd.xlane.f32.xlu0 %v630_v43  ;;  %29 = vst.msk [vmem:[#allocation2 + $0x10] sm:$0xff] %vm26_vm0, %v2691_v2 }
  0xcf   :  { %30 = vst.msk [vmem:[#allocation2 + $0x18] sm:$0xff] %vm26_vm0, %v2691_v2 }
  0xd0   :  { %31 = vst.msk [vmem:[#allocation2 + $0x20] sm:$0xff] %vm26_vm0, %v2691_v2 }
  0xd1   :  { %32 = vst.msk [vmem:[#allocation2 + $0x28] sm:$0xff] %vm26_vm0, %v2691_v2 }
  0xd2   :  { %33 = vst.msk [vmem:[#allocation2 + $0x30] sm:$0xff] %vm26_vm0, %v2691_v2 }
  0xd3   :  { %34 = vst.msk [vmem:[#allocation2 + $0x38] sm:$0xff] %vm26_vm0, %v2691_v2 }
  0xd4   :  { %671 = vadd.xlane.f32.xlu2 %v620_v55  ;;  %v631_v55 = vsel %vm567_vm3, %v3344_v20, 0.0  ;;  %35 = vst.msk [vmem:[#allocation2 + $0x40] sm:$0xff] %vm26_vm0, %v2691_v2 }
  0xd5   :  { %669 = vadd.xlane.f32.xlu1 %v619_v56  ;;  %36 = vst.msk [vmem:[#allocation2 + $0x48] sm:$0xff] %vm26_vm0, %v2691_v2 }
  0xd6   :  { %679 = vadd.xlane.f32.xlu0 %v624_v47  ;;  %37 = vst.msk [vmem:[#allocation2 + $0x50] sm:$0xff] %vm26_vm0, %v2691_v2 }
  0xd7   :  { %38 = vst.msk [vmem:[#allocation2 + $0x58] sm:$0xff] %vm26_vm0, %v2691_v2 }
  0xd8   :  { %39 = vst.msk [vmem:[#allocation2 + $0x60] sm:$0xff] %vm26_vm0, %v2691_v2 }
  0xd9   :  { %40 = vst.msk [vmem:[#allocation2 + $0x68] sm:$0xff] %vm26_vm0, %v2691_v2 }
  0xda   :  { %41 = vst.msk [vmem:[#allocation2 + $0x70] sm:$0xff] %vm26_vm0, %v2691_v2 }
  0xdb   :  { %42 = vst.msk [vmem:[#allocation2 + $0x78] sm:$0xff] %vm26_vm0, %v2691_v2 }
  0xdc   :  { %641 = vadd.xlane.f32.xlu2 %v605_v40  ;;  %43 = vst.msk [vmem:[#allocation2 + $0x80] sm:$0xff] %vm26_vm0, %v2691_v2 }
  0xdd   :  { %687 = vadd.xlane.f32.xlu1 %v628_v63  ;;  %v585_v63 = vld [vmem:[#allocation4 + $0x80] sm:$0xff]  ;;  %44 = vst.msk [vmem:[#allocation2 + $0x88] sm:$0xff] %vm26_vm0, %v2691_v2 }
  0xde   :  { %762 = vmax.xlane.f32.xlu0 %v3119_v23  ;;  %45 = vst.msk [vmem:[#allocation2 + $0x90] sm:$0xff] %vm26_vm0, %v2691_v2 }
  0xdf   :  { %46 = vst.msk [vmem:[#allocation2 + $0x98] sm:$0xff] %vm26_vm0, %v2691_v2 }
  0xe0   :  { %47 = vst.msk [vmem:[#allocation2 + $0xa0] sm:$0xff] %vm26_vm0, %v2691_v2 }
  0xe1   :  { %48 = vst.msk [vmem:[#allocation2 + $0xa8] sm:$0xff] %vm26_vm0, %v2691_v2 }
  0xe2   :  { %49 = vst.msk [vmem:[#allocation2 + $0xb0] sm:$0xff] %vm26_vm0, %v2691_v2 }
  0xe3   :  { %50 = vst.msk [vmem:[#allocation2 + $0xb8] sm:$0xff] %vm26_vm0, %v2691_v2 }
  0xe4   :  { %689 = vadd.xlane.f32.xlu2 %v629_v7  ;;  %v595_v7 = vld [vmem:[#allocation4 + $0xd0] sm:$0xff]  ;;  %51 = vst.msk [vmem:[#allocation2 + $0xc0] sm:$0xff] %vm26_vm0, %v2691_v2 }
  0xe5   :  { %657 = vadd.xlane.f32.xlu1 %v613_v9  ;;  %52 = vst.msk [vmem:[#allocation2 + $0xc8] sm:$0xff] %vm26_vm0, %v2691_v2 }
  0xe6   :  { %768 = vmax.xlane.f32.xlu0 %v3234_v31  ;;  %53 = vst.msk [vmem:[#allocation2 + $0xd0] sm:$0xff] %vm26_vm0, %v2691_v2 }
  0xe7   :  { %54 = vst.msk [vmem:[#allocation2 + $0xd8] sm:$0xff] %vm26_vm0, %v2691_v2 }
  0xe8   :  { %55 = vst.msk [vmem:[#allocation2 + $0xe0] sm:$0xff] %vm26_vm0, %v2691_v2 }
  0xe9   :  { %56 = vst.msk [vmem:[#allocation2 + $0xe8] sm:$0xff] %vm26_vm0, %v2691_v2 }
  0xea   :  { %57 = vst.msk [vmem:[#allocation2 + $0xf0] sm:$0xff] %vm26_vm0, %v2691_v2 }
  0xeb   :  { %58 = vst.msk [vmem:[#allocation2 + $0xf8] sm:$0xff] %vm26_vm0, %v2691_v2 }
  0xec   :  { %659 = vadd.xlane.f32.xlu2 %v614_v42 }
  0xed   :  { %675 = vadd.xlane.f32.xlu1 %v622_v26  ;;  %v580_v26 = vld [vmem:[#allocation4 + $0x58] sm:$0xff] }
  0xee   :  { %774 = vmax.xlane.f32.xlu0 %v3312_v24 }
  0xf4   :  { %677 = vadd.xlane.f32.xlu2 %v623_v41 }
  0xf5   :  { %645 = vadd.xlane.f32.xlu1 %v607_v27 }
  0xf6   :  { %780 = vmax.xlane.f32.xlu0 %v3217_v36 }
  0xfc   :  { %647 = vadd.xlane.f32.xlu2 %v608_v21  ;;  %v594_v21 = vld [vmem:[#allocation4 + $0xc8] sm:$0xff] }
  0xfd   :  { %663 = vadd.xlane.f32.xlu1 %v616_v38 }
  0xfe   :  { %786 = vmax.xlane.f32.xlu0 %v3290_v4 }
 0x100   :  { %v634_v52 = vpop.xlane.xlu2 %633 }
 0x101   :  { %v650_v50 = vpop.xlane.xlu0 %649  ;;  %v697_v51 = vadd.f32 %v634_v52, %v569_v35 }
 0x102   :  { %v705_v43 = vadd.f32 %v650_v50, %v577_v48 }
 0x103   :  { %730 = vst.msk [vmem:[#allocation4] sm:$0xff] %vm26_vm0, %v697_v51 }
 0x104   :  { %738 = vst.msk [vmem:[#allocation4 + $0x40] sm:$0xff] %vm26_vm0, %v705_v43  ;;  %695 = vadd.xlane.f32.xlu2 %v632_v53  ;;  %v579_v43 = vld [vmem:[#allocation4 + $0x50] sm:$0xff]  ;;  %v578_v53 = vld [vmem:[#allocation4 + $0x48] sm:$0xff] }
 0x105   :  { %693 = vadd.xlane.f32.xlu1 %v631_v55 }
 0x106   :  { %792 = vmax.xlane.f32.xlu0 %v3331_v30 }
 0x109   :  { %v636_v56 = vpop.xlane.xlu0 %635 }
 0x10a   :  { %v698_v47 = vadd.f32 %v636_v56, %v570_v17  ;;  %v583_v17 = vld [vmem:[#allocation4 + $0x70] sm:$0xff] }
 0x10c   :  { %731 = vst.msk [vmem:[#allocation4 + $0x8] sm:$0xff] %vm26_vm0, %v698_v47  ;;  %766 = vmax.xlane.f32.xlu2 %v3238_v32 }
 0x10d   :  { %764 = vmax.xlane.f32.xlu1 %v3132_v34 }
 0x10e   :  { %798 = vmax.xlane.f32.xlu0 %v3257_v14 }
 0x111   :  { %v668_v57 = vpop.xlane.xlu0 %667 }
 0x112   :  { %v714_v40 = vadd.f32 %v668_v57, %v586_v18 }
 0x114   :  { %747 = vst.msk [vmem:[#allocation4 + $0x88] sm:$0xff] %vm26_vm0, %v714_v40  ;;  %772 = vmax.xlane.f32.xlu2 %v3201_v16 }
 0x115   :  { %770 = vmax.xlane.f32.xlu1 %v3273_v59 }
 0x116   :  { %804 = vmax.xlane.f32.xlu0 %v3304_v61 }
 0x117   :  { %v666_v0 = vpop.xlane.xlu2 %665 }
 0x118   :  { %v713_v9 = vadd.f32 %v666_v0, %v585_v63  ;;  %v572_v63 = vld [vmem:[#allocation4 + $0x18] sm:$0xff]  ;;  %v571_v0 = vld [vmem:[#allocation4 + $0x10] sm:$0xff] }
 0x119   :  { %v686_v19 = vpop.xlane.xlu0 %685 }
 0x11a   :  { %746 = vst.msk [vmem:[#allocation4 + $0x80] sm:$0xff] %vm26_vm0, %v713_v9  ;;  %v723_v42 = vadd.f32 %v686_v19, %v595_v7  ;;  %v598_v9 = vld [vmem:[#allocation4 + $0xe8] sm:$0xff] }
 0x11c   :  { %756 = vst.msk [vmem:[#allocation4 + $0xd0] sm:$0xff] %vm26_vm0, %v723_v42  ;;  %778 = vmax.xlane.f32.xlu2 %v3122_v25 }
 0x11d   :  { %776 = vmax.xlane.f32.xlu1 %v3328_v29 }
 0x11e   :  { %810 = vmax.xlane.f32.xlu0 %v3198_v15 }
 0x121   :  { %v656_v22 = vpop.xlane.xlu0 %655 }
 0x122   :  { %v708_v41 = vadd.f32 %v656_v22, %v580_v26 }
 0x124   :  { %741 = vst.msk [vmem:[#allocation4 + $0x58] sm:$0xff] %vm26_vm0, %v708_v41  ;;  %784 = vmax.xlane.f32.xlu2 %v3168_v58 }
 0x125   :  { %782 = vmax.xlane.f32.xlu1 %v3213_v33 }
 0x126   :  { %816 = vmax.xlane.f32.xlu0 %v3277_v60 }
 0x129   :  { %v674_v27 = vpop.xlane.xlu0 %673 }
 0x12a   :  { %v717_v28 = vadd.f32 %v674_v27, %v589_v5  ;;  %v588_v5 = vld [vmem:[#allocation4 + $0x98] sm:$0xff]  ;;  %v587_v27 = vld [vmem:[#allocation4 + $0x90] sm:$0xff] }
 0x12c   :  { %750 = vst.msk [vmem:[#allocation4 + $0xa0] sm:$0xff] %vm26_vm0, %v717_v28  ;;  %790 = vmax.xlane.f32.xlu2 %v3220_v37 }
 0x12d   :  { %788 = vmax.xlane.f32.xlu1 %v3300_v11 }
 0x12e   :  { %822 = vmax.xlane.f32.xlu0 %v3344_v20 }
 0x12f   :  { %v684_v38 = vpop.xlane.xlu2 %683 }
 0x130   :  { %v682_v35 = vpop.xlane.xlu1 %681  ;;  %v722_v48 = vadd.f32 %v684_v38, %v594_v21  ;;  %v592_v21 = vld [vmem:[#allocation4 + $0xb8] sm:$0xff] }
 0x131   :  { %v721_v52 = vadd.f32 %v682_v35, %v593_v8  ;;  %v644_v50 = vpop.xlane.xlu0 %643 }
 0x132   :  { %755 = vst.msk [vmem:[#allocation4 + $0xc8] sm:$0xff] %vm26_vm0, %v722_v48  ;;  %v702_v51 = vadd.f32 %v644_v50, %v574_v44  ;;  %v596_v50 = vld [vmem:[#allocation4 + $0xd8] sm:$0xff] }
 0x133   :  { %754 = vst.msk [vmem:[#allocation4 + $0xc0] sm:$0xff] %vm26_vm0, %v721_v52  ;;  %v573_v52 = vld [vmem:[#allocation4 + $0x20] sm:$0xff] }
 0x134   :  { %735 = vst.msk [vmem:[#allocation4 + $0x28] sm:$0xff] %vm26_vm0, %v702_v51  ;;  %796 = vmax.xlane.f32.xlu2 %v3139_v39 }
 0x135   :  { %794 = vmax.xlane.f32.xlu1 %v3152_v46 }
 0x137   :  { %v654_v55 = vpop.xlane.xlu2 %653 }
 0x138   :  { %v652_v56 = vpop.xlane.xlu1 %651  ;;  %v707_v47 = vadd.f32 %v654_v55, %v579_v43  ;;  %v3440_v43 = vld [vmem:[#allocation2] sm:$0xff] }
 0x139   :  { %v706_v18 = vadd.f32 %v652_v56, %v578_v53  ;;  %v662_v57 = vpop.xlane.xlu0 %661 }
 0x13a   :  { %740 = vst.msk [vmem:[#allocation4 + $0x50] sm:$0xff] %vm26_vm0, %v707_v47  ;;  %v711_v40 = vadd.f32 %v662_v57, %v583_v17  ;;  %v597_v57 = vld [vmem:[#allocation4 + $0xe0] sm:$0xff] }
 0x13b   :  { %739 = vst.msk [vmem:[#allocation4 + $0x48] sm:$0xff] %vm26_vm0, %v706_v18  ;;  %v1730_v60 = vld [vmem:[#allocation4 + $0x28] sm:$0xff] }
 0x13c   :  { %744 = vst.msk [vmem:[#allocation4 + $0x70] sm:$0xff] %vm26_vm0, %v711_v40  ;;  %802 = vmax.xlane.f32.xlu2 %v3182_v1  ;;  %v581_v40 = vld [vmem:[#allocation4 + $0x60] sm:$0xff] }
 0x13d   :  { %800 = vmax.xlane.f32.xlu1 %v3253_v54 }
 0x13f   :  { %v640_v7 = vpop.xlane.xlu2 %639 }
 0x140   :  { %v638_v19 = vpop.xlane.xlu1 %637  ;;  %v700_v42 = vadd.f32 %v640_v7, %v572_v63 }
 0x141   :  { %v699_v26 = vadd.f32 %v638_v19, %v571_v0  ;;  %v692_v22 = vpop.xlane.xlu0 %691  ;;  %v3465_v0 = vld [vmem:[#allocation2 + $0x18] sm:$0xff] }
 0x142   :  { %733 = vst.msk [vmem:[#allocation4 + $0x18] sm:$0xff] %vm26_vm0, %v700_v42  ;;  %v726_v41 = vadd.f32 %v692_v22, %v598_v9 }
 0x143   :  { %732 = vst.msk [vmem:[#allocation4 + $0x10] sm:$0xff] %vm26_vm0, %v699_v26 }
 0x144   :  { %759 = vst.msk [vmem:[#allocation4 + $0xe8] sm:$0xff] %vm26_vm0, %v726_v41  ;;  %808 = vmax.xlane.f32.xlu2 %v3264_v10  ;;  %v582_v41 = vld [vmem:[#allocation4 + $0x68] sm:$0xff] }
 0x145   :  { %806 = vmax.xlane.f32.xlu1 %v3318_v6  ;;  %v3622_v6 = vld [vmem:[#allocation2 + $0x38] sm:$0xff] }
 0x146   :  { %4522 = vst [vmem:[#allocation37_spill] sm:$0xff] %v3622_v6 }
 0x147   :  { %v672_v28 = vpop.xlane.xlu2 %671 }
 0x148   :  { %v670_v8 = vpop.xlane.xlu1 %669  ;;  %v716_v38 = vadd.f32 %v672_v28, %v588_v5  ;;  %v590_v5 = vld [vmem:[#allocation4 + $0xa8] sm:$0xff]  ;;  %v3483_v28 = vld [vmem:[#allocation2 + $0x30] sm:$0xff] }
 0x149   :  { %v715_v44 = vadd.f32 %v670_v8, %v587_v27  ;;  %v680_v35 = vpop.xlane.xlu0 %679  ;;  %4507 = vst [vmem:[#allocation22_spill] sm:$0xff] %v3483_v28  ;;  %v1728_v22 = vld [vmem:[#allocation4 + $0x18] sm:$0xff] }
 0x14a   :  { %749 = vst.msk [vmem:[#allocation4 + $0x98] sm:$0xff] %vm26_vm0, %v716_v38  ;;  %v720_v48 = vadd.f32 %v680_v35, %v592_v21  ;;  %v3570_v35 = vld [vmem:[#allocation2 + $0xa8] sm:$0xff]  ;;  %v1727_v18 = vld [vmem:[#allocation4 + $0x10] sm:$0xff] }
 0x14b   :  { %748 = vst.msk [vmem:[#allocation4 + $0x90] sm:$0xff] %vm26_vm0, %v715_v44 }
 0x14c   :  { %753 = vst.msk [vmem:[#allocation4 + $0xb8] sm:$0xff] %vm26_vm0, %v720_v48  ;;  %814 = vmax.xlane.f32.xlu2 %v3157_v49  ;;  %v591_v48 = vld [vmem:[#allocation4 + $0xb0] sm:$0xff] }
 0x14d   :  { %812 = vmax.xlane.f32.xlu1 %v3195_v12  ;;  %4516 = vst [vmem:[#allocation31_spill] sm:$0xff] %v3570_v35 }
 0x14f   :  { %v642_v51 = vpop.xlane.xlu2 %641 }
 0x150   :  { %v688_v53 = vpop.xlane.xlu1 %687  ;;  %v701_v55 = vadd.f32 %v642_v51, %v573_v52  ;;  %v575_v52 = vld [vmem:[#allocation4 + $0x30] sm:$0xff]  ;;  %v3494_v51 = vld [vmem:[#allocation2 + $0x48] sm:$0xff] }
 0x151   :  { %v724_v17 = vadd.f32 %v688_v53, %v596_v50  ;;  %v763_v56 = vpop.xlane.xlu0 %762  ;;  %4509 = vst [vmem:[#allocation24_spill] sm:$0xff] %v3494_v51 }
 0x152   :  { %734 = vst.msk [vmem:[#allocation4 + $0x20] sm:$0xff] %vm26_vm0, %v701_v55  ;;  %v3450_v47 = vmax.f32 %v3440_v43, %v763_v56 }
 0x153   :  { %757 = vst.msk [vmem:[#allocation4 + $0xd8] sm:$0xff] %vm26_vm0, %v724_v17 }
 0x154   :  { %1434 = vst.msk [vmem:[#allocation2] sm:$0xff] %vm26_vm0, %v3450_v47  ;;  %820 = vmax.xlane.f32.xlu2 %v3241_v13  ;;  %v1726_v13 = vld [vmem:[#allocation4 + $0x8] sm:$0xff] }
 0x155   :  { %818 = vmax.xlane.f32.xlu1 %v3286_v62 }
 0x157   :  { %v690_v63 = vpop.xlane.xlu2 %689 }
 0x158   :  { %v658_v7 = vpop.xlane.xlu1 %657  ;;  %v725_v9 = vadd.f32 %v690_v63, %v597_v57  ;;  %v576_v63 = vld [vmem:[#allocation4 + $0x38] sm:$0xff] }
 0x159   :  { %v709_v19 = vadd.f32 %v658_v7, %v581_v40  ;;  %v769_v42 = vpop.xlane.xlu0 %768  ;;  %v584_v7 = vld [vmem:[#allocation4 + $0x78] sm:$0xff] }
 0x15a   :  { %v3474_v26 = vmax.f32 %v3465_v0, %v769_v42  ;;  %758 = vst.msk [vmem:[#allocation4 + $0xe0] sm:$0xff] %vm26_vm0, %v725_v9 }
 0x15b   :  { %742 = vst.msk [vmem:[#allocation4 + $0x60] sm:$0xff] %vm26_vm0, %v709_v19  ;;  %v3506_v19 = vld [vmem:[#allocation2 + $0x60] sm:$0xff] }
 0x15c   :  { %1437 = vst.msk [vmem:[#allocation2 + $0x18] sm:$0xff] %vm26_vm0, %v3474_v26 }
 0x15d   :  { %824 = vmax.xlane.f32.xlu1 %v3341_v45  ;;  %4511 = vst [vmem:[#allocation26_spill] sm:$0xff] %v3506_v19 }
 0x15f   :  { %v660_v27 = vpop.xlane.xlu2 %659 }
 0x160   :  { %v676_v2 = vpop.xlane.xlu1 %675  ;;  %v710_v21 = vadd.f32 %v660_v27, %v582_v41 }
 0x161   :  { %v718_v8 = vadd.f32 %v676_v2, %v590_v5  ;;  %v775_v38 = vpop.xlane.xlu0 %774 }
 0x162   :  { %743 = vst.msk [vmem:[#allocation4 + $0x68] sm:$0xff] %vm26_vm0, %v710_v21  ;;  %v3487_v44 = vmax.f32 %v3483_v28, %v775_v38  ;;  %v599_v38 = vld [vmem:[#allocation4 + $0xf0] sm:$0xff]  ;;  %v2519_v21 = vld [vmem:[%s4377_s3 + $0x8] sm:$0xff] }
 0x163   :  { %751 = vst.msk [vmem:[#allocation4 + $0xa8] sm:$0xff] %vm26_vm0, %v718_v8  ;;  %v600_v8 = vld [vmem:[#allocation4 + $0xf8] sm:$0xff]  ;;  %vm1470_vm7 = vcmp.gt.s32.totalorder %v2519_v21, 0 }
 0x164   :  { %4508 = vst [vmem:[#allocation23_spill] sm:$0xff] %v3487_v44  ;;  %v3583_v45 = vsel %vm1470_vm7, 1.0, %v4404_v3 }
 0x165   :  { %1440 = vst.msk [vmem:[#allocation2 + $0x30] sm:$0xff] %vm26_vm0, %v3487_v44 }
 0x166   :  { %4519 = vst [vmem:[#allocation34_spill] sm:$0xff] %v3583_v45 }
 0x167   :  { %v678_v50 = vpop.xlane.xlu2 %677 }
 0x168   :  { %v646_v53 = vpop.xlane.xlu1 %645  ;;  %v719_v55 = vadd.f32 %v678_v50, %v591_v48 }
 0x169   :  { %v703_v17 = vadd.f32 %v646_v53, %v575_v52  ;;  %v781_v56 = vpop.xlane.xlu0 %780  ;;  %v3517_v52 = vld [vmem:[#allocation2 + $0x78] sm:$0xff] }
 0x16a   :  { %752 = vst.msk [vmem:[#allocation4 + $0xb0] sm:$0xff] %vm26_vm0, %v719_v55  ;;  %v3498_v57 = vmax.f32 %v3494_v51, %v781_v56 }
 0x16b   :  { %736 = vst.msk [vmem:[#allocation4 + $0x30] sm:$0xff] %vm26_vm0, %v703_v17 }
 0x16c   :  { %4510 = vst [vmem:[#allocation25_spill] sm:$0xff] %v3498_v57  ;;  %1052 = vperm.xlu2 %2323, %v3450_v47   ;;  %v1571_v20 = vld [vmem:[#allocation2 + $0x30] sm:$0xff] }
 0x16d   :  { %1443 = vst.msk [vmem:[#allocation2 + $0x48] sm:$0xff] %vm26_vm0, %v3498_v57 }
 0x16e   :  { %4512 = vst [vmem:[#allocation27_spill] sm:$0xff] %v3517_v52 }
 0x16f   :  { %v648_v9 = vpop.xlane.xlu2 %647 }
 0x170   :  { %v664_v42 = vpop.xlane.xlu1 %663  ;;  %v704_v41 = vadd.f32 %v648_v9, %v576_v63  ;;  %v3526_v63 = vld [vmem:[#allocation2 + $0x10] sm:$0xff] }
 0x171   :  { %v712_v5 = vadd.f32 %v664_v42, %v584_v7  ;;  %v787_v27 = vpop.xlane.xlu0 %786  ;;  %v3528_v7 = vld [vmem:[#allocation2 + $0x8] sm:$0xff]  ;;  %v3530_v42 = vld [vmem:[#allocation2 + $0x90] sm:$0xff] }
 0x172   :  { %737 = vst.msk [vmem:[#allocation4 + $0x38] sm:$0xff] %vm26_vm0, %v704_v41  ;;  %v3510_v2 = vmax.f32 %v3506_v19, %v787_v27  ;;  %v1565_v41 = vld [vmem:[#allocation2] sm:$0xff] }
 0x173   :  { %745 = vst.msk [vmem:[#allocation4 + $0x78] sm:$0xff] %vm26_vm0, %v712_v5 }
 0x174   :  { %1446 = vst.msk [vmem:[#allocation2 + $0x60] sm:$0xff] %vm26_vm0, %v3510_v2 }
 0x175   :  { %4513 = vst [vmem:[#allocation28_spill] sm:$0xff] %v3530_v42 }
 0x177   :  { %v696_v48 = vpop.xlane.xlu2 %695 }
 0x178   :  { %v694_v50 = vpop.xlane.xlu1 %693  ;;  %v728_v53 = vadd.f32 %v696_v48, %v600_v8  ;;  %v1725_v48 = vld [vmem:[#allocation4] sm:$0xff] }
 0x179   :  { %v727_v55 = vadd.f32 %v694_v50, %v599_v38  ;;  %v793_v17 = vpop.xlane.xlu0 %792  ;;  %vm1789_vm5 = vcmp.ge.f32.partialorder %v1725_v48, %v1565_v41  ;;  %v1568_v48 = vld [vmem:[#allocation2 + $0x18] sm:$0xff] }
 0x17a   :  { %761 = vst.msk [vmem:[#allocation4 + $0xf8] sm:$0xff] %vm26_vm0, %v728_v53  ;;  %v3521_v56 = vmax.f32 %v3517_v52, %v793_v17  ;;  %vm1792_vm8 = vcmp.ge.f32.partialorder %v1728_v22, %v1568_v48 }
 0x17b   :  { %760 = vst.msk [vmem:[#allocation4 + $0xf0] sm:$0xff] %vm26_vm0, %v727_v55  ;;  %v2517_v55 = vld [vmem:[%s4377_s3] sm:$0xff]  ;;  %v2274_v12 = vsel %vm1792_vm8, 1.0, %v4404_v3 }
 0x17c   :  { %1449 = vst.msk [vmem:[#allocation2 + $0x78] sm:$0xff] %vm26_vm0, %v3521_v56  ;;  %vm1469_vm4 = vcmp.gt.s32.totalorder %v2517_v55, 0  ;;  %v3565_v55 = vld [vmem:[#allocation2 + $0x20] sm:$0xff] }
 0x17d   :  { %v3562_v41 = vsel %vm1469_vm4, 1.0, %v4404_v3 }
 0x17e   :  { %4515 = vst [vmem:[#allocation30_spill] sm:$0xff] %v3562_v41 }
 0x17f   :  { %v767_v9 = vpop.xlane.xlu2 %766 }
 0x180   :  { %v765_v5 = vpop.xlane.xlu1 %764  ;;  %v3533_v27 = vmax.f32 %v3526_v63, %v767_v9  ;;  %v3556_v9 = vld [vmem:[#allocation2 + $0x28] sm:$0xff] }
 0x181   :  { %v3536_v8 = vmax.f32 %v3528_v7, %v765_v5  ;;  %v799_v38 = vpop.xlane.xlu0 %798  ;;  %4514 = vst [vmem:[#allocation29_spill] sm:$0xff] %v3556_v9  ;;  %v2518_v5 = vld [vmem:[%s4377_s3 + $0x10] sm:$0xff] }
 0x182   :  { %1436 = vst.msk [vmem:[#allocation2 + $0x10] sm:$0xff] %vm26_vm0, %v3533_v27  ;;  %v3543_v53 = vmax.f32 %v3530_v42, %v799_v38  ;;  %1062 = vperm.xlu1 %2322, %v3533_v27   ;;  %vm1471_vm6 = vcmp.gt.s32.totalorder %v2518_v5, 0  ;;  %v2271_v38 = vsel %vm1789_vm5, 1.0, %v4404_v3 }
 0x183   :  { %1435 = vst.msk [vmem:[#allocation2 + $0x8] sm:$0xff] %vm26_vm0, %v3536_v8  ;;  %1057 = vperm.xlu0 %2321, %v3536_v8   ;;  %v3576_v50 = vsel %vm1471_vm6, 1.0, %v4404_v3  ;;  %v1988_v42 = vmul.f32 %v2271_v38, %v3562_v41 }
 0x184   :  { %1452 = vst.msk [vmem:[#allocation2 + $0x90] sm:$0xff] %vm26_vm0, %v3543_v53 }
 0x185   :  { %4518 = vst [vmem:[#allocation33_spill] sm:$0xff] %v3576_v50  ;;  %v2020_v51 = vsel %vm26_vm0, %v1988_v42, 0.0 }
 0x187   :  { %v773_v40 = vpop.xlane.xlu2 %772 }
 0x188   :  { %v771_v17 = vpop.xlane.xlu1 %770  ;;  %v3573_v5 = vmax.f32 %v3556_v9, %v773_v40  ;;  %v1729_v9 = vld [vmem:[#allocation4 + $0x20] sm:$0xff] }
 0x189   :  { %v1567_v52 = vld [vmem:[#allocation2 + $0x10] sm:$0xff]  ;;  %v3580_v19 = vmax.f32 %v3565_v55, %v771_v17  ;;  %v805_v21 = vpop.xlane.xlu0 %804  ;;  %v2520_v17 = vld [vmem:[%s4377_s3 + $0x18] sm:$0xff] }
 0x18a   :  { %4517 = vst [vmem:[#allocation32_spill] sm:$0xff] %v3573_v5  ;;  %v1566_v62 = vld [vmem:[#allocation2 + $0x8] sm:$0xff]  ;;  %vm1791_vm9 = vcmp.ge.f32.partialorder %v1727_v18, %v1567_v52  ;;  %v3590_v38 = vmax.f32 %v3570_v35, %v805_v21  ;;  %1077 = vperm.xlu1 %2322, %v3573_v5   ;;  %vm1472_vm10 = vcmp.gt.s32.totalorder %v2520_v17, 0  ;;  %v3614_v18 = vld [vmem:[#allocation2 + $0x40] sm:$0xff] }
 0x18b   :  { %1439 = vst.msk [vmem:[#allocation2 + $0x28] sm:$0xff] %vm26_vm0, %v3573_v5  ;;  %vm1790_vm11 = vcmp.ge.f32.partialorder %v1726_v13, %v1566_v62  ;;  %v2273_v41 = vsel %vm1791_vm9, 1.0, %v4404_v3  ;;  %1067 = vperm.xlu0 %2321, %v3474_v26   ;;  %1072 = vperm.xlu2 %2323, %v3580_v19   ;;  %v2521_v13 = vld [vmem:[%s4377_s3 + $0x20] sm:$0xff]  ;;  %v2522_v62 = vld [vmem:[%s4377_s3 + $0x28] sm:$0xff]  ;;  %v3618_v35 = vsel %vm1472_vm10, 1.0, %v4404_v3 }
 0x18c   :  { %1438 = vst.msk [vmem:[#allocation2 + $0x20] sm:$0xff] %vm26_vm0, %v3580_v19  ;;  %v2272_v52 = vsel %vm1790_vm11, 1.0, %v4404_v3  ;;  %vm1473_vm12 = vcmp.gt.s32.totalorder %v2521_v13, 0  ;;  %vm1474_vm13 = vcmp.gt.s32.totalorder %v2522_v62, 0  ;;  %v1990_v40 = vmul.f32 %v2273_v41, %v3576_v50  ;;  %v1731_v13 = vld [vmem:[#allocation4 + $0x30] sm:$0xff] }
 0x18d   :  { %1455 = vst.msk [vmem:[#allocation2 + $0xa8] sm:$0xff] %vm26_vm0, %v3590_v38  ;;  %v1989_v21 = vmul.f32 %v2272_v52, %v3583_v45  ;;  %v3626_v45 = vld [vmem:[#allocation2 + $0xc0] sm:$0xff]  ;;  %v3629_v41 = vsel %vm1473_vm12, 1.0, %v4404_v3  ;;  %v3632_v17 = vsel %vm1474_vm13, 1.0, %v4404_v3  ;;  %v1991_v28 = vmul.f32 %v2274_v12, %v3618_v35 }
 0x18e   :  { %4520 = vst [vmem:[#allocation35_spill] sm:$0xff] %v3614_v18  ;;  %vm1795_vm14 = vcmp.ge.f32.partialorder %v1731_v13, %v1571_v20  ;;  %v2023_v42 = vsel %vm26_vm0, %v1990_v40, 0.0  ;;  %v2523_v40 = vld [vmem:[%s4377_s3 + $0x30] sm:$0xff] }
 0x18f   :  { %4521 = vst [vmem:[#allocation36_spill] sm:$0xff] %v3618_v35  ;;  %v2021_v62 = vsel %vm26_vm0, %v1989_v21, 0.0  ;;  %v779_v52 = vpop.xlane.xlu2 %778  ;;  %vm1475_vm1 = vcmp.gt.s32.totalorder %v2523_v40, 0  ;;  %v1732_v35 = vld [vmem:[#allocation4 + $0x38] sm:$0xff] }
 0x190   :  { %4523 = vst [vmem:[#allocation38_spill] sm:$0xff] %v3626_v45  ;;  %v2022_v50 = vadd.f32 %v2021_v62, %v2020_v51  ;;  %v777_v22 = vpop.xlane.xlu1 %776  ;;  %v3635_v48 = vmax.f32 %v3614_v18, %v779_v52  ;;  %v4528_v62 = vmov 0.0  }
 0x191   :  { %4524 = vst [vmem:[#allocation39_spill] sm:$0xff] %v3629_v41  ;;  %v3640_v15 = vmax.f32 %v3622_v6, %v777_v22  ;;  %v811_v5 = vpop.xlane.xlu0 %810  ;;  %v2277_v51 = vsel %vm1795_vm14, 1.0, %v4528_v62  ;;  %v3680_v6 = vld [vmem:[#allocation2 + $0x50] sm:$0xff] }
 0x192   :  { %4525 = vst [vmem:[#allocation40_spill] sm:$0xff] %v3632_v17  ;;  %v1570_v21 = vld [vmem:[#allocation2 + $0x28] sm:$0xff]  ;;  %v2024_v49 = vadd.f32 %v2023_v42, %v2022_v50  ;;  %v3647_v12 = vmax.f32 %v3626_v45, %v811_v5  ;;  %1092 = vperm.xlu1 %2322, %v3635_v48   ;;  %v2524_v50 = vld [vmem:[%s4377_s3 + $0x40] sm:$0xff] }
 0x193   :  { %4526 = vst [vmem:[#allocation41_spill] sm:$0xff] %v3635_v48  ;;  %v1569_v3 = vld [vmem:[#allocation2 + $0x20] sm:$0xff]  ;;  %vm1794_vm15 = vcmp.ge.f32.partialorder %v1730_v60, %v1570_v21  ;;  %1082 = vperm.xlu0 %2321, %v3487_v44   ;;  %vm1477_vm3 = vcmp.gt.s32.totalorder %v2524_v50, 0  ;;  %1087 = vperm.xlu2 %2323, %v3640_v15   ;;  %v3672_v21 = vld [vmem:[#allocation2 + $0x58] sm:$0xff]  ;;  %v3676_v60 = vsel %vm1475_vm1, 1.0, %v4528_v62  ;;  %v1574_v45 = vld [vmem:[#allocation2 + $0x48] sm:$0xff] }
 0x194   :  { %4527 = vst [vmem:[#allocation42_spill] sm:$0xff] %v3640_v15  ;;  %vm1793_vm2 = vcmp.ge.f32.partialorder %v1729_v9, %v1569_v3  ;;  %v2276_v52 = vsel %vm1794_vm15, 1.0, %v4528_v62  ;;  %v2525_v3 = vld [vmem:[%s4377_s3 + $0x38] sm:$0xff]  ;;  %v2025_v9 = vsel %vm26_vm0, %v1991_v28, 0.0 }
 0x195   :  { %1442 = vst.msk [vmem:[#allocation2 + $0x40] sm:$0xff] %vm26_vm0, %v3635_v48  ;;  %v2275_v5 = vsel %vm1793_vm2, 1.0, %v4528_v62  ;;  %vm1476_vm4 = vcmp.gt.s32.totalorder %v2525_v3, 0  ;;  %v1993_v42 = vmul.f32 %v2276_v52, %v3632_v17  ;;  %v3683_v48 = vld [vmem:[#allocation2 + $0xd8] sm:$0xff]  ;;  %v3687_v52 = vsel %vm1477_vm3, 1.0, %v4528_v62 }
 0x196   :  { %1441 = vst.msk [vmem:[#allocation2 + $0x38] sm:$0xff] %vm26_vm0, %v3640_v15  ;;  %v1992_v22 = vmul.f32 %v2275_v5, %v3629_v41  ;;  %v2026_v15 = vadd.f32 %v2025_v9, %v2024_v49  ;;  %v3690_v40 = vsel %vm1476_vm4, 1.0, %v4528_v62  ;;  %v1734_v5 = vld [vmem:[#allocation4 + $0x48] sm:$0xff]  ;;  %v1733_v49 = vld [vmem:[#allocation4 + $0x40] sm:$0xff]  ;;  %v1994_v9 = vmul.f32 %v2277_v51, %v3676_v60 }
 0x197   :  { %1458 = vst.msk [vmem:[#allocation2 + $0xc0] sm:$0xff] %vm26_vm0, %v3647_v12  ;;  %v785_v28 = vpop.xlane.xlu2 %784  ;;  %vm1798_vm5 = vcmp.ge.f32.partialorder %v1734_v5, %v1574_v45 }
 0x198   :  { %4529 = vst [vmem:[#allocation43_spill] sm:$0xff] %v3672_v21  ;;  %v2027_v3 = vsel %vm26_vm0, %v1992_v22, 0.0  ;;  %v783_v20 = vpop.xlane.xlu1 %782  ;;  %v3693_v13 = vmax.f32 %v3672_v21, %v785_v28  ;;  %v2029_v22 = vsel %vm26_vm0, %v1993_v42, 0.0  ;;  %v2526_v42 = vld [vmem:[%s4377_s3 + $0x48] sm:$0xff] }
 0x199   :  { %4530 = vst [vmem:[#allocation44_spill] sm:$0xff] %v3676_v60  ;;  %v2028_v18 = vadd.f32 %v2027_v3, %v2026_v15  ;;  %v3698_v50 = vmax.f32 %v3680_v6, %v783_v20  ;;  %v817_v41 = vpop.xlane.xlu0 %816  ;;  %vm1478_vm7 = vcmp.gt.s32.totalorder %v2526_v42, 0  ;;  %v1577_v60 = vld [vmem:[#allocation2 + $0x60] sm:$0xff]  ;;  %v3740_v21 = vld [vmem:[#allocation2 + $0x68] sm:$0xff] }
 0x19a   :  { %4531 = vst [vmem:[#allocation45_spill] sm:$0xff] %v3680_v6  ;;  %v3705_v51 = vmax.f32 %v3683_v48, %v817_v41  ;;  %1107 = vperm.xlu1 %2322, %v3693_v13   ;;  %v2527_v41 = vld [vmem:[%s4377_s3 + $0x58] sm:$0xff]  ;;  %v3736_v15 = vsel %vm1478_vm7, 1.0, %v4528_v62 }
 0x19b   :  { %4532 = vst [vmem:[#allocation46_spill] sm:$0xff] %v3683_v48  ;;  %v2030_v44 = vadd.f32 %v2029_v22, %v2028_v18  ;;  %1097 = vperm.xlu0 %2321, %v3498_v57   ;;  %vm1480_vm9 = vcmp.gt.s32.totalorder %v2527_v41, 0  ;;  %1102 = vperm.xlu2 %2323, %v3698_v50   ;;  %v3732_v22 = vld [vmem:[#allocation2 + $0x70] sm:$0xff]  ;;  %v2280_v18 = vsel %vm1798_vm5, 1.0, %v4528_v62  ;;  %v1737_v48 = vld [vmem:[#allocation4 + $0x60] sm:$0xff] }
 0x19c   :  { %4533 = vst [vmem:[#allocation47_spill] sm:$0xff] %v3687_v52  ;;  %v1573_v17 = vld [vmem:[#allocation2 + $0x40] sm:$0xff]  ;;  %vm1801_vm11 = vcmp.ge.f32.partialorder %v1737_v48, %v1577_v60  ;;  %v1739_v48 = vld [vmem:[#allocation4 + $0x70] sm:$0xff] }
 0x19d   :  { %4534 = vst [vmem:[#allocation48_spill] sm:$0xff] %v3690_v40  ;;  %v1572_v61 = vld [vmem:[#allocation2 + $0x38] sm:$0xff]  ;;  %vm1797_vm6 = vcmp.ge.f32.partialorder %v1733_v49, %v1573_v17  ;;  %v2031_v17 = vsel %vm26_vm0, %v1994_v9, 0.0  ;;  %v3747_v49 = vsel %vm1480_vm9, 1.0, %v4528_v62 }
 0x19e   :  { %4535 = vst [vmem:[#allocation49_spill] sm:$0xff] %v3693_v13  ;;  %vm1796_vm8 = vcmp.ge.f32.partialorder %v1732_v35, %v1572_v61  ;;  %v2279_v3 = vsel %vm1797_vm6, 1.0, %v4528_v62  ;;  %v2528_v61 = vld [vmem:[%s4377_s3 + $0x50] sm:$0xff] }
 0x19f   :  { %4536 = vst [vmem:[#allocation50_spill] sm:$0xff] %v3698_v50  ;;  %vm1479_vm10 = vcmp.gt.s32.totalorder %v2528_v61, 0  ;;  %v2278_v35 = vsel %vm1796_vm8, 1.0, %v4528_v62  ;;  %v1996_v20 = vmul.f32 %v2279_v3, %v3687_v52  ;;  %v3743_v3 = vld [vmem:[#allocation2 + $0xf0] sm:$0xff] }
 0x1a0   :  { %1445 = vst.msk [vmem:[#allocation2 + $0x58] sm:$0xff] %vm26_vm0, %v3693_v13  ;;  %v1995_v28 = vmul.f32 %v2278_v35, %v3690_v40  ;;  %v2032_v13 = vadd.f32 %v2031_v17, %v2030_v44  ;;  %v791_v35 = vpop.xlane.xlu2 %790  ;;  %v3751_v42 = vsel %vm1479_vm10, 1.0, %v4528_v62  ;;  %v789_v5 = vpop.xlane.xlu1 %788  ;;  %v1736_v17 = vld [vmem:[#allocation4 + $0x58] sm:$0xff]  ;;  %v1735_v61 = vld [vmem:[#allocation4 + $0x50] sm:$0xff] }
 0x1a1   :  { %4537 = vst [vmem:[#allocation51_spill] sm:$0xff] %v3705_v51  ;;  %v3754_v44 = vmax.f32 %v3732_v22, %v791_v35  ;;  %v2035_v52 = vsel %vm26_vm0, %v1996_v20, 0.0  ;;  %v3759_v41 = vmax.f32 %v3740_v21, %v789_v5  ;;  %v2529_v20 = vld [vmem:[%s4377_s3 + $0x60] sm:$0xff]  ;;  %v3788_v5 = vld [vmem:[#allocation2 + $0x88] sm:$0xff] }
 0x1a2   :  { %1444 = vst.msk [vmem:[#allocation2 + $0x50] sm:$0xff] %vm26_vm0, %v3698_v50  ;;  %v2033_v9 = vsel %vm26_vm0, %v1995_v28, 0.0  ;;  %v1997_v28 = vmul.f32 %v2280_v18, %v3736_v15  ;;  %v823_v50 = vpop.xlane.xlu0 %822  ;;  %vm1481_vm13 = vcmp.gt.s32.totalorder %v2529_v20, 0 }
 0x1a3   :  { %1461 = vst.msk [vmem:[#allocation2 + $0xd8] sm:$0xff] %vm26_vm0, %v3705_v51  ;;  %v2034_v45 = vadd.f32 %v2033_v9, %v2032_v13  ;;  %v3766_v18 = vmax.f32 %v3743_v3, %v823_v50  ;;  %1122 = vperm.xlu1 %2322, %v3754_v44   ;;  %1112 = vperm.xlu0 %2321, %v3510_v2  }
 0x1a4   :  { %4538 = vst [vmem:[#allocation52_spill] sm:$0xff] %v3732_v22  ;;  %1117 = vperm.xlu2 %2323, %v3759_v41   ;;  %v2037_v50 = vsel %vm26_vm0, %v1997_v28, 0.0  ;;  %v3799_v28 = vld [vmem:[#allocation2 + $0x80] sm:$0xff] }
 0x1a5   :  { %4539 = vst [vmem:[#allocation53_spill] sm:$0xff] %v3736_v15  ;;  %v2036_v6 = vadd.f32 %v2035_v52, %v2034_v45 }
 0x1a6   :  { %4540 = vst [vmem:[#allocation54_spill] sm:$0xff] %v3743_v3  ;;  %v1580_v3 = vld [vmem:[#allocation2 + $0x78] sm:$0xff] }
 0x1a7   :  { %4541 = vst [vmem:[#allocation55_spill] sm:$0xff] %v3747_v49  ;;  %v1576_v40 = vld [vmem:[#allocation2 + $0x58] sm:$0xff]  ;;  %v2038_v13 = vadd.f32 %v2037_v50, %v2036_v6 }
 0x1a8   :  { %4542 = vst [vmem:[#allocation56_spill] sm:$0xff] %v3751_v42  ;;  %vm1800_vm12 = vcmp.ge.f32.partialorder %v1736_v17, %v1576_v40  ;;  %v2531_v17 = vld [vmem:[%s4377_s3 + $0x68] sm:$0xff]  ;;  %v795_v22 = vpop.xlane.xlu1 %794 }
 0x1a9   :  { %4543 = vst [vmem:[#allocation57_spill] sm:$0xff] %v3754_v44  ;;  %v1575_v57 = vld [vmem:[#allocation2 + $0x50] sm:$0xff]  ;;  %v2282_v9 = vsel %vm1800_vm12, 1.0, %v4528_v62  ;;  %vm1482_vm1 = vcmp.gt.s32.totalorder %v2531_v17, 0 }
 0x1aa   :  { %4544 = vst [vmem:[#allocation58_spill] sm:$0xff] %v3759_v41  ;;  %vm1799_vm14 = vcmp.ge.f32.partialorder %v1735_v61, %v1575_v57  ;;  %v2530_v57 = vld [vmem:[%s4377_s3 + $0x70] sm:$0xff]  ;;  %v1999_v45 = vmul.f32 %v2282_v9, %v3747_v49  ;;  %v3795_v61 = vsel %vm1481_vm13, 1.0, %v4528_v62  ;;  %v797_v9 = vpop.xlane.xlu2 %796  ;;  %v3809_v20 = vsel %vm1482_vm1, 1.0, %v4528_v62 }
 0x1ab   :  { %1448 = vst.msk [vmem:[#allocation2 + $0x70] sm:$0xff] %vm26_vm0, %v3754_v44  ;;  %v2281_v40 = vsel %vm1799_vm14, 1.0, %v4528_v62  ;;  %vm1483_vm15 = vcmp.gt.s32.totalorder %v2530_v57, 0  ;;  %v2283_v57 = vsel %vm1801_vm11, 1.0, %v4528_v62  ;;  %v3806_v17 = vmax.f32 %v3788_v5, %v797_v9  ;;  %v1740_v9 = vld [vmem:[#allocation4 + $0x78] sm:$0xff] }
 0x1ac   :  { %1447 = vst.msk [vmem:[#allocation2 + $0x68] sm:$0xff] %vm26_vm0, %v3759_v41  ;;  %v1998_v35 = vmul.f32 %v2281_v40, %v3751_v42  ;;  %v3803_v52 = vsel %vm1483_vm15, 1.0, %v4528_v62  ;;  %v2000_v6 = vmul.f32 %v2283_v57, %v3795_v61  ;;  %v2041_v60 = vsel %vm26_vm0, %v1999_v45, 0.0  ;;  %v2533_v57 = vld [vmem:[%s4377_s3 + $0x88] sm:$0xff] }
 0x1ad   :  { %1464 = vst.msk [vmem:[#allocation2 + $0xf0] sm:$0xff] %vm26_vm0, %v3766_v18  ;;  %vm1804_vm4 = vcmp.ge.f32.partialorder %v1740_v9, %v1580_v3  ;;  %1137 = vperm.xlu1 %2322, %v3806_v17   ;;  %vm1486_vm6 = vcmp.gt.s32.totalorder %v2533_v57, 0  ;;  %v1742_v3 = vld [vmem:[#allocation4 + $0x88] sm:$0xff] }
 0x1ae   :  { %4545 = vst [vmem:[#allocation59_spill] sm:$0xff] %v3788_v5  ;;  %v2039_v40 = vsel %vm26_vm0, %v1998_v35, 0.0  ;;  %v3814_v35 = vmax.f32 %v3799_v28, %v795_v22  ;;  %v2286_v57 = vsel %vm1804_vm4, 1.0, %v4528_v62  ;;  %v1583_v5 = vld [vmem:[#allocation2 + $0x90] sm:$0xff] }
 0x1af   :  { %4546 = vst [vmem:[#allocation60_spill] sm:$0xff] %v3795_v61  ;;  %v2040_v44 = vadd.f32 %v2039_v40, %v2038_v13  ;;  %v2532_v13 = vld [vmem:[%s4377_s3 + $0x78] sm:$0xff]  ;;  %v1738_v40 = vld [vmem:[#allocation4 + $0x68] sm:$0xff] }
 0x1b0   :  { %4547 = vst [vmem:[#allocation61_spill] sm:$0xff] %v3799_v28  ;;  %vm1484_vm2 = vcmp.gt.s32.totalorder %v2532_v13, 0  ;;  %1132 = vperm.xlu2 %2323, %v3814_v35  }
 0x1b1   :  { %4548 = vst [vmem:[#allocation62_spill] sm:$0xff] %v3803_v52  ;;  %v2042_v49 = vadd.f32 %v2041_v60, %v2040_v44  ;;  %v3844_v15 = vsel %vm1484_vm2, 1.0, %v4528_v62 }
 0x1b2   :  { %4549 = vst [vmem:[#allocation63_spill] sm:$0xff] %v3806_v17  ;;  %v1579_v50 = vld [vmem:[#allocation2 + $0x70] sm:$0xff] }
 0x1b3   :  { %4550 = vst [vmem:[#allocation64_spill] sm:$0xff] %v3809_v20  ;;  %v1578_v42 = vld [vmem:[#allocation2 + $0x68] sm:$0xff]  ;;  %vm1803_vm3 = vcmp.ge.f32.partialorder %v1739_v48, %v1579_v50  ;;  %v3837_v50 = vld [vmem:[#allocation2 + $0xa0] sm:$0xff] }
 0x1b4   :  { %4551 = vst [vmem:[#allocation65_spill] sm:$0xff] %v3814_v35  ;;  %vm1802_vm5 = vcmp.ge.f32.partialorder %v1738_v40, %v1578_v42  ;;  %v2285_v22 = vsel %vm1803_vm3, 1.0, %v4528_v62  ;;  %v2043_v42 = vsel %vm26_vm0, %v2000_v6, 0.0  ;;  %v2534_v40 = vld [vmem:[%s4377_s3 + $0x80] sm:$0xff]  ;;  %v3848_v6 = vld [vmem:[#allocation2 + $0x98] sm:$0xff] }
 0x1b5   :  { %1451 = vst.msk [vmem:[#allocation2 + $0x88] sm:$0xff] %vm26_vm0, %v3806_v17  ;;  %v2284_v44 = vsel %vm1802_vm5, 1.0, %v4528_v62  ;;  %v2002_v60 = vmul.f32 %v2285_v22, %v3803_v52  ;;  %vm1485_vm7 = vcmp.gt.s32.totalorder %v2534_v40, 0  ;;  %v2044_v45 = vadd.f32 %v2043_v42, %v2042_v49  ;;  %v803_v22 = vpop.xlane.xlu2 %802 }
 0x1b6   :  { %1450 = vst.msk [vmem:[#allocation2 + $0x80] sm:$0xff] %vm26_vm0, %v3814_v35  ;;  %v2001_v48 = vmul.f32 %v2284_v44, %v3809_v20  ;;  %v3852_v17 = vsel %vm1486_vm6, 1.0, %v4528_v62  ;;  %v801_v20 = vpop.xlane.xlu1 %800  ;;  %v3855_v40 = vmax.f32 %v3837_v50, %v803_v22  ;;  %v3858_v13 = vsel %vm1485_vm7, 1.0, %v4528_v62  ;;  %v1743_v22 = vld [vmem:[#allocation4 + $0x90] sm:$0xff] }
 0x1b7   :  { %4552 = vst [vmem:[#allocation66_spill] sm:$0xff] %v3837_v50  ;;  %v2003_v49 = vmul.f32 %v2286_v57, %v3844_v15  ;;  %v2047_v9 = vsel %vm26_vm0, %v2002_v60, 0.0  ;;  %vm1807_vm10 = vcmp.ge.f32.partialorder %v1743_v22, %v1583_v5  ;;  %v3893_v22 = vld [vmem:[#allocation2 + $0xb0] sm:$0xff] }
 0x1b8   :  { %4553 = vst [vmem:[#allocation67_spill] sm:$0xff] %v3844_v15  ;;  %v2045_v44 = vsel %vm26_vm0, %v2001_v48, 0.0  ;;  %v3863_v48 = vmax.f32 %v3848_v6, %v801_v20  ;;  %1152 = vperm.xlu1 %2322, %v3855_v40   ;;  %v1744_v15 = vld [vmem:[#allocation4 + $0x98] sm:$0xff] }
 0x1b9   :  { %4554 = vst [vmem:[#allocation68_spill] sm:$0xff] %v3848_v6  ;;  %v2046_v52 = vadd.f32 %v2045_v44, %v2044_v45  ;;  %v2535_v45 = vld [vmem:[%s4377_s3 + $0x90] sm:$0xff]  ;;  %v1741_v44 = vld [vmem:[#allocation4 + $0x80] sm:$0xff]  ;;  %v2049_v57 = vsel %vm26_vm0, %v2003_v49, 0.0 }
 0x1ba   :  { %4555 = vst [vmem:[#allocation69_spill] sm:$0xff] %v3852_v17  ;;  %vm1487_vm8 = vcmp.gt.s32.totalorder %v2535_v45, 0  ;;  %1147 = vperm.xlu2 %2323, %v3863_v48   ;;  %v1586_v45 = vld [vmem:[#allocation2 + $0xa8] sm:$0xff] }
 0x1bb   :  { %4556 = vst [vmem:[#allocation70_spill] sm:$0xff] %v3855_v40  ;;  %v2048_v61 = vadd.f32 %v2047_v9, %v2046_v52  ;;  %v2536_v9 = vld [vmem:[%s4377_s3 + $0xa0] sm:$0xff] }
 0x1bc   :  { %4557 = vst [vmem:[#allocation71_spill] sm:$0xff] %v3858_v13  ;;  %v1582_v42 = vld [vmem:[#allocation2 + $0x88] sm:$0xff]  ;;  %vm1489_vm12 = vcmp.gt.s32.totalorder %v2536_v9, 0 }
 0x1bd   :  { %4558 = vst [vmem:[#allocation72_spill] sm:$0xff] %v3863_v48  ;;  %v1581_v35 = vld [vmem:[#allocation2 + $0x80] sm:$0xff]  ;;  %vm1806_vm9 = vcmp.ge.f32.partialorder %v1742_v3, %v1582_v42  ;;  %v3890_v42 = vsel %vm1487_vm8, 1.0, %v4528_v62  ;;  %v2050_v49 = vadd.f32 %v2049_v57, %v2048_v61  ;;  %v3903_v50 = vsel %vm1489_vm12, 1.0, %v4528_v62 }
 0x1be   :  { %1454 = vst.msk [vmem:[#allocation2 + $0xa0] sm:$0xff] %vm26_vm0, %v3855_v40  ;;  %vm1805_vm11 = vcmp.ge.f32.partialorder %v1741_v44, %v1581_v35  ;;  %v2288_v20 = vsel %vm1806_vm9, 1.0, %v4528_v62  ;;  %v3883_v35 = vld [vmem:[#allocation2 + $0xb8] sm:$0xff]  ;;  %v2289_v44 = vsel %vm1807_vm10, 1.0, %v4528_v62  ;;  %v807_v60 = vpop.xlane.xlu1 %806 }
 0x1bf   :  { %1453 = vst.msk [vmem:[#allocation2 + $0x98] sm:$0xff] %vm26_vm0, %v3863_v48  ;;  %v2287_v52 = vsel %vm1805_vm11, 1.0, %v4528_v62  ;;  %v2005_v5 = vmul.f32 %v2288_v20, %v3852_v17  ;;  %v2537_v20 = vld [vmem:[%s4377_s3 + $0x98] sm:$0xff]  ;;  %v1745_v17 = vld [vmem:[#allocation4 + $0xa0] sm:$0xff]  ;;  %v3906_v61 = vmax.f32 %v3893_v22, %v807_v60  ;;  %v2006_v57 = vmul.f32 %v2289_v44, %v3890_v42  ;;  %v2538_v60 = vld [vmem:[%s4377_s3 + $0xa8] sm:$0xff] }
 0x1c0   :  { %v2004_v3 = vmul.f32 %v2287_v52, %v3858_v13  ;;  %4559 = vst [vmem:[#allocation73_spill] sm:$0xff] %v3883_v35  ;;  %vm1488_vm13 = vcmp.gt.s32.totalorder %v2537_v20, 0  ;;  %v809_v52 = vpop.xlane.xlu2 %808  ;;  %vm1490_vm15 = vcmp.gt.s32.totalorder %v2538_v60, 0  ;;  %v2540_v60 = vld [vmem:[%s4377_s3 + $0xb0] sm:$0xff] }
 0x1c1   :  { %4560 = vst [vmem:[#allocation74_spill] sm:$0xff] %v3890_v42  ;;  %v3900_v9 = vmax.f32 %v3883_v35, %v809_v52  ;;  %v2053_v20 = vsel %vm26_vm0, %v2005_v5, 0.0  ;;  %vm1491_vm4 = vcmp.gt.s32.totalorder %v2540_v60, 0  ;;  %v1749_v42 = vld [vmem:[#allocation4 + $0xc0] sm:$0xff] }
 0x1c2   :  { %4561 = vst [vmem:[#allocation75_spill] sm:$0xff] %v3893_v22  ;;  %v2051_v28 = vsel %vm26_vm0, %v2004_v3, 0.0  ;;  %v3911_v3 = vsel %vm1488_vm13, 1.0, %v4528_v62 }
 0x1c3   :  { %4562 = vst [vmem:[#allocation76_spill] sm:$0xff] %v3900_v9  ;;  %v2052_v40 = vadd.f32 %v2051_v28, %v2050_v49  ;;  %v1746_v49 = vld [vmem:[#allocation4 + $0xa8] sm:$0xff]  ;;  %1167 = vperm.xlu1 %2322, %v3900_v9   ;;  %v3925_v28 = vld [vmem:[#allocation2 + $0xd0] sm:$0xff] }
 0x1c4   :  { %4563 = vst [vmem:[#allocation77_spill] sm:$0xff] %v3903_v50  ;;  %vm1810_vm2 = vcmp.ge.f32.partialorder %v1746_v49, %v1586_v45  ;;  %v3936_v45 = vld [vmem:[#allocation2 + $0xc8] sm:$0xff] }
 0x1c5   :  { %v1585_v13 = vld [vmem:[#allocation2 + $0xa0] sm:$0xff]  ;;  %4564 = vst [vmem:[#allocation78_spill] sm:$0xff] %v3911_v3  ;;  %v2054_v48 = vadd.f32 %v2053_v20, %v2052_v40  ;;  %v3934_v20 = vsel %vm1490_vm15, 1.0, %v4528_v62 }
 0x1c6   :  { %v1584_v52 = vld [vmem:[#allocation2 + $0x98] sm:$0xff]  ;;  %1457 = vst.msk [vmem:[#allocation2 + $0xb8] sm:$0xff] %vm26_vm0, %v3900_v9  ;;  %vm1809_vm14 = vcmp.ge.f32.partialorder %v1745_v17, %v1585_v13  ;;  %v2055_v13 = vsel %vm26_vm0, %v2006_v57, 0.0 }
 0x1c7   :  { %vm1808_vm1 = vcmp.ge.f32.partialorder %v1744_v15, %v1584_v52  ;;  %1456 = vst.msk [vmem:[#allocation2 + $0xb0] sm:$0xff] %vm26_vm0, %v3906_v61  ;;  %v2291_v5 = vsel %vm1809_vm14, 1.0, %v4528_v62  ;;  %v2539_v15 = vld [vmem:[%s4377_s3 + $0xb8] sm:$0xff]  ;;  %v2292_v52 = vsel %vm1810_vm2, 1.0, %v4528_v62  ;;  %v2056_v49 = vadd.f32 %v2055_v13, %v2054_v48 }
 0x1c8   :  { %v2290_v44 = vsel %vm1808_vm1, 1.0, %v4528_v62  ;;  %4565 = vst [vmem:[#allocation79_spill] sm:$0xff] %v3925_v28  ;;  %v2008_v40 = vmul.f32 %v2291_v5, %v3903_v50  ;;  %vm1492_vm3 = vcmp.gt.s32.totalorder %v2539_v15, 0  ;;  %v815_v5 = vpop.xlane.xlu2 %814  ;;  %v1589_v15 = vld [vmem:[#allocation2 + $0xc0] sm:$0xff]  ;;  %v1748_v13 = vld [vmem:[#allocation4 + $0xb8] sm:$0xff] }
 0x1c9   :  { %v2007_v17 = vmul.f32 %v2290_v44, %v3911_v3  ;;  %4566 = vst [vmem:[#allocation80_spill] sm:$0xff] %v3934_v20  ;;  %v813_v44 = vpop.xlane.xlu1 %812  ;;  %v3944_v22 = vmax.f32 %v3925_v28, %v815_v5  ;;  %v3947_v35 = vsel %vm1492_vm3, 1.0, %v4528_v62  ;;  %v2009_v3 = vmul.f32 %v2292_v52, %v3934_v20  ;;  %v2541_v52 = vld [vmem:[%s4377_s3 + $0xc0] sm:$0xff]  ;;  %v1751_v20 = vld [vmem:[#allocation4 + $0xd0] sm:$0xff] }
 0x1ca   :  { %4567 = vst [vmem:[#allocation81_spill] sm:$0xff] %v3936_v45  ;;  %v3950_v50 = vmax.f32 %v3936_v45, %v813_v44  ;;  %v2059_v60 = vsel %vm26_vm0, %v2008_v40, 0.0  ;;  %vm1493_vm6 = vcmp.gt.s32.totalorder %v2541_v52, 0  ;;  %vm1813_vm8 = vcmp.ge.f32.partialorder %v1749_v42, %v1589_v15  ;;  %v3969_v45 = vld [vmem:[#allocation2 + $0xe8] sm:$0xff]  ;;  %v3977_v52 = vld [vmem:[#allocation2 + $0xe0] sm:$0xff]  ;;  %v2542_v15 = vld [vmem:[%s4377_s3 + $0xd0] sm:$0xff] }
 0x1cb   :  { %v2057_v57 = vsel %vm26_vm0, %v2007_v17, 0.0  ;;  %4568 = vst [vmem:[#allocation82_spill] sm:$0xff] %v3944_v22  ;;  %v3955_v17 = vsel %vm1491_vm4, 1.0, %v4528_v62  ;;  %1182 = vperm.xlu1 %2322, %v3944_v22   ;;  %vm1495_vm9 = vcmp.gt.s32.totalorder %v2542_v15, 0 }
 0x1cc   :  { %v2058_v9 = vadd.f32 %v2057_v57, %v2056_v49  ;;  %4569 = vst [vmem:[#allocation83_spill] sm:$0xff] %v3947_v35  ;;  %v1747_v57 = vld [vmem:[#allocation4 + $0xb0] sm:$0xff] }
 0x1cd   :  { %v1588_v48 = vld [vmem:[#allocation2 + $0xb8] sm:$0xff]  ;;  %4570 = vst [vmem:[#allocation84_spill] sm:$0xff] %v3955_v17 }
 0x1ce   :  { %1460 = vst.msk [vmem:[#allocation2 + $0xd0] sm:$0xff] %vm26_vm0, %v3944_v22  ;;  %v1587_v49 = vld [vmem:[#allocation2 + $0xb0] sm:$0xff]  ;;  %vm1812_vm5 = vcmp.ge.f32.partialorder %v1748_v13, %v1588_v48  ;;  %v2060_v44 = vadd.f32 %v2059_v60, %v2058_v9  ;;  %v2061_v13 = vsel %vm26_vm0, %v2009_v3, 0.0  ;;  %v3975_v60 = vsel %vm1493_vm6, 1.0, %v4528_v62  ;;  %v1592_v22 = vld [vmem:[#allocation2 + $0xd8] sm:$0xff] }
 0x1cf   :  { %1459 = vst.msk [vmem:[#allocation2 + $0xc8] sm:$0xff] %vm26_vm0, %v3950_v50  ;;  %vm1811_vm7 = vcmp.ge.f32.partialorder %v1747_v57, %v1587_v49  ;;  %v2294_v40 = vsel %vm1812_vm5, 1.0, %v4528_v62  ;;  %v2295_v49 = vsel %vm1813_vm8, 1.0, %v4528_v62  ;;  %vm1986_vm8 = vcmask 0  }
 0x1d0   :  { %v2293_v5 = vsel %vm1811_vm7, 1.0, %v4528_v62  ;;  %4571 = vst [vmem:[#allocation85_spill] sm:$0xff] %v3969_v45  ;;  %v2011_v48 = vmul.f32 %v2294_v40, %v3947_v35  ;;  %v2062_v42 = vadd.f32 %v2061_v13, %v2060_v44  ;;  %v821_v57 = vpop.xlane.xlu2 %820  ;;  %v2012_v15 = vmul.f32 %v2295_v49, %v3975_v60  ;;  %v2544_v49 = vld [vmem:[%s4377_s3 + $0xd8] sm:$0xff] }
 0x1d1   :  { %v2010_v9 = vmul.f32 %v2293_v5, %v3955_v17  ;;  %4572 = vst [vmem:[#allocation86_spill] sm:$0xff] %v3975_v60  ;;  %v2543_v5 = vld [vmem:[%s4377_s3 + $0xc8] sm:$0xff]  ;;  %v819_v40 = vpop.xlane.xlu1 %818  ;;  %v3988_v35 = vmax.f32 %v3969_v45, %v821_v57  ;;  %vm1496_vm12 = vcmp.gt.s32.totalorder %v2544_v49, 0 }
 0x1d2   :  { %4573 = vst [vmem:[#allocation87_spill] sm:$0xff] %v3977_v52  ;;  %vm1494_vm10 = vcmp.gt.s32.totalorder %v2543_v5, 0  ;;  %v3991_v44 = vmax.f32 %v3977_v52, %v819_v40  ;;  %v2065_v17 = vsel %vm26_vm0, %v2011_v48, 0.0  ;;  %v3996_v5 = vsel %vm1495_vm9, 1.0, %v4528_v62 }
 0x1d3   :  { %v2063_v3 = vsel %vm26_vm0, %v2010_v9, 0.0  ;;  %4574 = vst [vmem:[#allocation88_spill] sm:$0xff] %v3996_v5  ;;  %v3999_v9 = vsel %vm1494_vm10, 1.0, %v4528_v62  ;;  %1187 = vperm.xlu1 %2322, %v3705_v51  }
 0x1d4   :  { %v2064_v28 = vadd.f32 %v2063_v3, %v2062_v42  ;;  %4575 = vst [vmem:[#allocation89_spill] sm:$0xff] %v3999_v9  ;;  %v1750_v42 = vld [vmem:[#allocation4 + $0xc8] sm:$0xff]  ;;  %v1752_v3 = vld [vmem:[#allocation4 + $0xd8] sm:$0xff] }
 0x1d5   :  { %v1591_v13 = vld [vmem:[#allocation2 + $0xd0] sm:$0xff]  ;;  %1463 = vst.msk [vmem:[#allocation2 + $0xe8] sm:$0xff] %vm26_vm0, %v3988_v35  ;;  %vm1816_vm14 = vcmp.ge.f32.partialorder %v1752_v3, %v1592_v22 }
 0x1d6   :  { %v1590_v57 = vld [vmem:[#allocation2 + $0xc8] sm:$0xff]  ;;  %vm1815_vm11 = vcmp.ge.f32.partialorder %v1751_v20, %v1591_v13  ;;  %v2066_v40 = vadd.f32 %v2065_v17, %v2064_v28  ;;  %1462 = vst.msk [vmem:[#allocation2 + $0xe0] sm:$0xff] %vm26_vm0, %v3991_v44  ;;  %v2067_v20 = vsel %vm26_vm0, %v2012_v15, 0.0  ;;  %v4018_v13 = vsel %vm1496_vm12, 1.0, %v4528_v62 }
 0x1d7   :  { %vm1814_vm13 = vcmp.ge.f32.partialorder %v1750_v42, %v1590_v57  ;;  %v2297_v48 = vsel %vm1815_vm11, 1.0, %v4528_v62  ;;  %v2545_v17 = vld [vmem:[%s4377_s3 + $0xe8] sm:$0xff]  ;;  %4576 = vst [vmem:[#allocation90_spill] sm:$0xff] %v4018_v13  ;;  %v4020_v57 = vld [vmem:[#allocation2 + $0xf8] sm:$0xff]  ;;  %v2298_v22 = vsel %vm1816_vm14, 1.0, %v4528_v62 }
 0x1d8   :  { %v2296_v52 = vsel %vm1814_vm13, 1.0, %v4528_v62  ;;  %v2014_v28 = vmul.f32 %v2297_v48, %v3996_v5  ;;  %vm1498_vm15 = vcmp.gt.s32.totalorder %v2545_v17, 0  ;;  %4577 = vst [vmem:[#allocation91_spill] sm:$0xff] %v4020_v57  ;;  %v2068_v42 = vadd.f32 %v2067_v20, %v2066_v40  ;;  %v1053_v3 = vpop.permute.xlu2 %1052  ;;  %v1595_v17 = vld [vmem:[#allocation2 + $0xf0] sm:$0xff]  ;;  %v1754_v20 = vld [vmem:[#allocation4 + $0xe8] sm:$0xff] }
 0x1d9   :  { %v2013_v45 = vmul.f32 %v2296_v52, %v3999_v9  ;;  %v2546_v52 = vld [vmem:[%s4377_s3 + $0xe0] sm:$0xff]  ;;  %v825_v49 = vpop.xlane.xlu1 %824  ;;  %v1210_v48 = vsub.f32 %v3119_v23, %v1053_v3  ;;  %v4029_v9 = vsel %vm1498_vm15, 1.0, %v4528_v62  ;;  %v2015_v60 = vmul.f32 %v2298_v22, %v4018_v13  ;;  %v1755_v3 = vld [vmem:[#allocation4 + $0xf0] sm:$0xff] }
 0x1da   :  { %vm1497_vm1 = vcmp.gt.s32.totalorder %v2546_v52, 0  ;;  %4578 = vst [vmem:[#allocation92_spill] sm:$0xff] %v4029_v9  ;;  %v4032_v51 = vmax.f32 %v4020_v57, %v825_v49  ;;  %v2071_v52 = vsel %vm26_vm0, %v2014_v28, 0.0  ;;  %v1753_v23 = vld [vmem:[#allocation4 + $0xe0] sm:$0xff]  ;;  %vm1819_vm5 = vcmp.ge.f32.partialorder %v1755_v3, %v1595_v17 }
 0x1db   :  { %v2069_v15 = vsel %vm26_vm0, %v2013_v45, 0.0  ;;  %v4037_v6 = vsel %vm1497_vm1, 1.0, %v4528_v62  ;;  %v1242_v45 = vmul.f32 1.442695, %v1210_v48 }
 0x1dc   :  { %v2070_v5 = vadd.f32 %v2069_v15, %v2068_v42  ;;  %v1594_v40 = vld [vmem:[#allocation2 + $0xe8] sm:$0xff]  ;;  %4579 = vst [vmem:[#allocation93_spill] sm:$0xff] %v4037_v6  ;;  %v2547_v15 = vld [vmem:[%s4377_s3 + $0xf0] sm:$0xff] }
 0x1dd   :  { %v1593_v41 = vld [vmem:[#allocation2 + $0xe0] sm:$0xff]  ;;  %vm1818_vm2 = vcmp.ge.f32.partialorder %v1754_v20, %v1594_v40  ;;  %vm1499_vm3 = vcmp.gt.s32.totalorder %v2547_v15, 0  ;;  %1465 = vst.msk [vmem:[#allocation2 + $0xf8] sm:$0xff] %vm26_vm0, %v4032_v51  ;;  %2325 = vpow2.f32 %v1242_v45  ;;  %v2301_v20 = vsel %vm1819_vm5, 1.0, %v4528_v62 }
 0x1de   :  { %v2072_v42 = vadd.f32 %v2071_v52, %v2070_v5  ;;  %vm1817_vm4 = vcmp.ge.f32.partialorder %v1753_v23, %v1593_v41  ;;  %v2300_v28 = vsel %vm1818_vm2, 1.0, %v4528_v62  ;;  %v2073_v5 = vsel %vm26_vm0, %v2015_v60, 0.0  ;;  %v2548_v41 = vld [vmem:[%s4377_s3 + $0xf8] sm:$0xff] }
 0x1df   :  { %v2299_v22 = vsel %vm1817_vm4, 1.0, %v4528_v62  ;;  %v2017_v48 = vmul.f32 %v2300_v28, %v4029_v9  ;;  %v4050_v40 = vsel %vm1499_vm3, 1.0, %v4528_v62  ;;  %vm1500_vm6 = vcmp.gt.s32.totalorder %v2548_v41, 0 }
 0x1e0   :  { %v2016_v49 = vmul.f32 %v2299_v22, %v4037_v6  ;;  %4580 = vst [vmem:[#allocation94_spill] sm:$0xff] %v4050_v40  ;;  %v2074_v52 = vadd.f32 %v2073_v5, %v2072_v42  ;;  %v2018_v23 = vmul.f32 %v2301_v20, %v4050_v40  ;;  %v4060_v60 = vsel %vm1500_vm6, 1.0, %v4528_v62  ;;  %v1756_v22 = vld [vmem:[#allocation4 + $0xf8] sm:$0xff] }
 0x1e1   :  { %v2077_v3 = vsel %vm26_vm0, %v2017_v48, 0.0 }
 0x1e2   :  { %v2075_v17 = vsel %vm26_vm0, %v2016_v49, 0.0  ;;  %v2079_v49 = vsel %vm26_vm0, %v2018_v23, 0.0 }
 0x1e3   :  { %v2076_v45 = vadd.f32 %v2075_v17, %v2074_v52  ;;  %v2326_v15 = vpop.eup %2325 }
 0x1e4   :  { %v1596_v28 = vld [vmem:[#allocation2 + $0xf8] sm:$0xff]  ;;  %1306 = vadd.xlane.f32.xlu0 %v2326_v15 }
 0x1e5   :  { %v2078_v57 = vadd.f32 %v2077_v3, %v2076_v45  ;;  %vm1820_vm7 = vcmp.ge.f32.partialorder %v1756_v22, %v1596_v28  ;;  %v1073_v23 = vpop.permute.xlu2 %1072 }
 0x1e6   :  { %v2302_v42 = vsel %vm1820_vm7, 1.0, %v4528_v62 }
 0x1e7   :  { %v2019_v5 = vmul.f32 %v2302_v42, %v4060_v60  ;;  %v2080_v52 = vadd.f32 %v2079_v49, %v2078_v57 }
 0x1e9   :  { %v2081_v20 = vsel %vm26_vm0, %v2019_v5, 0.0 }
 0x1ea   :  { %v2082_v41 = vadd.f32 %v2081_v20, %v2080_v52 }
 0x1ec   :  { %v2083_v48 = vrot.slane %v2082_v41, 4 }
 0x1ee   :  { %v2084_v17 = vadd.f32 %v2083_v48, %v2082_v41  ;;  %v4077_v41 = vpop.permute.xlu2 %1087 }
 0x1f0   :  { %v2085_v40 = vrot.slane %v2084_v17, 2 }
 0x1f2   :  { %v2086_v9 = vadd.f32 %v2085_v40, %v2084_v17  ;;  %v1214_v40 = vsub.f32 %v3273_v59, %v1073_v23 }
 0x1f4   :  { %v2087_v6 = vrot.slane %v2086_v9, 1  ;;  %v1063_v62 = vpop.permute.xlu1 %1062 }
 0x1f5   :  { %v1212_v45 = vsub.f32 %v3238_v32, %v1063_v62  ;;  %v1058_v3 = vpop.permute.xlu0 %1057 }
 0x1f6   :  { %v2088_v13 = vadd.f32 %v2087_v6, %v2086_v9  ;;  %v1211_v57 = vsub.f32 %v3132_v34, %v1058_v3  ;;  %v1250_v6 = vmul.f32 1.442695, %v1214_v40  ;;  %v1103_v23 = vpop.permute.xlu2 %1102 }
 0x1f7   :  { %v1246_v15 = vmul.f32 1.442695, %v1212_v45 }
 0x1f8   :  { %2089 = vst.msk [vmem:[#allocation7] sm:$0x1] %vm1986_vm8, %v2088_v13  ;;  %1127 = vperm.xlu0 %2321, %v3521_v56   ;;  %v1244_v28 = vmul.f32 1.442695, %v1211_v57 }
 0x1f9   :  { %2327 = vpow2.f32 %v1246_v15  ;;  %2181 = dma.vmem_to_hbm [thread:$0]  %s2177_s20, 16, %s2179_s18, [#allocation8]  }
 0x1fa   :  { %2329 = vpow2.f32 %v1244_v28 }
 0x1fb   :  { %2331 = vpow2.f32 %v1250_v6 }
 0x1fc   :  { %v1078_v13 = vpop.permute.xlu1 %1077 }
 0x1fd   :  { %v1068_v9 = vpop.permute.xlu0 %1067  ;;  %v1215_v34 = vsub.f32 %v3201_v16, %v1078_v13 }
 0x1fe   :  { %v1213_v22 = vsub.f32 %v3234_v31, %v1068_v9 }
 0x1ff   :  { %v2328_v42 = vpop.eup %2327  ;;  %v1252_v49 = vmul.f32 1.442695, %v1215_v34 }
 0x200   :  { %1142 = vperm.xlu0 %2321, %v3543_v53   ;;  %v2330_v32 = vpop.eup %2329  ;;  %v1248_v5 = vmul.f32 1.442695, %v1213_v22  ;;  %1310 = vadd.xlane.f32.xlu1 %v2328_v42  ;;  %v1118_v42 = vpop.permute.xlu2 %1117 }
 0x201   :  { %1308 = vadd.xlane.f32.xlu2 %v2330_v32  ;;  %v2332_v52 = vpop.eup %2331 }
 0x202   :  { %2333 = vpow2.f32 %v1248_v5  ;;  %v1223_v5 = vsub.f32 %v3300_v11, %v1118_v42 }
 0x203   :  { %2335 = vpow2.f32 %v1252_v49 }
 0x204   :  { %v1093_v45 = vpop.permute.xlu1 %1092 }
 0x205   :  { %v1083_v59 = vpop.permute.xlu0 %1082 }
 0x206   :  { %v1216_v31 = vsub.f32 %v3312_v24, %v1083_v59  ;;  %v1220_v24 = vsub.f32 %v3213_v33, %v1103_v23  ;;  %v1218_v59 = vsub.f32 %v3122_v25, %v1093_v45  ;;  %v890_v45 = vld [vmem:[#allocation3] sm:$0xff] }
 0x208   :  { %1157 = vperm.xlu0 %2321, %v3590_v38   ;;  %v2334_v20 = vpop.eup %2333  ;;  %1314 = vadd.xlane.f32.xlu1 %v2332_v52  ;;  %v1254_v48 = vmul.f32 1.442695, %v1216_v31  ;;  %v1262_v15 = vmul.f32 1.442695, %v1220_v24  ;;  %v4581_v31 = vsub.f32 %v3440_v43, %v3450_v47 }
 0x209   :  { %1312 = vadd.xlane.f32.xlu2 %v2334_v20  ;;  %v2336_v62 = vpop.eup %2335 }
 0x20a   :  { %2337 = vpow2.f32 %v1254_v48  ;;  %v1133_v52 = vpop.permute.xlu2 %1132  ;;  %v954_v48 = vmul.f32 1.442695, %v4581_v31  ;;  %v4585_v31 = vsub.f32 %v3465_v0, %v3474_v26 }
 0x20b   :  { %v1226_v11 = vsub.f32 %v3152_v46, %v1133_v52 }
 0x20c   :  { %v1108_v28 = vpop.permute.xlu1 %1107 }
 0x20d   :  { %v1098_v17 = vpop.permute.xlu0 %1097  ;;  %v1221_v6 = vsub.f32 %v3168_v58, %v1108_v28  ;;  %v1268_v58 = vmul.f32 1.442695, %v1223_v5 }
 0x20e   :  { %v1219_v16 = vsub.f32 %v3217_v36, %v1098_v17 }
 0x20f   :  { %v1264_v36 = vmul.f32 1.442695, %v1221_v6 }
 0x210   :  { %1172 = vperm.xlu0 %2321, %v3647_v12   ;;  %1316 = vadd.xlane.f32.xlu1 %v2336_v62  ;;  %v1260_v3 = vmul.f32 1.442695, %v1219_v16  ;;  %v2338_v57 = vpop.eup %2337  ;;  %v1274_v62 = vmul.f32 1.442695, %v1226_v11 }
 0x212   :  { %2339 = vpow2.f32 %v1260_v3 }
 0x213   :  { %2341 = vpow2.f32 %v1262_v15 }
 0x214   :  { %2343 = vpow2.f32 %v1264_v36  ;;  %v1148_v16 = vpop.permute.xlu2 %1147 }
 0x215   :  { %v1113_v9 = vpop.permute.xlu0 %1112  ;;  %v1123_v49 = vpop.permute.xlu1 %1122  ;;  %v1229_v25 = vsub.f32 %v3253_v54, %v1148_v16  ;;  %v891_v16 = vld [vmem:[#allocation3 + $0x8] sm:$0xff] }
 0x216   :  { %v1222_v22 = vsub.f32 %v3290_v4, %v1113_v9  ;;  %v1258_v4 = vmul.f32 1.442695, %v1218_v59  ;;  %v1224_v6 = vsub.f32 %v3220_v37, %v1123_v49  ;;  %v4583_v49 = vsub.f32 %v3528_v7, %v3536_v8 }
 0x217   :  { %v1280_v24 = vmul.f32 1.442695, %v1229_v25  ;;  %v4584_v7 = vsub.f32 %v3565_v55, %v3580_v19  ;;  %v4587_v55 = vld [vmem:[#allocation12_spill] sm:$0xff] }
 0x218   :  { %1192 = vperm.xlu0 %2321, %v3991_v44   ;;  %1318 = vadd.xlane.f32.xlu1 %v2338_v57  ;;  %v2340_v40 = vpop.eup %2339  ;;  %v1266_v33 = vmul.f32 1.442695, %v1222_v22  ;;  %v1217_v57 = vsub.f32 %v3328_v29, %v4077_v41  ;;  %v1270_v36 = vmul.f32 1.442695, %v1224_v6  ;;  %v956_v59 = vmul.f32 1.442695, %v4583_v49 }
 0x219   :  { %v2342_v13 = vpop.eup %2341  ;;  %v962_v8 = vmul.f32 1.442695, %v4584_v7  ;;  %v4595_v7 = vld [vmem:[#allocation16_spill] sm:$0xff] }
 0x21a   :  { %v2344_v32 = vpop.eup %2343  ;;  %2345 = vpow2.f32 %v1266_v33  ;;  %v1256_v28 = vmul.f32 1.442695, %v1217_v57 }
 0x21b   :  { %2347 = vpow2.f32 %v1268_v58  ;;  %v4582_v58 = vsub.f32 %v3526_v63, %v3533_v27 }
 0x21c   :  { %2349 = vpow2.f32 %v1258_v4 }
 0x21d   :  { %2351 = vpow2.f32 %v954_v48  ;;  %v960_v48 = vmul.f32 1.442695, %v4585_v31 }
 0x21e   :  { %2353 = vpow2.f32 %v1274_v62 }
 0x21f   :  { %v1138_v17 = vpop.permute.xlu1 %1137  ;;  %2355 = vpow2.f32 %v1280_v24 }
 0x220   :  { %1202 = vperm.xlu0 %2321, %v3766_v18   ;;  %1324 = vadd.xlane.f32.xlu1 %v2340_v40  ;;  %v2346_v34 = vpop.eup %2345  ;;  %2357 = vpow2.f32 %v1256_v28  ;;  %v1227_v29 = vsub.f32 %v3139_v39, %v1138_v17  ;;  %v892_v17 = vld [vmem:[#allocation3 + $0x10] sm:$0xff]  ;;  %v4589_v28 = vld [vmem:[#allocation32_spill] sm:$0xff] }
 0x221   :  { %1162 = vperm.xlu2 %2323, %v3906_v61   ;;  %v2348_v20 = vpop.eup %2347  ;;  %2359 = vpow2.f32 %v1270_v36 }
 0x222   :  { %v2350_v3 = vpop.eup %2349  ;;  %v1276_v41 = vmul.f32 1.442695, %v1227_v29  ;;  %v893_v29 = vld [vmem:[#allocation3 + $0x18] sm:$0xff] }
 0x223   :  { %v2352_v23 = vpop.eup %2351 }
 0x224   :  { %v1018_v47 = vmul.f32 %v2352_v23, %v890_v45  ;;  %v2354_v40 = vpop.eup %2353  ;;  %2361 = vpow2.f32 %v1276_v41  ;;  %v4586_v23 = vld [vmem:[#allocation18_spill] sm:$0xff] }
 0x225   :  { %v2356_v9 = vpop.eup %2355 }
 0x228   :  { %1207 = vperm.xlu0 %2321, %v4032_v51   ;;  %1326 = vadd.xlane.f32.xlu1 %v2342_v13  ;;  %v2358_v13 = vpop.eup %2357 }
 0x229   :  { %1177 = vperm.xlu2 %2323, %v3950_v50   ;;  %v2360_v22 = vpop.eup %2359 }
 0x22a   :  { %v1153_v43 = vpop.permute.xlu1 %1152  ;;  %v2362_v52 = vpop.eup %2361 }
 0x22b   :  { %v1230_v5 = vsub.f32 %v3182_v1, %v1153_v43 }
 0x22d   :  { %v1282_v39 = vmul.f32 1.442695, %v1230_v5 }
 0x230   :  { %1328 = vadd.xlane.f32.xlu1 %v2344_v32 }
 0x231   :  { %1197 = vperm.xlu2 %2323, %v3988_v35  }
 0x235   :  { %v1168_v54 = vpop.permute.xlu1 %1167 }
 0x236   :  { %v1233_v1 = vsub.f32 %v3264_v10, %v1168_v54 }
 0x238   :  { %1330 = vadd.xlane.f32.xlu1 %v2346_v34  ;;  %v958_v34 = vmul.f32 1.442695, %v4582_v58 }
 0x23d   :  { %v1183_v33 = vpop.permute.xlu1 %1182 }
 0x23e   :  { %v1236_v45 = vsub.f32 %v4587_v55, %v1183_v33  ;;  %v4591_v33 = vld [vmem:[#allocation14_spill] sm:$0xff] }
 0x240   :  { %1332 = vadd.xlane.f32.xlu1 %v2348_v20  ;;  %v1294_v54 = vmul.f32 1.442695, %v1236_v45 }
 0x245   :  { %v4111_v20 = vpop.permute.xlu1 %1187 }
 0x252   :  { %1322 = vadd.xlane.f32.xlu0 %v2350_v3 }
 0x257   :  { %v1307_v15 = vpop.xlane.xlu0 %1306 }
 0x258   :  { %v1370_v46 = vadd.f32 %v1307_v15, %v1018_v47  ;;  %v4588_v15 = vld [vmem:[#allocation29_spill] sm:$0xff] }
 0x25a   :  { %1402 = vst.msk [vmem:[#allocation3] sm:$0xff] %vm26_vm0, %v1370_v46  ;;  %1338 = vadd.xlane.f32.xlu0 %v2354_v40  ;;  %1320 = vadd.xlane.f32.xlu2 %v2358_v13  ;;  %v4590_v46 = vsub.f32 %v4588_v15, %v4589_v28  ;;  %v4601_v28 = vld [vmem:[#allocation45_spill] sm:$0xff] }
 0x25c   :  { %v964_v40 = vmul.f32 1.442695, %v4590_v46  ;;  %v4602_v46 = vld [vmem:[#allocation50_spill] sm:$0xff] }
 0x262   :  { %1344 = vadd.xlane.f32.xlu0 %v2356_v9  ;;  %1334 = vadd.xlane.f32.xlu2 %v2360_v22  ;;  %v894_v9 = vld [vmem:[#allocation3 + $0x20] sm:$0xff] }
 0x26a   :  { %v1128_v42 = vpop.permute.xlu0 %1127  ;;  %1340 = vadd.xlane.f32.xlu2 %v2362_v52  ;;  %v4593_v52 = vld [vmem:[#allocation23_spill] sm:$0xff] }
 0x26b   :  { %v1225_v32 = vsub.f32 %v3331_v30, %v1128_v42 }
 0x26d   :  { %v1272_v37 = vmul.f32 1.442695, %v1225_v32 }
 0x26f   :  { %2363 = vpow2.f32 %v1272_v37 }
 0x270   :  { %2365 = vpow2.f32 %v958_v34 }
 0x271   :  { %2367 = vpow2.f32 %v956_v59 }
 0x272   :  { %v1143_v4 = vpop.permute.xlu0 %1142  ;;  %2369 = vpow2.f32 %v1282_v39  ;;  %v4592_v39 = vld [vmem:[#allocation22_spill] sm:$0xff] }
 0x273   :  { %v1228_v30 = vsub.f32 %v3257_v14, %v1143_v4  ;;  %v1288_v14 = vmul.f32 1.442695, %v1233_v1  ;;  %v1311_v57 = vpop.xlane.xlu1 %1310  ;;  %v4594_v4 = vsub.f32 %v4592_v39, %v4593_v52  ;;  %v4608_v52 = vld [vmem:[#allocation43_spill] sm:$0xff] }
 0x274   :  { %v1309_v24 = vpop.xlane.xlu2 %1308 }
 0x275   :  { %v2364_v63 = vpop.eup %2363  ;;  %v1278_v27 = vmul.f32 1.442695, %v1228_v30  ;;  %v966_v30 = vmul.f32 1.442695, %v4594_v4  ;;  %v4609_v4 = vld [vmem:[#allocation49_spill] sm:$0xff] }
 0x276   :  { %1336 = vadd.xlane.f32.xlu1 %v2364_v63  ;;  %v2366_v11 = vpop.eup %2365 }
 0x277   :  { %2371 = vpow2.f32 %v1278_v27  ;;  %v2368_v62 = vpop.eup %2367  ;;  %v1020_v19 = vmul.f32 %v2366_v11, %v892_v17  ;;  %v895_v27 = vld [vmem:[#allocation3 + $0x28] sm:$0xff] }
 0x278   :  { %v2370_v10 = vpop.eup %2369  ;;  %2373 = vpow2.f32 %v962_v8  ;;  %v1019_v0 = vmul.f32 %v2368_v62, %v891_v16  ;;  %v1237_v8 = vsub.f32 %v4595_v7, %v4111_v20  ;;  %v4597_v17 = vld [vmem:[#allocation25_spill] sm:$0xff] }
 0x279   :  { %2375 = vpow2.f32 %v960_v48  ;;  %1346 = vadd.xlane.f32.xlu2 %v2370_v10  ;;  %v1372_v47 = vadd.f32 %v1311_v57, %v1020_v19  ;;  %v4599_v19 = vld [vmem:[#allocation19_spill] sm:$0xff] }
 0x27a   :  { %v1158_v3 = vpop.permute.xlu0 %1157  ;;  %2377 = vpow2.f32 %v1288_v14  ;;  %v1371_v6 = vadd.f32 %v1309_v24, %v1019_v0  ;;  %v4596_v14 = vld [vmem:[#allocation24_spill] sm:$0xff]  ;;  %v896_v0 = vld [vmem:[#allocation3 + $0x30] sm:$0xff] }
 0x27b   :  { %v1231_v25 = vsub.f32 %v4586_v23, %v1158_v3  ;;  %1404 = vst.msk [vmem:[#allocation3 + $0x10] sm:$0xff] %vm26_vm0, %v1372_v47  ;;  %v1315_v5 = vpop.xlane.xlu1 %1314  ;;  %v4598_v62 = vsub.f32 %v4596_v14, %v4597_v17  ;;  %v1296_v3 = vmul.f32 1.442695, %v1237_v8  ;;  %v4612_v17 = vld [vmem:[#allocation15_spill] sm:$0xff] }
 0x27c   :  { %1403 = vst.msk [vmem:[#allocation3 + $0x8] sm:$0xff] %vm26_vm0, %v1371_v6  ;;  %v1313_v59 = vpop.xlane.xlu2 %1312 }
 0x27d   :  { %v2372_v26 = vpop.eup %2371  ;;  %v1284_v43 = vmul.f32 1.442695, %v1231_v25  ;;  %v972_v16 = vmul.f32 1.442695, %v4598_v62 }
 0x27e   :  { %1342 = vadd.xlane.f32.xlu1 %v2372_v26  ;;  %v2374_v36 = vpop.eup %2373 }
 0x27f   :  { %2379 = vpow2.f32 %v1284_v43  ;;  %v2376_v13 = vpop.eup %2375  ;;  %v1022_v32 = vmul.f32 %v2374_v36, %v894_v9  ;;  %v4600_v43 = vld [vmem:[#allocation21_spill] sm:$0xff] }
 0x280   :  { %v2378_v41 = vpop.eup %2377  ;;  %2381 = vpow2.f32 %v964_v40  ;;  %v1021_v37 = vmul.f32 %v2376_v13, %v893_v29  ;;  %v4603_v40 = vsub.f32 %v4601_v28, %v4602_v46  ;;  %v4604_v29 = vld [vmem:[#allocation13_spill] sm:$0xff] }
 0x281   :  { %1352 = vadd.xlane.f32.xlu2 %v2378_v41  ;;  %2383 = vpow2.f32 %v1294_v54  ;;  %v1374_v49 = vadd.f32 %v1315_v5, %v1022_v32  ;;  %v899_v32 = vld [vmem:[#allocation3 + $0x48] sm:$0xff] }
 0x282   :  { %v1173_v22 = vpop.permute.xlu0 %1172  ;;  %v1373_v1 = vadd.f32 %v1313_v59, %v1021_v37  ;;  %v974_v6 = vmul.f32 1.442695, %v4603_v40  ;;  %v4605_v5 = vld [vmem:[#allocation17_spill] sm:$0xff]  ;;  %v4617_v40 = vld [vmem:[#allocation39_spill] sm:$0xff] }
 0x283   :  { %v1234_v42 = vsub.f32 %v4591_v33, %v1173_v22  ;;  %1406 = vst.msk [vmem:[#allocation3 + $0x20] sm:$0xff] %vm26_vm0, %v1374_v49  ;;  %v1317_v10 = vpop.xlane.xlu1 %1316  ;;  %v4607_v49 = vld [vmem:[#allocation34_spill] sm:$0xff] }
 0x284   :  { %1405 = vst.msk [vmem:[#allocation3 + $0x18] sm:$0xff] %vm26_vm0, %v1373_v1  ;;  %v1163_v25 = vpop.permute.xlu2 %1162  ;;  %v2091_v59 = vsel %vm26_vm0, %v4607_v49, 0.0 }
 0x285   :  { %v2380_v58 = vpop.eup %2379  ;;  %v1290_v34 = vmul.f32 1.442695, %v1234_v42  ;;  %v1232_v55 = vsub.f32 %v4599_v19, %v1163_v25  ;;  %v900_v25 = vld [vmem:[#allocation3 + $0x50] sm:$0xff] }
 0x286   :  { %1348 = vadd.xlane.f32.xlu1 %v2380_v58  ;;  %v2382_v63 = vpop.eup %2381  ;;  %v4606_v58 = vld [vmem:[#allocation30_spill] sm:$0xff] }
 0x287   :  { %2385 = vpow2.f32 %v1290_v34  ;;  %v2384_v31 = vpop.eup %2383  ;;  %v1023_v11 = vmul.f32 %v2382_v63, %v895_v27  ;;  %v1286_v57 = vmul.f32 1.442695, %v1232_v55  ;;  %v2090_v34 = vsel %vm26_vm0, %v4606_v58, 0.0  ;;  %v4613_v55 = vld [vmem:[#allocation36_spill] sm:$0xff] }
 0x288   :  { %2387 = vpow2.f32 %v966_v30  ;;  %v4610_v30 = vsub.f32 %v4608_v52, %v4609_v4  ;;  %v2092_v27 = vadd.f32 %v2091_v59, %v2090_v34  ;;  %v4620_v34 = vld [vmem:[#allocation58_spill] sm:$0xff] }
 0x289   :  { %1358 = vadd.xlane.f32.xlu2 %v2384_v31  ;;  %v1375_v23 = vadd.f32 %v1317_v10, %v1023_v11  ;;  %2389 = vpow2.f32 %v972_v16  ;;  %v4621_v59 = vsub.f32 %v3740_v21, %v4620_v34  ;;  %v4624_v21 = vld [vmem:[#allocation35_spill] sm:$0xff]  ;;  %v4635_v34 = vld [vmem:[#allocation42_spill] sm:$0xff] }
 0x28a   :  { %v1193_v48 = vpop.permute.xlu0 %1192  ;;  %2391 = vpow2.f32 %v1296_v3  ;;  %v976_v1 = vmul.f32 1.442695, %v4610_v30  ;;  %v902_v30 = vld [vmem:[#allocation3 + $0x60] sm:$0xff] }
 0x28b   :  { %1407 = vst.msk [vmem:[#allocation3 + $0x28] sm:$0xff] %vm26_vm0, %v1375_v23  ;;  %2393 = vpow2.f32 %v1286_v57  ;;  %v1319_v15 = vpop.xlane.xlu1 %1318  ;;  %v1238_v37 = vsub.f32 %v4605_v5, %v1193_v48  ;;  %v4611_v48 = vld [vmem:[#allocation33_spill] sm:$0xff]  ;;  %v4619_v5 = vld [vmem:[#allocation44_spill] sm:$0xff] }
 0x28c   :  { %v1178_v9 = vpop.permute.xlu2 %1177  ;;  %v2093_v14 = vsel %vm26_vm0, %v4611_v48, 0.0 }
 0x28d   :  { %v2386_v45 = vpop.eup %2385  ;;  %v1235_v41 = vsub.f32 %v4604_v29, %v1178_v9  ;;  %v1298_v7 = vmul.f32 1.442695, %v1238_v37  ;;  %v2094_v19 = vadd.f32 %v2093_v14, %v2092_v27  ;;  %v4618_v29 = vld [vmem:[#allocation40_spill] sm:$0xff]  ;;  %v2101_v37 = vsel %vm26_vm0, %v4619_v5, 0.0  ;;  %v4623_v14 = vld [vmem:[#allocation47_spill] sm:$0xff] }
 0x28e   :  { %v2388_v20 = vpop.eup %2387  ;;  %1354 = vadd.xlane.f32.xlu1 %v2386_v45  ;;  %v2095_v45 = vsel %vm26_vm0, %v4613_v55, 0.0 }
 0x28f   :  { %v1024_v24 = vmul.f32 %v2388_v20, %v896_v0  ;;  %v2390_v13 = vpop.eup %2389  ;;  %v1292_v42 = vmul.f32 1.442695, %v1235_v41  ;;  %v4614_v20 = vld [vmem:[#allocation20_spill] sm:$0xff]  ;;  %v2099_v41 = vsel %vm26_vm0, %v4618_v29, 0.0 }
 0x290   :  { %v2392_v22 = vpop.eup %2391  ;;  %v1027_v39 = vmul.f32 %v2390_v13, %v899_v32  ;;  %v901_v13 = vld [vmem:[#allocation3 + $0x58] sm:$0xff] }
 0x291   :  { %v1376_v54 = vadd.f32 %v1319_v15, %v1024_v24  ;;  %v2394_v33 = vpop.eup %2393 }
 0x292   :  { %v1203_v26 = vpop.permute.xlu0 %1202  ;;  %1350 = vadd.xlane.f32.xlu0 %v2394_v33 }
 0x293   :  { %v1240_v47 = vsub.f32 %v4600_v43, %v1203_v26  ;;  %1408 = vst.msk [vmem:[#allocation3 + $0x30] sm:$0xff] %vm26_vm0, %v1376_v54  ;;  %v1325_v63 = vpop.xlane.xlu1 %1324  ;;  %v2096_v43 = vadd.f32 %v2095_v45, %v2094_v19  ;;  %v4627_v19 = vld [vmem:[#allocation53_spill] sm:$0xff] }
 0x294   :  { %v1379_v8 = vadd.f32 %v1325_v63, %v1027_v39  ;;  %v1198_v31 = vpop.permute.xlu2 %1197  ;;  %v980_v39 = vmul.f32 1.442695, %v4621_v59  ;;  %v4622_v63 = vld [vmem:[#allocation48_spill] sm:$0xff]  ;;  %v2107_v45 = vsel %vm26_vm0, %v4627_v19, 0.0 }
 0x295   :  { %v1302_v36 = vmul.f32 1.442695, %v1240_v47  ;;  %v1239_v62 = vsub.f32 %v4612_v17, %v1198_v31  ;;  %v4615_v47 = vld [vmem:[#allocation26_spill] sm:$0xff]  ;;  %v2103_v27 = vsel %vm26_vm0, %v4622_v63, 0.0  ;;  %v2105_v17 = vsel %vm26_vm0, %v4623_v14, 0.0 }
 0x296   :  { %1360 = vadd.xlane.f32.xlu1 %v2392_v22  ;;  %1411 = vst.msk [vmem:[#allocation3 + $0x48] sm:$0xff] %vm26_vm0, %v1379_v8  ;;  %v4616_v24 = vsub.f32 %v4615_v47, %v3510_v2 }
 0x297   :  { %2395 = vpow2.f32 %v1302_v36  ;;  %v1300_v23 = vmul.f32 1.442695, %v1239_v62  ;;  %v4625_v62 = vld [vmem:[#allocation41_spill] sm:$0xff] }
 0x298   :  { %2397 = vpow2.f32 %v974_v6  ;;  %v978_v15 = vmul.f32 1.442695, %v4616_v24  ;;  %v2097_v6 = vsel %vm26_vm0, %v4617_v40, 0.0  ;;  %v4629_v24 = vld [vmem:[#allocation61_spill] sm:$0xff] }
 0x299   :  { %2399 = vpow2.f32 %v1292_v42  ;;  %v2098_v2 = vadd.f32 %v2097_v6, %v2096_v43  ;;  %v4628_v43 = vld [vmem:[#allocation56_spill] sm:$0xff] }
 0x29a   :  { %v1208_v10 = vpop.permute.xlu0 %1207  ;;  %2401 = vpow2.f32 %v976_v1  ;;  %v2109_v47 = vsel %vm26_vm0, %v4628_v43, 0.0 }
 0x29b   :  { %2403 = vpow2.f32 %v1298_v7  ;;  %v1241_v57 = vsub.f32 %v4614_v20, %v1208_v10  ;;  %v1327_v26 = vpop.xlane.xlu1 %1326  ;;  %v2100_v42 = vadd.f32 %v2099_v41, %v2098_v2  ;;  %v1598_v2 = vld [vmem:[#allocation3 + $0x8] sm:$0xff] }
 0x29c   :  { %2405 = vpow2.f32 %v1300_v23  ;;  %v903_v23 = vld [vmem:[#allocation3 + $0x68] sm:$0xff] }
 0x29d   :  { %v2396_v11 = vpop.eup %2395  ;;  %v1304_v36 = vmul.f32 1.442695, %v1241_v57  ;;  %2407 = vpow2.f32 %v978_v15  ;;  %v2102_v1 = vadd.f32 %v2101_v37, %v2100_v42  ;;  %v4630_v15 = vld [vmem:[#allocation65_spill] sm:$0xff]  ;;  %v4633_v42 = vld [vmem:[#allocation60_spill] sm:$0xff] }
 0x29e   :  { %v2398_v16 = vpop.eup %2397  ;;  %1366 = vadd.xlane.f32.xlu1 %v2396_v11  ;;  %v4634_v37 = vld [vmem:[#allocation37_spill] sm:$0xff] }
 0x29f   :  { %v2400_v3 = vpop.eup %2399  ;;  %v1028_v0 = vmul.f32 %v2398_v16, %v900_v25  ;;  %2409 = vpow2.f32 %v1304_v36  ;;  %v2104_v31 = vadd.f32 %v2103_v27, %v2102_v1  ;;  %v4626_v16 = vsub.f32 %v4624_v21, %v4625_v62  ;;  %v4638_v1 = vld [vmem:[#allocation72_spill] sm:$0xff] }
 0x2a0   :  { %1356 = vadd.xlane.f32.xlu0 %v2400_v3  ;;  %v2402_v46 = vpop.eup %2401  ;;  %2411 = vpow2.f32 %v980_v39  ;;  %v4636_v59 = vsub.f32 %v4634_v37, %v4635_v34  ;;  %v4640_v21 = vld [vmem:[#allocation64_spill] sm:$0xff]  ;;  %v897_v34 = vld [vmem:[#allocation3 + $0x38] sm:$0xff] }
 0x2a1   :  { %v1380_v28 = vadd.f32 %v1327_v26, %v1028_v0  ;;  %v2404_v54 = vpop.eup %2403  ;;  %v1029_v22 = vmul.f32 %v2402_v46, %v901_v13  ;;  %v970_v10 = vmul.f32 1.442695, %v4626_v16  ;;  %v2106_v25 = vadd.f32 %v2105_v17, %v2104_v31  ;;  %v906_v17 = vld [vmem:[#allocation3 + $0x80] sm:$0xff]  ;;  %v1600_v16 = vld [vmem:[#allocation3 + $0x18] sm:$0xff] }
 0x2a2   :  { %v2406_v9 = vpop.eup %2405  ;;  %v968_v39 = vmul.f32 1.442695, %v4636_v59  ;;  %v2115_v62 = vsel %vm26_vm0, %v4640_v21, 0.0 }
 0x2a3   :  { %1412 = vst.msk [vmem:[#allocation3 + $0x50] sm:$0xff] %vm26_vm0, %v1380_v28  ;;  %1364 = vadd.xlane.f32.xlu2 %v2406_v9  ;;  %v1329_v33 = vpop.xlane.xlu1 %1328  ;;  %v2408_v52 = vpop.eup %2407  ;;  %2413 = vpow2.f32 %v970_v10  ;;  %v2108_v0 = vadd.f32 %v2107_v45, %v2106_v25  ;;  %v4631_v28 = vsub.f32 %v4629_v24, %v4630_v15  ;;  %v4632_v9 = vld [vmem:[#allocation55_spill] sm:$0xff]  ;;  %v4641_v25 = vld [vmem:[#allocation52_spill] sm:$0xff]  ;;  %v4642_v45 = vld [vmem:[#allocation57_spill] sm:$0xff] }
 0x2a4   :  { %v1381_v32 = vadd.f32 %v1329_v33, %v1029_v22  ;;  %v1030_v7 = vmul.f32 %v2408_v52, %v902_v30  ;;  %v2111_v13 = vsel %vm26_vm0, %v4632_v9, 0.0  ;;  %v1597_v52 = vld [vmem:[#allocation3] sm:$0xff] }
 0x2a5   :  { %v2410_v4 = vpop.eup %2409  ;;  %v986_v46 = vmul.f32 1.442695, %v4631_v28  ;;  %v2110_v36 = vadd.f32 %v2109_v47, %v2108_v0  ;;  %v4637_v30 = vld [vmem:[#allocation68_spill] sm:$0xff] }
 0x2a6   :  { %1413 = vst.msk [vmem:[#allocation3 + $0x58] sm:$0xff] %vm26_vm0, %v1381_v32  ;;  %v2412_v3 = vpop.eup %2411  ;;  %v2113_v32 = vsel %vm26_vm0, %v4633_v42, 0.0  ;;  %v4639_v27 = vsub.f32 %v4637_v30, %v4638_v1  ;;  %v1601_v28 = vld [vmem:[#allocation3 + $0x20] sm:$0xff] }
 0x2a7   :  { %v1031_v20 = vmul.f32 %v2412_v3, %v903_v23  ;;  %2415 = vpow2.f32 %v986_v46  ;;  %v2112_v22 = vadd.f32 %v2111_v13, %v2110_v36  ;;  %v1602_v36 = vld [vmem:[#allocation3 + $0x28] sm:$0xff] }
 0x2a8   :  { %1362 = vadd.xlane.f32.xlu0 %v2404_v54  ;;  %v898_v54 = vld [vmem:[#allocation3 + $0x40] sm:$0xff]  ;;  %2417 = vlog2.f32 %v1598_v2  ;;  %v1603_v2 = vld [vmem:[#allocation3 + $0x30] sm:$0xff] }
 0x2a9   :  { %v2414_v6 = vpop.eup %2413  ;;  %v2114_v31 = vadd.f32 %v2113_v32, %v2112_v22  ;;  %2419 = vlog2.f32 %v1597_v52 }
 0x2aa   :  { %v1026_v41 = vmul.f32 %v2414_v6, %v898_v54  ;;  %2421 = vpow2.f32 %v968_v39  ;;  %v4646_v39 = vld [vmem:[#allocation27_spill] sm:$0xff] }
 0x2ab   :  { %v1331_v8 = vpop.xlane.xlu1 %1330  ;;  %v2116_v23 = vadd.f32 %v2115_v62, %v2114_v31  ;;  %v937_v52 = vsub.f32 %v4646_v39, %v3521_v56  ;;  %v904_v39 = vld [vmem:[#allocation3 + $0x70] sm:$0xff] }
 0x2ac   :  { %v1382_v11 = vadd.f32 %v1331_v8, %v1030_v7  ;;  %v992_v7 = vmul.f32 1.442695, %v4639_v27  ;;  %v4647_v27 = vld [vmem:[#allocation71_spill] sm:$0xff] }
 0x2ad   :  { %v2416_v8 = vpop.eup %2415 }
 0x2ae   :  { %1414 = vst.msk [vmem:[#allocation3 + $0x60] sm:$0xff] %vm26_vm0, %v1382_v11  ;;  %v1599_v11 = vld [vmem:[#allocation3 + $0x10] sm:$0xff]  ;;  %2423 = vpow2.f32 %v992_v7  ;;  %v1034_v10 = vmul.f32 %v2416_v8, %v906_v17  ;;  %v2418_v3 = vpop.eup %2417  ;;  %v2121_v7 = vsel %vm26_vm0, %v4647_v27, 0.0  ;;  %v2550_v17 = vld [vmem:[#allocation2] sm:$0xff] }
 0x2af   :  { %2425 = vlog2.f32 %v1599_v11  ;;  %v2420_v15 = vpop.eup %2419  ;;  %v1632_v6 = vmul.f32 0.6931472, %v2418_v3 }
 0x2b0   :  { %1368 = vadd.xlane.f32.xlu0 %v2410_v4  ;;  %2427 = vlog2.f32 %v1600_v16  ;;  %v2422_v46 = vpop.eup %2421  ;;  %v1630_v37 = vmul.f32 0.6931472, %v2420_v15  ;;  %v2551_v15 = vld [vmem:[#allocation4 + $0x8] sm:$0xff] }
 0x2b1   :  { %v1025_v11 = vmul.f32 %v2422_v46, %v897_v34 }
 0x2b2   :  { %v1693_v62 = vadd.f32 %v2550_v17, %v1630_v37  ;;  %v2554_v37 = vld [vmem:[#allocation2 + $0x18] sm:$0xff] }
 0x2b3   :  { %v1333_v57 = vpop.xlane.xlu1 %1332 }
 0x2b4   :  { %v1383_v26 = vadd.f32 %v1333_v57, %v1031_v20  ;;  %v4643_v20 = vsub.f32 %v4641_v25, %v4642_v45  ;;  %v2424_v54 = vpop.eup %2423  ;;  %v984_v45 = vmul.f32 1.442695, %v937_v52  ;;  %v4652_v52 = vld [vmem:[#allocation74_spill] sm:$0xff] }
 0x2b5   :  { %v2426_v22 = vpop.eup %2425 }
 0x2b6   :  { %1415 = vst.msk [vmem:[#allocation3 + $0x68] sm:$0xff] %vm26_vm0, %v1383_v26  ;;  %v982_v57 = vmul.f32 1.442695, %v4643_v20  ;;  %v4644_v26 = vld [vmem:[#allocation62_spill] sm:$0xff]  ;;  %v2428_v59 = vpop.eup %2427  ;;  %v1634_v16 = vmul.f32 0.6931472, %v2426_v22 }
 0x2b7   :  { %v2117_v47 = vsel %vm26_vm0, %v4644_v26, 0.0  ;;  %v2553_v22 = vld [vmem:[#allocation2 + $0x10] sm:$0xff] }
 0x2b8   :  { %v2118_v13 = vadd.f32 %v2117_v47, %v2116_v23  ;;  %2429 = vpow2.f32 %v982_v57  ;;  %v4648_v57 = vld [vmem:[#allocation59_spill] sm:$0xff] }
 0x2b9   :  { %2431 = vlog2.f32 %v1601_v28 }
 0x2ba   :  { %2433 = vlog2.f32 %v1602_v36 }
 0x2bb   :  { %2435 = vlog2.f32 %v1603_v2  ;;  %v2552_v2 = vld [vmem:[#allocation4] sm:$0xff] }
 0x2bc   :  { %2437 = vpow2.f32 %v984_v45 }
 0x2be   :  { %v2430_v25 = vpop.eup %2429 }
 0x2bf   :  { %v2432_v20 = vpop.eup %2431  ;;  %v1032_v17 = vmul.f32 %v2430_v25, %v904_v39  ;;  %v2558_v25 = vld [vmem:[#allocation2 + $0x28] sm:$0xff] }
 0x2c5   :  { %v1323_v33 = vpop.xlane.xlu0 %1322 }
 0x2c6   :  { %v1378_v4 = vadd.f32 %v1323_v33, %v1026_v41  ;;  %v909_v41 = vld [vmem:[#allocation3 + $0x98] sm:$0xff] }
 0x2c7   :  { %v4645_v33 = vld [vmem:[#allocation67_spill] sm:$0xff]  ;;  %v1037_v1 = vmul.f32 %v2424_v54, %v909_v41  ;;  %v4651_v54 = vld [vmem:[#allocation69_spill] sm:$0xff]  ;;  %v1757_v41 = vsub.f32 %v1693_v62, %v2552_v2  ;;  %v4653_v62 = vld [vmem:[#allocation28_spill] sm:$0xff] }
 0x2c8   :  { %1410 = vst.msk [vmem:[#allocation3 + $0x40] sm:$0xff] %vm26_vm0, %v1378_v4  ;;  %v2119_v32 = vsel %vm26_vm0, %v4645_v33, 0.0  ;;  %v2549_v4 = vld [vmem:[#allocation2 + $0x8] sm:$0xff] }
 0x2c9   :  { %v1694_v30 = vadd.f32 %v2549_v4, %v1632_v6  ;;  %v2120_v8 = vadd.f32 %v2119_v32, %v2118_v13  ;;  %v2434_v6 = vpop.eup %2433  ;;  %v2123_v13 = vsel %vm26_vm0, %v4651_v54, 0.0  ;;  %v1695_v32 = vadd.f32 %v2553_v22, %v1634_v16 }
 0x2ca   :  { %v2436_v36 = vpop.eup %2435  ;;  %v2125_v4 = vsel %vm26_vm0, %v4652_v52, 0.0  ;;  %v940_v16 = vsub.f32 %v4653_v62, %v3543_v53 }
 0x2cb   :  { %v1758_v28 = vsub.f32 %v1694_v30, %v2551_v15  ;;  %v2122_v46 = vadd.f32 %v2121_v7, %v2120_v8  ;;  %v1640_v7 = vmul.f32 0.6931472, %v2434_v6 }
 0x2cd   :  { %v1339_v0 = vpop.xlane.xlu0 %1338  ;;  %v1321_v23 = vpop.xlane.xlu2 %1320  ;;  %v1886_v30 = vmul.f32 %v4607_v49, %v1758_v28  ;;  %v2124_v8 = vadd.f32 %v2123_v13, %v2122_v46  ;;  %v2557_v28 = vld [vmem:[#allocation2 + $0x20] sm:$0xff]  ;;  %v1698_v46 = vadd.f32 %v2558_v25, %v1640_v7  ;;  %v905_v7 = vld [vmem:[#allocation3 + $0x78] sm:$0xff] }
 0x2ce   :  { %v1386_v24 = vadd.f32 %v1339_v0, %v1034_v10  ;;  %v1636_v10 = vmul.f32 0.6931472, %v2428_v59  ;;  %v1377_v56 = vadd.f32 %v1321_v23, %v1025_v11  ;;  %v4649_v0 = vld [vmem:[#allocation63_spill] sm:$0xff]  ;;  %v1606_v11 = vld [vmem:[#allocation3 + $0x48] sm:$0xff] }
 0x2cf   :  { %v4650_v47 = vsub.f32 %v4648_v57, %v4649_v0  ;;  %v1605_v59 = vld [vmem:[#allocation3 + $0x40] sm:$0xff]  ;;  %v4654_v0 = vld [vmem:[#allocation66_spill] sm:$0xff]  ;;  %v1918_v15 = vsel %vm26_vm0, %v1886_v30, 0.0  ;;  %v2126_v2 = vadd.f32 %v2125_v4, %v2124_v8  ;;  %v4658_v4 = vld [vmem:[#allocation77_spill] sm:$0xff] }
 0x2d0   :  { %1418 = vst.msk [vmem:[#allocation3 + $0x80] sm:$0xff] %vm26_vm0, %v1386_v24  ;;  %v1696_v34 = vadd.f32 %v2554_v37, %v1636_v10  ;;  %v1885_v10 = vmul.f32 %v4606_v58, %v1757_v41  ;;  %v4657_v58 = vld [vmem:[#allocation78_spill] sm:$0xff]  ;;  %v2129_v8 = vsel %vm26_vm0, %v4658_v4, 0.0  ;;  %v4661_v25 = vld [vmem:[#allocation76_spill] sm:$0xff] }
 0x2d1   :  { %v988_v24 = vmul.f32 1.442695, %v4650_v47  ;;  %1409 = vst.msk [vmem:[#allocation3 + $0x38] sm:$0xff] %vm26_vm0, %v1377_v56  ;;  %v2556_v56 = vld [vmem:[#allocation4 + $0x18] sm:$0xff]  ;;  %v2127_v13 = vsel %vm26_vm0, %v4657_v58, 0.0  ;;  %v2559_v41 = vld [vmem:[#allocation2 + $0x30] sm:$0xff] }
 0x2d2   :  { %v1760_v57 = vsub.f32 %v1696_v34, %v2556_v56  ;;  %v4655_v47 = vld [vmem:[#allocation70_spill] sm:$0xff]  ;;  %v990_v34 = vmul.f32 1.442695, %v940_v16  ;;  %v2128_v16 = vadd.f32 %v2127_v13, %v2126_v2 }
 0x2d3   :  { %2439 = vpow2.f32 %v988_v24  ;;  %v4656_v49 = vsub.f32 %v4654_v0, %v4655_v47  ;;  %v1608_v0 = vld [vmem:[#allocation3 + $0x58] sm:$0xff] }
 0x2d4   :  { %2441 = vlog2.f32 %v1605_v59  ;;  %v1917_v59 = vsel %vm26_vm0, %v1885_v10, 0.0  ;;  %v1888_v30 = vmul.f32 %v4613_v55, %v1760_v57 }
 0x2d5   :  { %v1345_v31 = vpop.xlane.xlu0 %1344  ;;  %v1335_v45 = vpop.xlane.xlu2 %1334  ;;  %2443 = vlog2.f32 %v1606_v11 }
 0x2d6   :  { %v1389_v3 = vadd.f32 %v1345_v31, %v1037_v1  ;;  %v1638_v1 = vmul.f32 0.6931472, %v2432_v20  ;;  %v1642_v31 = vmul.f32 0.6931472, %v2436_v36  ;;  %v994_v20 = vmul.f32 1.442695, %v4656_v49  ;;  %v2438_v36 = vpop.eup %2437 }
 0x2d7   :  { %v1384_v24 = vadd.f32 %v1335_v45, %v1032_v17  ;;  %v1919_v17 = vadd.f32 %v1918_v15, %v1917_v59  ;;  %v2562_v45 = vld [vmem:[#allocation4 + $0x30] sm:$0xff]  ;;  %v1922_v47 = vsel %vm26_vm0, %v1888_v30, 0.0  ;;  %v4659_v15 = vld [vmem:[#allocation31_spill] sm:$0xff] }
 0x2d8   :  { %1421 = vst.msk [vmem:[#allocation3 + $0x98] sm:$0xff] %vm26_vm0, %v1389_v3  ;;  %v2555_v3 = vld [vmem:[#allocation4 + $0x10] sm:$0xff]  ;;  %v1697_v6 = vadd.f32 %v2557_v28, %v1638_v1  ;;  %v1604_v53 = vld [vmem:[#allocation3 + $0x38] sm:$0xff]  ;;  %v1699_v22 = vadd.f32 %v2559_v41, %v1642_v31  ;;  %v907_v1 = vld [vmem:[#allocation3 + $0x88] sm:$0xff]  ;;  %v943_v28 = vsub.f32 %v4659_v15, %v3590_v38 }
 0x2d9   :  { %v1759_v23 = vsub.f32 %v1695_v32, %v2555_v3  ;;  %v1607_v32 = vld [vmem:[#allocation3 + $0x50] sm:$0xff]  ;;  %2445 = vlog2.f32 %v1604_v53  ;;  %1416 = vst.msk [vmem:[#allocation3 + $0x70] sm:$0xff] %vm26_vm0, %v1384_v24  ;;  %v2440_v37 = vpop.eup %2439  ;;  %v2560_v31 = vld [vmem:[#allocation4 + $0x20] sm:$0xff]  ;;  %v2561_v3 = vld [vmem:[#allocation4 + $0x28] sm:$0xff] }
 0x2da   :  { %v2442_v11 = vpop.eup %2441  ;;  %2447 = vpow2.f32 %v994_v20  ;;  %v1761_v62 = vsub.f32 %v1697_v6, %v2560_v31  ;;  %v1762_v56 = vsub.f32 %v1698_v46, %v2561_v3  ;;  %v1763_v10 = vsub.f32 %v1699_v22, %v2562_v45  ;;  %v4660_v6 = vld [vmem:[#allocation73_spill] sm:$0xff]  ;;  %v1609_v59 = vld [vmem:[#allocation3 + $0x60] sm:$0xff] }
 0x2db   :  { %v1887_v39 = vmul.f32 %v4611_v48, %v1759_v23  ;;  %2449 = vlog2.f32 %v1607_v32  ;;  %v1035_v48 = vmul.f32 %v2440_v37, %v907_v1  ;;  %v1033_v23 = vmul.f32 %v2438_v36, %v905_v7  ;;  %v2444_v55 = vpop.eup %2443  ;;  %v2563_v1 = vld [vmem:[#allocation2 + $0x40] sm:$0xff] }
 0x2dc   :  { %2451 = vpow2.f32 %v990_v34  ;;  %v1646_v49 = vmul.f32 0.6931472, %v2442_v11  ;;  %v4662_v46 = vsub.f32 %v4660_v6, %v4661_v25  ;;  %v1889_v36 = vmul.f32 %v4617_v40, %v1761_v62  ;;  %v2564_v11 = vld [vmem:[#allocation2 + $0x38] sm:$0xff]  ;;  %v910_v40 = vld [vmem:[#allocation3 + $0xa0] sm:$0xff] }
 0x2dd   :  { %v1920_v57 = vsel %vm26_vm0, %v1887_v39, 0.0  ;;  %v1341_v20 = vpop.xlane.xlu2 %1340  ;;  %v1890_v41 = vmul.f32 %v4618_v29, %v1762_v56  ;;  %2453 = vlog2.f32 %v1608_v0  ;;  %v1891_v34 = vmul.f32 %v4619_v5, %v1763_v10  ;;  %v4663_v62 = vld [vmem:[#allocation84_spill] sm:$0xff]  ;;  %v2565_v0 = vld [vmem:[#allocation4 + $0x38] sm:$0xff] }
 0x2de   :  { %v1000_v53 = vmul.f32 1.442695, %v4662_v46  ;;  %v1921_v13 = vadd.f32 %v1920_v57, %v1919_v17  ;;  %v1387_v2 = vadd.f32 %v1341_v20, %v1035_v48  ;;  %v1648_v30 = vmul.f32 0.6931472, %v2444_v55  ;;  %v4664_v55 = vld [vmem:[#allocation80_spill] sm:$0xff]  ;;  %v908_v20 = vld [vmem:[#allocation3 + $0x90] sm:$0xff] }
 0x2df   :  { %v2446_v24 = vpop.eup %2445  ;;  %v1701_v7 = vadd.f32 %v2563_v1, %v1646_v49  ;;  %v2133_v29 = vsel %vm26_vm0, %v4663_v62, 0.0  ;;  %v2130_v3 = vadd.f32 %v2129_v8, %v2128_v16  ;;  %v996_v56 = vmul.f32 1.442695, %v943_v28  ;;  %v1610_v28 = vld [vmem:[#allocation3 + $0x68] sm:$0xff]  ;;  %v2567_v6 = vld [vmem:[#allocation4 + $0x40] sm:$0xff] }
 0x2e0   :  { %v1644_v22 = vmul.f32 0.6931472, %v2446_v24  ;;  %v2448_v32 = vpop.eup %2447  ;;  %v1923_v37 = vadd.f32 %v1922_v47, %v1921_v13  ;;  %1419 = vst.msk [vmem:[#allocation3 + $0x88] sm:$0xff] %vm26_vm0, %v1387_v2  ;;  %2455 = vpow2.f32 %v1000_v53  ;;  %v1924_v5 = vsel %vm26_vm0, %v1889_v36, 0.0  ;;  %v2566_v24 = vld [vmem:[#allocation2 + $0x48] sm:$0xff]  ;;  %v4665_v13 = vld [vmem:[#allocation79_spill] sm:$0xff] }
 0x2e1   :  { %v2450_v39 = vpop.eup %2449  ;;  %v1926_v10 = vsel %vm26_vm0, %v1890_v41, 0.0  ;;  %2457 = vlog2.f32 %v1609_v59  ;;  %v1038_v49 = vmul.f32 %v2448_v32, %v910_v40  ;;  %v1928_v16 = vsel %vm26_vm0, %v1891_v34, 0.0  ;;  %v4666_v2 = vld [vmem:[#allocation82_spill] sm:$0xff] }
 0x2e2   :  { %v1700_v17 = vadd.f32 %v2564_v11, %v1644_v22  ;;  %v2452_v45 = vpop.eup %2451  ;;  %v1925_v57 = vadd.f32 %v1924_v5, %v1923_v37  ;;  %v1650_v47 = vmul.f32 0.6931472, %v2450_v39  ;;  %v1702_v15 = vadd.f32 %v2566_v24, %v1648_v30  ;;  %v4668_v59 = vld [vmem:[#allocation38_spill] sm:$0xff]  ;;  %v2569_v5 = vld [vmem:[#allocation4 + $0x48] sm:$0xff] }
 0x2e3   :  { %v2454_v8 = vpop.eup %2453  ;;  %v1765_v25 = vsub.f32 %v1701_v7, %v2567_v6  ;;  %2459 = vpow2.f32 %v996_v56  ;;  %v4667_v36 = vsub.f32 %v4665_v13, %v4666_v2  ;;  %v1036_v39 = vmul.f32 %v2452_v45, %v908_v20  ;;  %v2568_v7 = vld [vmem:[#allocation2 + $0x50] sm:$0xff]  ;;  %v913_v40 = vld [vmem:[#allocation3 + $0xb8] sm:$0xff] }
 0x2e4   :  { %v1764_v48 = vsub.f32 %v1700_v17, %v2565_v0  ;;  %v1927_v22 = vadd.f32 %v1926_v10, %v1925_v57  ;;  %v1703_v11 = vadd.f32 %v2568_v7, %v1650_v47  ;;  %2461 = vlog2.f32 %v1610_v28  ;;  %v1611_v17 = vld [vmem:[#allocation3 + $0x70] sm:$0xff]  ;;  %v4669_v0 = vld [vmem:[#allocation83_spill] sm:$0xff] }
 0x2e5   :  { %v1006_v41 = vmul.f32 1.442695, %v4667_v36  ;;  %v1893_v10 = vmul.f32 %v4623_v14, %v1765_v25  ;;  %v2135_v45 = vsel %vm26_vm0, %v4669_v0, 0.0  ;;  %v2571_v24 = vld [vmem:[#allocation2 + $0x58] sm:$0xff]  ;;  %v911_v14 = vld [vmem:[#allocation3 + $0xa8] sm:$0xff] }
 0x2e6   :  { %v1892_v46 = vmul.f32 %v4622_v63, %v1764_v48  ;;  %v2456_v30 = vpop.eup %2455  ;;  %v1929_v1 = vadd.f32 %v1928_v16, %v1927_v22  ;;  %v1652_v63 = vmul.f32 0.6931472, %v2454_v8  ;;  %v2570_v8 = vld [vmem:[#allocation4 + $0x50] sm:$0xff]  ;;  %v4670_v36 = vld [vmem:[#allocation75_spill] sm:$0xff] }
 0x2e7   :  { %v2458_v56 = vpop.eup %2457  ;;  %2463 = vpow2.f32 %v1006_v41  ;;  %v1767_v16 = vsub.f32 %v1703_v11, %v2570_v8  ;;  %v1932_v25 = vsel %vm26_vm0, %v1893_v10, 0.0  ;;  %v944_v41 = vsub.f32 %v4670_v36, %v3906_v61  ;;  %v1613_v22 = vld [vmem:[#allocation3 + $0x80] sm:$0xff]  ;;  %v4672_v10 = vld [vmem:[#allocation46_spill] sm:$0xff]  ;;  %v4677_v36 = vld [vmem:[#allocation89_spill] sm:$0xff] }
 0x2e8   :  { %v1930_v34 = vsel %vm26_vm0, %v1892_v46, 0.0  ;;  %2465 = vlog2.f32 %v1611_v17  ;;  %v1654_v28 = vmul.f32 0.6931472, %v2458_v56  ;;  %v1614_v56 = vld [vmem:[#allocation3 + $0x88] sm:$0xff]  ;;  %v2574_v8 = vld [vmem:[#allocation4 + $0x60] sm:$0xff] }
 0x2e9   :  { %v1337_v38 = vpop.xlane.xlu1 %1336  ;;  %v1931_v48 = vadd.f32 %v1930_v34, %v1929_v1  ;;  %v2460_v20 = vpop.eup %2459  ;;  %v1895_v34 = vmul.f32 %v4628_v43, %v1767_v16  ;;  %v4673_v43 = vld [vmem:[#allocation51_spill] sm:$0xff] }
 0x2ea   :  { %v1385_v31 = vadd.f32 %v1337_v38, %v1033_v23  ;;  %v2131_v23 = vsel %vm26_vm0, %v4664_v55, 0.0  ;;  %v946_v38 = vsub.f32 %v4668_v59, %v3647_v12  ;;  %v4671_v59 = vld [vmem:[#allocation86_spill] sm:$0xff] }
 0x2eb   :  { %v2132_v32 = vadd.f32 %v2131_v23, %v2130_v3  ;;  %v1766_v3 = vsub.f32 %v1702_v15, %v2569_v5  ;;  %v1704_v15 = vadd.f32 %v2571_v24, %v1652_v63 }
 0x2ec   :  { %1417 = vst.msk [vmem:[#allocation3 + $0x78] sm:$0xff] %vm26_vm0, %v1385_v31  ;;  %v1347_v53 = vpop.xlane.xlu2 %1346  ;;  %v1002_v47 = vmul.f32 1.442695, %v946_v38  ;;  %v2137_v38 = vsel %vm26_vm0, %v4671_v59, 0.0 }
 0x2ed   :  { %v1390_v37 = vadd.f32 %v1347_v53, %v1038_v49  ;;  %v2134_v57 = vadd.f32 %v2133_v29, %v2132_v32  ;;  %v1041_v49 = vmul.f32 %v2456_v30, %v913_v40  ;;  %v1894_v6 = vmul.f32 %v4627_v19, %v1766_v3  ;;  %v2462_v53 = vpop.eup %2461  ;;  %v2572_v19 = vld [vmem:[#allocation4 + $0x58] sm:$0xff]  ;;  %v2573_v30 = vld [vmem:[#allocation2 + $0x60] sm:$0xff] }
 0x2ee   :  { %v1933_v29 = vadd.f32 %v1932_v25, %v1931_v48  ;;  %v2464_v32 = vpop.eup %2463  ;;  %v1705_v1 = vadd.f32 %v2573_v30, %v1654_v28  ;;  %v1656_v17 = vmul.f32 0.6931472, %v2462_v53  ;;  %v4675_v48 = vld [vmem:[#allocation54_spill] sm:$0xff]  ;;  %v2575_v28 = vld [vmem:[#allocation2 + $0x68] sm:$0xff]  ;;  %v914_v53 = vld [vmem:[#allocation3 + $0xc0] sm:$0xff] }
 0x2ef   :  { %1422 = vst.msk [vmem:[#allocation3 + $0xa0] sm:$0xff] %vm26_vm0, %v1390_v37  ;;  %v2136_v2 = vadd.f32 %v2135_v45, %v2134_v57  ;;  %v1039_v37 = vmul.f32 %v2460_v20, %v911_v14  ;;  %v2466_v11 = vpop.eup %2465  ;;  %v1934_v63 = vsel %vm26_vm0, %v1894_v6, 0.0  ;;  %v998_v57 = vmul.f32 1.442695, %v944_v41 }
 0x2f0   :  { %v1935_v5 = vadd.f32 %v1934_v63, %v1933_v29  ;;  %v1769_v16 = vsub.f32 %v1705_v1, %v2574_v8  ;;  %v1706_v14 = vadd.f32 %v2575_v28, %v1656_v17  ;;  %v1658_v6 = vmul.f32 0.6931472, %v2466_v11  ;;  %v2578_v1 = vld [vmem:[#allocation2 + $0x78] sm:$0xff] }
 0x2f1   :  { %v1343_v31 = vpop.xlane.xlu1 %1342  ;;  %v2138_v3 = vadd.f32 %v2137_v38, %v2136_v2 }
 0x2f2   :  { %v1388_v12 = vadd.f32 %v1343_v31, %v1036_v39  ;;  %v1768_v39 = vsub.f32 %v1704_v15, %v2572_v19  ;;  %v916_v31 = vld [vmem:[#allocation3 + $0xd0] sm:$0xff]  ;;  %v2576_v19 = vld [vmem:[#allocation4 + $0x68] sm:$0xff] }
 0x2f3   :  { %v1612_v23 = vld [vmem:[#allocation3 + $0x78] sm:$0xff]  ;;  %v1044_v24 = vmul.f32 %v2464_v32, %v916_v31 }
 0x2f4   :  { %1420 = vst.msk [vmem:[#allocation3 + $0x90] sm:$0xff] %vm26_vm0, %v1388_v12  ;;  %2467 = vlog2.f32 %v1612_v23  ;;  %v1353_v46 = vpop.xlane.xlu2 %1352  ;;  %v4674_v12 = vsub.f32 %v4672_v10, %v4673_v43  ;;  %v952_v23 = vsub.f32 %v4675_v48, %v3766_v18  ;;  %v1896_v20 = vmul.f32 %v4632_v9, %v1768_v39  ;;  %v4676_v18 = vld [vmem:[#allocation81_spill] sm:$0xff]  ;;  %v1616_v32 = vld [vmem:[#allocation3 + $0x98] sm:$0xff] }
 0x2f5   :  { %v1393_v13 = vadd.f32 %v1353_v46, %v1041_v49  ;;  %2469 = vpow2.f32 %v1002_v47  ;;  %v1936_v49 = vsel %vm26_vm0, %v1895_v34, 0.0  ;;  %v947_v29 = vsub.f32 %v4676_v18, %v3950_v50  ;;  %v2577_v39 = vld [vmem:[#allocation2 + $0x70] sm:$0xff] }
 0x2f6   :  { %2471 = vlog2.f32 %v1613_v22  ;;  %v1008_v45 = vmul.f32 1.442695, %v4674_v12  ;;  %v1937_v2 = vadd.f32 %v1936_v49, %v1935_v5  ;;  %v2139_v9 = vsel %vm26_vm0, %v4677_v36, 0.0  ;;  %v2579_v48 = vld [vmem:[#allocation4 + $0x70] sm:$0xff]  ;;  %v917_v49 = vld [vmem:[#allocation3 + $0xd8] sm:$0xff] }
 0x2f7   :  { %1425 = vst.msk [vmem:[#allocation3 + $0xb8] sm:$0xff] %vm26_vm0, %v1393_v13  ;;  %2473 = vlog2.f32 %v1614_v56  ;;  %v1014_v22 = vmul.f32 1.442695, %v952_v23  ;;  %v1897_v34 = vmul.f32 %v4633_v42, %v1769_v16  ;;  %v1770_v50 = vsub.f32 %v1706_v14, %v2576_v19  ;;  %v1617_v42 = vld [vmem:[#allocation3 + $0xa0] sm:$0xff] }
 0x2f8   :  { %v1707_v30 = vadd.f32 %v2577_v39, %v1658_v6  ;;  %v2140_v11 = vadd.f32 %v2139_v9, %v2138_v3  ;;  %v1004_v63 = vmul.f32 1.442695, %v947_v29  ;;  %v2581_v14 = vld [vmem:[#allocation2 + $0x80] sm:$0xff] }
 0x2f9   :  { %v1349_v7 = vpop.xlane.xlu1 %1348 }
 0x2fa   :  { %v1391_v61 = vadd.f32 %v1349_v7, %v1039_v37  ;;  %v2468_v40 = vpop.eup %2467  ;;  %v1938_v37 = vsel %vm26_vm0, %v1896_v20, 0.0  ;;  %v1771_v23 = vsub.f32 %v1707_v30, %v2579_v48  ;;  %v1940_v20 = vsel %vm26_vm0, %v1897_v34, 0.0  ;;  %v4682_v34 = vld [vmem:[#allocation93_spill] sm:$0xff] }
 0x2fb   :  { %v1615_v47 = vld [vmem:[#allocation3 + $0x90] sm:$0xff]  ;;  %v2470_v15 = vpop.eup %2469  ;;  %v1660_v25 = vmul.f32 0.6931472, %v2468_v40  ;;  %v4678_v40 = vld [vmem:[#allocation88_spill] sm:$0xff]  ;;  %v2145_v19 = vsel %vm26_vm0, %v4682_v34, 0.0 }
 0x2fc   :  { %1423 = vst.msk [vmem:[#allocation3 + $0xa8] sm:$0xff] %vm26_vm0, %v1391_v61  ;;  %v1359_v46 = vpop.xlane.xlu2 %1358  ;;  %2475 = vlog2.f32 %v1615_v47  ;;  %v2472_v41 = vpop.eup %2471  ;;  %v1042_v38 = vmul.f32 %v2470_v15, %v914_v53  ;;  %v1939_v61 = vadd.f32 %v1938_v37, %v1937_v2  ;;  %v2141_v56 = vsel %vm26_vm0, %v4678_v40, 0.0  ;;  %v4680_v53 = vld [vmem:[#allocation85_spill] sm:$0xff]  ;;  %v4681_v2 = vld [vmem:[#allocation87_spill] sm:$0xff] }
 0x2fd   :  { %v1396_v13 = vadd.f32 %v1359_v46, %v1044_v24  ;;  %2477 = vpow2.f32 %v1008_v45  ;;  %v1708_v7 = vadd.f32 %v2578_v1, %v1660_v25  ;;  %v2474_v31 = vpop.eup %2473  ;;  %v1662_v5 = vmul.f32 0.6931472, %v2472_v41  ;;  %v4679_v24 = vld [vmem:[#allocation90_spill] sm:$0xff]  ;;  %v2582_v1 = vld [vmem:[#allocation2 + $0x88] sm:$0xff] }
 0x2fe   :  { %2479 = vpow2.f32 %v998_v57  ;;  %v1898_v45 = vmul.f32 %v4640_v21, %v1770_v50  ;;  %v2580_v57 = vld [vmem:[#allocation4 + $0x78] sm:$0xff]  ;;  %v2142_v16 = vadd.f32 %v2141_v56, %v2140_v11  ;;  %v2143_v15 = vsel %vm26_vm0, %v4679_v24, 0.0  ;;  %v912_v46 = vld [vmem:[#allocation3 + $0xb0] sm:$0xff] }
 0x2ff   :  { %1428 = vst.msk [vmem:[#allocation3 + $0xd0] sm:$0xff] %vm26_vm0, %v1396_v13  ;;  %2481 = vlog2.f32 %v1616_v32  ;;  %v1772_v3 = vsub.f32 %v1708_v7, %v2580_v57  ;;  %v1941_v28 = vadd.f32 %v1940_v20, %v1939_v61  ;;  %v1709_v6 = vadd.f32 %v2581_v14, %v1662_v5  ;;  %v1620_v41 = vld [vmem:[#allocation3 + $0xb8] sm:$0xff]  ;;  %v2584_v61 = vld [vmem:[#allocation4 + $0x80] sm:$0xff] }
 0x300   :  { %2483 = vpow2.f32 %v1014_v22  ;;  %v1664_v21 = vmul.f32 0.6931472, %v2474_v31  ;;  %v951_v18 = vsub.f32 %v4680_v53, %v3988_v35  ;;  %v950_v9 = vsub.f32 %v4681_v2, %v3991_v44  ;;  %v2583_v44 = vld [vmem:[#allocation2 + $0x90] sm:$0xff] }
 0x301   :  { %v1355_v17 = vpop.xlane.xlu1 %1354  ;;  %2485 = vpow2.f32 %v1004_v63  ;;  %v1899_v22 = vmul.f32 %v4644_v26, %v1771_v23  ;;  %v1900_v37 = vmul.f32 %v4645_v33, %v1772_v3  ;;  %v1942_v32 = vsel %vm26_vm0, %v1898_v45, 0.0  ;;  %v920_v23 = vld [vmem:[#allocation3 + $0xf0] sm:$0xff]  ;;  %v4683_v3 = vld [vmem:[#allocation92_spill] sm:$0xff] }
 0x302   :  { %v1394_v10 = vadd.f32 %v1355_v17, %v1042_v38  ;;  %v2476_v43 = vpop.eup %2475  ;;  %2487 = vlog2.f32 %v1617_v42  ;;  %v2144_v50 = vadd.f32 %v2143_v15, %v2142_v16  ;;  %v1943_v30 = vadd.f32 %v1942_v32, %v1941_v28  ;;  %v2586_v15 = vld [vmem:[#allocation4 + $0x90] sm:$0xff] }
 0x303   :  { %v2478_v12 = vpop.eup %2477  ;;  %v1618_v47 = vld [vmem:[#allocation3 + $0xa8] sm:$0xff]  ;;  %v1666_v25 = vmul.f32 0.6931472, %v2476_v43  ;;  %v1710_v7 = vadd.f32 %v2582_v1, %v1664_v21  ;;  %v1773_v26 = vsub.f32 %v1709_v6, %v2584_v61  ;;  %v1012_v33 = vmul.f32 1.442695, %v951_v18  ;;  %v4684_v6 = vld [vmem:[#allocation91_spill] sm:$0xff] }
 0x304   :  { %1426 = vst.msk [vmem:[#allocation3 + $0xc0] sm:$0xff] %vm26_vm0, %v1394_v10  ;;  %v2480_v8 = vpop.eup %2479  ;;  %2489 = vlog2.f32 %v1618_v47  ;;  %v1045_v29 = vmul.f32 %v2478_v12, %v917_v49  ;;  %v1010_v43 = vmul.f32 1.442695, %v950_v9  ;;  %v1944_v42 = vsel %vm26_vm0, %v1899_v22, 0.0  ;;  %v915_v49 = vld [vmem:[#allocation3 + $0xc8] sm:$0xff]  ;;  %v2588_v1 = vld [vmem:[#allocation4 + $0x98] sm:$0xff] }
 0x305   :  { %v2482_v13 = vpop.eup %2481  ;;  %v1040_v35 = vmul.f32 %v2480_v8, %v912_v46  ;;  %v1351_v63 = vpop.xlane.xlu0 %1350  ;;  %v1711_v17 = vadd.f32 %v2583_v44, %v1666_v25  ;;  %2491 = vlog2.f32 %v1620_v41  ;;  %v1946_v12 = vsel %vm26_vm0, %v1900_v37, 0.0  ;;  %v2585_v8 = vld [vmem:[#allocation4 + $0x88] sm:$0xff]  ;;  %v2587_v25 = vld [vmem:[#allocation2 + $0x98] sm:$0xff] }
 0x306   :  { %v2484_v38 = vpop.eup %2483  ;;  %v1668_v56 = vmul.f32 0.6931472, %v2482_v13  ;;  %v2146_v48 = vadd.f32 %v2145_v19, %v2144_v50  ;;  %v1945_v57 = vadd.f32 %v1944_v42, %v1943_v30  ;;  %v2147_v47 = vsel %vm26_vm0, %v4683_v3, 0.0  ;;  %v4685_v41 = vld [vmem:[#allocation94_spill] sm:$0xff] }
 0x307   :  { %v2486_v31 = vpop.eup %2485  ;;  %v1392_v5 = vadd.f32 %v1351_v63, %v1040_v35  ;;  %v1774_v16 = vsub.f32 %v1710_v7, %v2585_v8  ;;  %v1775_v28 = vsub.f32 %v1711_v17, %v2586_v15  ;;  %v1901_v14 = vmul.f32 %v4647_v27, %v1773_v26  ;;  %v1623_v19 = vld [vmem:[#allocation3 + $0xd0] sm:$0xff]  ;;  %v2589_v17 = vld [vmem:[#allocation2 + $0xa0] sm:$0xff]  ;;  %v2590_v26 = vld [vmem:[#allocation2 + $0xa8] sm:$0xff] }
 0x308   :  { %v2488_v10 = vpop.eup %2487  ;;  %2493 = vpow2.f32 %v1012_v33  ;;  %v953_v21 = vsub.f32 %v4684_v6, %v4032_v51  ;;  %v1712_v46 = vadd.f32 %v2587_v25, %v1668_v56  ;;  %v1947_v53 = vadd.f32 %v1946_v12, %v1945_v57  ;;  %v919_v56 = vld [vmem:[#allocation3 + $0xe8] sm:$0xff]  ;;  %v2591_v57 = vld [vmem:[#allocation2 + $0xb8] sm:$0xff] }
 0x309   :  { %v1361_v39 = vpop.xlane.xlu1 %1360  ;;  %1424 = vst.msk [vmem:[#allocation3 + $0xb0] sm:$0xff] %vm26_vm0, %v1392_v5  ;;  %2495 = vpow2.f32 %v1010_v43  ;;  %v1048_v18 = vmul.f32 %v2484_v38, %v920_v23  ;;  %v2148_v9 = vadd.f32 %v2147_v47, %v2146_v48  ;;  %v2149_v22 = vsel %vm26_vm0, %v4685_v41, 0.0  ;;  %v2593_v8 = vld [vmem:[#allocation4 + $0xa8] sm:$0xff] }
 0x30a   :  { %v1397_v11 = vadd.f32 %v1361_v39, %v1045_v29  ;;  %v2490_v45 = vpop.eup %2489  ;;  %v1670_v29 = vmul.f32 0.6931472, %v2488_v10  ;;  %v1043_v32 = vmul.f32 %v2486_v31, %v915_v49  ;;  %v1902_v51 = vmul.f32 %v4651_v54, %v1774_v16  ;;  %v2592_v49 = vld [vmem:[#allocation4 + $0xa0] sm:$0xff] }
 0x30b   :  { %v1621_v20 = vld [vmem:[#allocation3 + $0xc0] sm:$0xff]  ;;  %v1672_v13 = vmul.f32 0.6931472, %v2490_v45  ;;  %v2492_v2 = vpop.eup %2491  ;;  %v1903_v39 = vmul.f32 %v4652_v52, %v1775_v28  ;;  %v1948_v35 = vsel %vm26_vm0, %v1901_v14, 0.0  ;;  %v1016_v38 = vmul.f32 1.442695, %v953_v21 }
 0x30c   :  { %1429 = vst.msk [vmem:[#allocation3 + $0xd8] sm:$0xff] %vm26_vm0, %v1397_v11  ;;  %2497 = vlog2.f32 %v1621_v20  ;;  %v1776_v7 = vsub.f32 %v1712_v46, %v2588_v1  ;;  %v1949_v11 = vadd.f32 %v1948_v35, %v1947_v53  ;;  %v1676_v44 = vmul.f32 0.6931472, %v2492_v2  ;;  %v918_v52 = vld [vmem:[#allocation3 + $0xe0] sm:$0xff] }
 0x30d   :  { %2499 = vlog2.f32 %v1623_v19  ;;  %v1713_v61 = vadd.f32 %v2589_v17, %v1670_v29  ;;  %v1714_v31 = vadd.f32 %v2590_v26, %v1672_v13  ;;  %v1950_v10 = vsel %vm26_vm0, %v1902_v51, 0.0  ;;  %v2596_v1 = vld [vmem:[#allocation2 + $0xc0] sm:$0xff] }
 0x30e   :  { %v2494_v33 = vpop.eup %2493  ;;  %v1952_v43 = vsel %vm26_vm0, %v1903_v39, 0.0  ;;  %v2151_v12 = vsel %vm26_vm0, %v4060_v60, 0.0  ;;  %v2150_v45 = vadd.f32 %v2149_v22, %v2148_v9  ;;  %v1904_v48 = vmul.f32 %v4657_v58, %v1776_v7  ;;  %v2594_v22 = vld [vmem:[#allocation4 + $0xb8] sm:$0xff] }
 0x30f   :  { %v2496_v54 = vpop.eup %2495  ;;  %v1951_v23 = vadd.f32 %v1950_v10, %v1949_v11  ;;  %v1716_v47 = vadd.f32 %v2591_v57, %v1676_v44  ;;  %v1777_v20 = vsub.f32 %v1713_v61, %v2592_v49  ;;  %v1778_v16 = vsub.f32 %v1714_v31, %v2593_v8  ;;  %v921_v39 = vld [vmem:[#allocation3 + $0xf8] sm:$0xff]  ;;  %v2597_v44 = vld [vmem:[#allocation4 + $0xb0] sm:$0xff] }
 0x310   :  { %v1619_v63 = vld [vmem:[#allocation3 + $0xb0] sm:$0xff]  ;;  %v1046_v15 = vmul.f32 %v2496_v54, %v918_v52  ;;  %v1047_v28 = vmul.f32 %v2494_v33, %v919_v56  ;;  %v1954_v13 = vsel %vm26_vm0, %v1904_v48, 0.0 }
 0x311   :  { %v1367_v37 = vpop.xlane.xlu1 %1366  ;;  %2501 = vlog2.f32 %v1619_v63  ;;  %v1953_v14 = vadd.f32 %v1952_v43, %v1951_v23  ;;  %v1906_v19 = vmul.f32 %v4664_v55, %v1778_v16  ;;  %v2598_v31 = vld [vmem:[#allocation2 + $0xd0] sm:$0xff] }
 0x312   :  { %v1400_v27 = vadd.f32 %v1367_v37, %v1048_v18  ;;  %v2498_v42 = vpop.eup %2497  ;;  %2503 = vpow2.f32 %v1016_v38  ;;  %v2152_v18 = vadd.f32 %v2151_v12, %v2150_v45  ;;  %v1780_v37 = vsub.f32 %v1716_v47, %v2594_v22  ;;  %v2595_v38 = vld [vmem:[#allocation2 + $0xb0] sm:$0xff] }
 0x313   :  { %v1357_v50 = vpop.xlane.xlu0 %1356  ;;  %v1624_v5 = vld [vmem:[#allocation3 + $0xd8] sm:$0xff]  ;;  %v2500_v6 = vpop.eup %2499  ;;  %v1678_v46 = vmul.f32 0.6931472, %v2498_v42  ;;  %v1958_v61 = vsel %vm26_vm0, %v1906_v19, 0.0 }
 0x314   :  { %v1395_v30 = vadd.f32 %v1357_v50, %v1043_v32  ;;  %1432 = vst.msk [vmem:[#allocation3 + $0xf0] sm:$0xff] %vm26_vm0, %v1400_v27  ;;  %2505 = vlog2.f32 %v1624_v5  ;;  %v1905_v32 = vmul.f32 %v4658_v4, %v1777_v20  ;;  %v1682_v27 = vmul.f32 0.6931472, %v2500_v6  ;;  %v2599_v5 = vld [vmem:[#allocation4 + $0xc0] sm:$0xff]  ;;  %v2600_v20 = vld [vmem:[#allocation4 + $0xd0] sm:$0xff] }
 0x315   :  { %v1955_v50 = vadd.f32 %v1954_v13, %v1953_v14  ;;  %v1717_v7 = vadd.f32 %v2596_v1, %v1678_v46  ;;  %v2153_v63 = vrot.slane %v2152_v18, 4  ;;  %v1908_v55 = vmul.f32 %v4669_v0, %v1780_v37  ;;  %v2602_v14 = vld [vmem:[#allocation2 + $0xd8] sm:$0xff] }
 0x316   :  { %1427 = vst.msk [vmem:[#allocation3 + $0xc8] sm:$0xff] %vm26_vm0, %v1395_v30  ;;  %v1365_v25 = vpop.xlane.xlu2 %1364  ;;  %v1956_v17 = vsel %vm26_vm0, %v1905_v32, 0.0  ;;  %v1719_v33 = vadd.f32 %v2598_v31, %v1682_v27 }
 0x317   :  { %v2502_v53 = vpop.eup %2501  ;;  %v1399_v58 = vadd.f32 %v1365_v25, %v1047_v28  ;;  %v1957_v54 = vadd.f32 %v1956_v17, %v1955_v50  ;;  %v1781_v10 = vsub.f32 %v1717_v7, %v2599_v5  ;;  %v2154_v48 = vadd.f32 %v2153_v63, %v2152_v18  ;;  %v2603_v18 = vld [vmem:[#allocation4 + $0xc8] sm:$0xff]  ;;  %v2608_v17 = vld [vmem:[#allocation4 + $0xe0] sm:$0xff] }
 0x318   :  { %v1674_v9 = vmul.f32 0.6931472, %v2502_v53  ;;  %v2504_v51 = vpop.eup %2503  ;;  %v1962_v47 = vsel %vm26_vm0, %v1908_v55, 0.0  ;;  %v1783_v8 = vsub.f32 %v1719_v33, %v2600_v20  ;;  %v2610_v33 = vld [vmem:[#allocation4 + $0xf0] sm:$0xff] }
 0x319   :  { %1431 = vst.msk [vmem:[#allocation3 + $0xe8] sm:$0xff] %vm26_vm0, %v1399_v58  ;;  %v1049_v26 = vmul.f32 %v2504_v51, %v921_v39  ;;  %v1959_v45 = vadd.f32 %v1958_v61, %v1957_v54 }
 0x31a   :  { %v1715_v30 = vadd.f32 %v2595_v38, %v1674_v9  ;;  %v2506_v11 = vpop.eup %2505  ;;  %v1911_v58 = vmul.f32 %v4678_v40, %v1783_v8  ;;  %v2604_v9 = vld [vmem:[#allocation4 + $0xd8] sm:$0xff] }
 0x31b   :  { %v1363_v21 = vpop.xlane.xlu0 %1362  ;;  %v1627_v35 = vld [vmem:[#allocation3 + $0xf0] sm:$0xff]  ;;  %v1684_v56 = vmul.f32 0.6931472, %v2506_v11 }
 0x31c   :  { %v1398_v29 = vadd.f32 %v1363_v21, %v1046_v15  ;;  %v1779_v4 = vsub.f32 %v1715_v30, %v2597_v44  ;;  %v2155_v15 = vrot.slane %v2154_v48, 2  ;;  %v1909_v21 = vmul.f32 %v4671_v59, %v1781_v10  ;;  %v2605_v30 = vld [vmem:[#allocation2 + $0xe0] sm:$0xff]  ;;  %v2607_v44 = vld [vmem:[#allocation2 + $0xe8] sm:$0xff] }
 0x31d   :  { %v1622_v2 = vld [vmem:[#allocation3 + $0xc8] sm:$0xff]  ;;  %v1720_v6 = vadd.f32 %v2602_v14, %v1684_v56  ;;  %v1968_v63 = vsel %vm26_vm0, %v1911_v58, 0.0 }
 0x31e   :  { %1430 = vst.msk [vmem:[#allocation3 + $0xe0] sm:$0xff] %vm26_vm0, %v1398_v29  ;;  %2507 = vlog2.f32 %v1622_v2  ;;  %v1907_v43 = vmul.f32 %v4663_v62, %v1779_v4  ;;  %v2601_v62 = vld [vmem:[#allocation2 + $0xc8] sm:$0xff]  ;;  %v2156_v53 = vadd.f32 %v2155_v15, %v2154_v48  ;;  %v1964_v37 = vsel %vm26_vm0, %v1909_v21, 0.0 }
 0x31f   :  { %2509 = vlog2.f32 %v1627_v35  ;;  %v1784_v22 = vsub.f32 %v1720_v6, %v2604_v9 }
 0x320   :  { %v1960_v57 = vsel %vm26_vm0, %v1907_v43, 0.0  ;;  %v1626_v49 = vld [vmem:[#allocation3 + $0xe8] sm:$0xff]  ;;  %v2157_v13 = vrot.slane %v2156_v53, 1 }
 0x321   :  { %v1961_v16 = vadd.f32 %v1960_v57, %v1959_v45  ;;  %v1912_v11 = vmul.f32 %v4679_v24, %v1784_v22  ;;  %v2611_v45 = vld [vmem:[#allocation2 + $0xf8] sm:$0xff] }
 0x322   :  { %v2158_v27 = vadd.f32 %v2157_v13, %v2156_v53 }
 0x323   :  { %v1369_v52 = vpop.xlane.xlu0 %1368  ;;  %v1963_v46 = vadd.f32 %v1962_v47, %v1961_v16  ;;  %v1970_v56 = vsel %vm26_vm0, %v1912_v11, 0.0  ;;  %v2612_v47 = vld [vmem:[#allocation4 + $0xf8] sm:$0xff] }
 0x324   :  { %v2508_v42 = vpop.eup %2507  ;;  %v1401_v12 = vadd.f32 %v1369_v52, %v1049_v26  ;;  %2159 = vst.msk [vmem:[#allocation9] sm:$0x1] %vm1986_vm8, %v2158_v27  ;;  %v2609_v26 = vld [vmem:[#allocation4 + $0xe8] sm:$0xff] }
 0x325   :  { %v1625_v0 = vld [vmem:[#allocation3 + $0xe0] sm:$0xff]  ;;  %v1680_v23 = vmul.f32 0.6931472, %v2508_v42  ;;  %v2510_v25 = vpop.eup %2509  ;;  %v1965_v19 = vadd.f32 %v1964_v37, %v1963_v46  ;;  %2192 = dma.vmem_to_hbm [thread:$0]  %s2188_s21, 16, %s2190_s23, [#allocation8]  }
 0x326   :  { %1433 = vst.msk [vmem:[#allocation3 + $0xf8] sm:$0xff] %vm26_vm0, %v1401_v12  ;;  %2511 = vlog2.f32 %v1625_v0  ;;  %v1690_v2 = vmul.f32 0.6931472, %v2510_v25 }
 0x327   :  { %2513 = vlog2.f32 %v1626_v49  ;;  %v1718_v28 = vadd.f32 %v2601_v62, %v1680_v23 }
 0x329   :  { %v1782_v29 = vsub.f32 %v1718_v28, %v2603_v18 }
 0x32b   :  { %v1910_v59 = vmul.f32 %v4677_v36, %v1782_v29  ;;  %v2606_v36 = vld [vmem:[#allocation2 + $0xf0] sm:$0xff] }
 0x32c   :  { %v2512_v32 = vpop.eup %2511  ;;  %v1723_v7 = vadd.f32 %v2606_v36, %v1690_v2 }
 0x32d   :  { %v2514_v50 = vpop.eup %2513  ;;  %v1628_v51 = vld [vmem:[#allocation3 + $0xf8] sm:$0xff]  ;;  %v1686_v39 = vmul.f32 0.6931472, %v2512_v32  ;;  %v1966_v35 = vsel %vm26_vm0, %v1910_v59, 0.0 }
 0x32e   :  { %v1688_v38 = vmul.f32 0.6931472, %v2514_v50  ;;  %2515 = vlog2.f32 %v1628_v51  ;;  %v1967_v40 = vadd.f32 %v1966_v35, %v1965_v19  ;;  %v1787_v54 = vsub.f32 %v1723_v7, %v2610_v33 }
 0x32f   :  { %v1721_v1 = vadd.f32 %v2605_v30, %v1686_v39 }
 0x330   :  { %v1722_v4 = vadd.f32 %v2607_v44, %v1688_v38  ;;  %v1969_v55 = vadd.f32 %v1968_v63, %v1967_v40  ;;  %v1915_v0 = vmul.f32 %v4685_v41, %v1787_v54 }
 0x331   :  { %v1785_v61 = vsub.f32 %v1721_v1, %v2608_v17 }
 0x332   :  { %v1786_v31 = vsub.f32 %v1722_v4, %v2609_v26  ;;  %v1971_v24 = vadd.f32 %v1970_v56, %v1969_v55  ;;  %v1976_v20 = vsel %vm26_vm0, %v1915_v0, 0.0 }
 0x333   :  { %v1913_v52 = vmul.f32 %v4682_v34, %v1785_v61 }
 0x334   :  { %v2516_v5 = vpop.eup %2515  ;;  %v1914_v10 = vmul.f32 %v4683_v3, %v1786_v31 }
 0x335   :  { %v1692_v43 = vmul.f32 0.6931472, %v2516_v5  ;;  %v1972_v42 = vsel %vm26_vm0, %v1913_v52, 0.0 }
 0x336   :  { %v1973_v12 = vadd.f32 %v1972_v42, %v1971_v24  ;;  %v1974_v23 = vsel %vm26_vm0, %v1914_v10, 0.0 }
 0x337   :  { %v1724_v48 = vadd.f32 %v2611_v45, %v1692_v43 }
 0x338   :  { %v1975_v57 = vadd.f32 %v1974_v23, %v1973_v12 }
 0x339   :  { %v1788_v49 = vsub.f32 %v1724_v48, %v2612_v47 }
 0x33a   :  { %v1977_v8 = vadd.f32 %v1976_v20, %v1975_v57 }
 0x33b   :  { %v1916_v34 = vmul.f32 %v4060_v60, %v1788_v49 }
 0x33d   :  { %v1978_v3 = vsel %vm26_vm0, %v1916_v34, 0.0 }
 0x33e   :  { %v1979_v16 = vadd.f32 %v1978_v3, %v1977_v8 }
 0x340   :  { %v1980_v15 = vrot.slane %v1979_v16, 4 }
 0x342   :  { %v1981_v62 = vadd.f32 %v1980_v15, %v1979_v16 }
 0x344   :  { %v1982_v28 = vrot.slane %v1981_v62, 2 }
 0x346   :  { %v1983_v14 = vadd.f32 %v1982_v28, %v1981_v62 }
 0x348   :  { %v1984_v41 = vrot.slane %v1983_v14, 1 }
 0x34a   :  { %v1985_v6 = vadd.f32 %v1984_v41, %v1983_v14 }
 0x34c   :  { %1987 = vst.msk [vmem:[#allocation5] sm:$0x1] %vm1986_vm8, %v1985_v6 }
 0x34d   :  { %2170 = dma.vmem_to_hbm [thread:$0]  %s2166_s24, 16, %s2168_s27, [#allocation6]  }
 0x34e   :  { %2685 = dma.done.wait [#allocation6], 16  }
 0x34f   :  { %2686 = vsyncadd [#allocation6], 4294967280 }
 0x350   :  { %2687 = dma.done.wait [#allocation8], 32  }
 0x351   :  { %2688 = vsyncadd [#allocation8], 4294967264 }
 0x352   :  { %2205 = vsyncpa [#allocation6], 1 }
 0x353   :  { %2206 = vsyncpa [#allocation8], 1 }

</bundles_post_ra>
